<compile_context>
chip_gen: v7x
topology: tpu7x:2x2x1
jax: 0.10.0
libtpu: 0.0.40
codegen_flags: <defaults>
</compile_context>

<pallas_src>
import functools
import math

import jax
import jax.numpy as jnp
from jax.experimental import pallas as pl
from jax.experimental.pallas import tpu as pltpu

_LN_EPS = 1e-5                      # torch nn.LayerNorm default
_SQRT_2_OVER_PI = math.sqrt(2.0 / math.pi)


# --------------------------- generation-aware config -------------------------

def _tpu_config():
    """Returns (vmem_limit_bytes, tensorcores_per_chip)."""
    vmem_limit = 32 * 1024 * 1024          # known-safe fallback on every gen
    cores = 1
    try:
        cap = int(pltpu.get_tpu_info().vmem_capacity_bytes)
        # ~75% of physical VMEM, capped at 96 MiB (v5e/v6e: 128 MiB; v7x: 64 MiB/TC)
        vmem_limit = min(cap * 3 // 4, 96 * 1024 * 1024)
        cores = 2 if cap <= 64 * 1024 * 1024 else 1   # v7x heuristic: 2 TCs/chip
    except Exception:
        pass
    return vmem_limit, cores


def _pick_row_tile(M, target):
    """Largest row tile <= target that divides M and keeps the (8,128) rule."""
    if M <= target:
        return M
    if M % 8:
        return M                    # full-extent block is always legal
    t = target - (target % 8)
    while t >= 8:
        if M % t == 0:
            return t
        t -= 8
    return M


def _pick_bt(B, cores):
    """Batch-group size: only split (>=2 grid steps) when there are 2 TCs."""
    if cores <= 1 or B < 2:
        return B
    for bt in range(B // 2, 0, -1):
        if B % bt == 0:
            return bt
    return 1


# --------------------------- math helpers (in-kernel) ------------------------

def _gelu(x):
    # tanh-approximate GELU (rides the EUP tanh unit).  torch.nn.GELU defaults
    # to the exact erf form; deviation ~1e-3, below the bf16-matmul noise floor.
    return 0.5 * x * (1.0 + jnp.tanh(_SQRT_2_OVER_PI * (x + 0.044715 * (x * x * x))))


def _layernorm(x, gamma, beta):
    # f32 elementwise; gamma/beta are (1, D)
    mean = jnp.mean(x, axis=-1, keepdims=True)
    var = jnp.mean(jnp.square(x - mean), axis=-1, keepdims=True)
    return (x - mean) * jax.lax.rsqrt(var + _LN_EPS) * gamma + beta


# --------------------------- Pallas kernels ---------------------------------

def _matmul_bias_gelu_kernel(x_ref, w_ref, b_ref, o_ref):
    # o = gelu(x @ w + b); x/w arrive in bf16 (MXU), accumulate/elementwise f32.
    acc = jnp.dot(x_ref[...], w_ref[...], preferred_element_type=jnp.float32)
    o_ref[...] = _gelu(acc + b_ref[...])


def _layer_kernel(x_ref, ln1g_ref, ln1b_ref, wq_ref, bq_ref, wkv_ref, bkv_ref,
                  wo_ref, bo_ref, ln2g_ref, ln2b_ref, w1_ref, b1_ref,
                  w2_ref, b2_ref, rw_ref, o_ref, ctx_ref, *, heads, d_k):
    """One fused encoder layer (attn residual block + FF residual block).

    Grid = (batch_group, layer).  The layer axis is "arbitrary" and the output
    block index is layer-invariant, so the residual stream stays resident in
    VMEM for all layers of a batch group; per-layer weights are streamed.
    """
    l = pl.program_id(1)
    bt, P, D = o_ref.shape
    M = bt * P

    @pl.when(l == 0)
    def _():
        o_ref[...] = x_ref[...]

    x = o_ref[...].reshape(M, D)                       # f32 residual stream

    # ---- ResiduleBlock(AttentionLayer): x + rw_a * MHA(q=LN(x), k=x, v=x) ----
    xn = _layernorm(x, ln1g_ref[...], ln1b_ref[...])   # only Q sees the LayerNorm
    q = jnp.dot(xn.astype(jnp.bfloat16), wq_ref[...],
                preferred_element_type=jnp.float32) + bq_ref[...]        # (M, D)
    kv = jnp.dot(x.astype(jnp.bfloat16), wkv_ref[...],
                 preferred_element_type=jnp.float32) + bkv_ref[...]      # (M, 2D)

    scale = 1.0 / math.sqrt(d_k)
    # TODO(synk): for large P, flash-tile KV (extra grid axis + online-softmax
    # m/l/acc scratch) instead of the full (bt,P,P) score; for large `heads`,
    # hoist heads onto a grid axis instead of this static unroll.
    for h in range(heads):
        sl = slice(h * d_k, (h + 1) * d_k)
        qh = q[:, sl].reshape(bt, P, d_k).astype(jnp.bfloat16)
        kh = kv[:, sl].reshape(bt, P, d_k).astype(jnp.bfloat16)
        vh = kv[:, D + h * d_k:D + (h + 1) * d_k].reshape(bt, P, d_k).astype(jnp.bfloat16)

        s = jnp.einsum('bpd,bqd->bpq', qh, kh,
                       preferred_element_type=jnp.float32) * scale       # (bt,P,P)
        s = s - jnp.max(s, axis=-1, keepdims=True)
        e = jnp.exp(s)
        prob = e * pl.reciprocal(jnp.sum(e, axis=-1, keepdims=True), approx=True)
        ctxh = jnp.einsum('bpq,bqd->bpd', prob.astype(jnp.bfloat16), vh,
                          preferred_element_type=jnp.float32)            # (bt,P,d_k)
        # 'b h p d -> b p (h d)': contiguous column store into VMEM scratch
        ctx_ref[:, :, sl] = ctxh

    # ONE output projection with full K=D contraction (instead of `heads`
    # tiny K=d_k matmuls) keeps the MXU fed.
    attn_out = jnp.dot(ctx_ref[...].reshape(M, D).astype(jnp.bfloat16), wo_ref[...],
                       preferred_element_type=jnp.float32) + bo_ref[...]
    x = x + rw_ref[l, 0] * attn_out

    # ---- ResiduleBlock(FeedForward): x + rw_f * gelu(W2 @ gelu(W1 @ LN(x))) ----
    # (the reference FeedForward applies GELU after BOTH linears)
    # TODO(synk): for large d_model, tile the 4*D hidden dim over an extra
    # "arbitrary" grid axis with an f32 accumulator (v7x 64 MiB VMEM budget).
    xn2 = _layernorm(x, ln2g_ref[...], ln2b_ref[...])
    h1 = _gelu(jnp.dot(xn2.astype(jnp.bfloat16), w1_ref[...],
                       preferred_element_type=jnp.float32) + b1_ref[...])
    h2 = _gelu(jnp.dot(h1.astype(jnp.bfloat16), w2_ref[...],
                       preferred_element_type=jnp.float32) + b2_ref[...])
    o_ref[...] = (x + rw_ref[l, 1] * h2).reshape(bt, P, D)


# --------------------------- pallas_call wrappers ----------------------------

def conv_matmul_bias_gelu(x, w, b, *, vmem_limit, target_tm=512):
    # x: (M, K) f32 (cast once to bf16), w: (K, N) bf16 (stored), b: (1, N) f32
    M, K = x.shape
    N = w.shape[1]
    tm = _pick_row_tile(M, target_tm)       # divides M exactly -> no jnp.pad copy
    # TODO(synk): mark the grid-invariant w/b specs pipeline_mode=pl.Buffered(1)
    # (single-buffered) once verified on the target jax release.
    return pl.pallas_call(
        _matmul_bias_gelu_kernel,
        grid=(M // tm,),
        out_shape=jax.ShapeDtypeStruct((M, N), jnp.float32),
        in_specs=[pl.BlockSpec((tm, K), lambda i: (i, 0)),
                  pl.BlockSpec((K, N), lambda i: (0, 0)),
                  pl.BlockSpec((1, N), lambda i: (0, 0))],
        out_specs=pl.BlockSpec((tm, N), lambda i: (i, 0)),
        compiler_params=pltpu.CompilerParams(
            dimension_semantics=("parallel",),
            vmem_limit_bytes=vmem_limit),
    )(x.astype(jnp.bfloat16), w, b)


def transformer_stack(x, p, *, heads, vmem_limit, cores):
    B, P, D = x.shape
    L = p["wq"].shape[0]
    if L == 0:
        return x
    d_k = D // heads
    Hff = p["w1"].shape[-1]
    bt = _pick_bt(B, cores)
    kern = functools.partial(_layer_kernel, heads=heads, d_k=d_k)

    def per_layer(*shape):
        nd = len(shape)

        def imap(b, l):
            return (l,) + (0,) * nd
        return pl.BlockSpec((None,) + tuple(shape), imap)

    act_spec = pl.BlockSpec((bt, P, D), lambda b, l: (b, 0, 0))
    in_specs = [
        act_spec,                                          # x (read only at l==0)
        per_layer(1, D), per_layer(1, D),                  # ln1 gamma, beta
        per_layer(D, D), per_layer(1, D),                  # W_q, b_q
        per_layer(D, 2 * D), per_layer(1, 2 * D),          # fused [W_k|W_v], [b_k|b_v]
        per_layer(D, D), per_layer(1, D),                  # W_o, b_o
        per_layer(1, D), per_layer(1, D),                  # ln2 gamma, beta
        per_layer(D, Hff), per_layer(1, Hff),              # W_1, b_1
        per_layer(Hff, D), per_layer(1, D),                # W_2, b_2
        pl.BlockSpec(memory_space=pltpu.MemorySpace.SMEM), # resweights (L, 2)
    ]
    return pl.pallas_call(
        kern,
        grid=(B // bt, L),
        out_shape=jax.ShapeDtypeStruct((B, P, D), jnp.float32),
        in_specs=in_specs,
        out_specs=act_spec,                                # layer-invariant -> resident
        scratch_shapes=[pltpu.VMEM((bt, P, D), jnp.float32)],
        compiler_params=pltpu.CompilerParams(
            dimension_semantics=("parallel", "arbitrary"),
            vmem_limit_bytes=vmem_limit),
    )(x, p["ln1_g"], p["ln1_b"], p["wq"], p["bq"], p["wkv"], p["bkv"],
      p["wo"], p["bo"], p["ln2_g"], p["ln2_b"], p["w1"], p["b1"],
      p["w2"], p["b2"], p["resweight"])


# --------------------------- Encoder forward ---------------------------------

def encoder_forward(x, params, *, downsample, heads):
    vmem_limit, cores = _tpu_config()
    x = x.astype(jnp.float32)
    B, C, H, W = x.shape
    ksz = downsample * 2
    d_model = params["conv_w"].shape[1]
    Ho = (H - ksz) // downsample + 1
    Wo = (W - ksz) // downsample + 1

    # im2col patch extraction (plain-JAX glue); feature index = c*k*k + di*k + dj
    # TODO(synk): for large inputs fold the patch gather into the conv kernel
    # (strided / pl.Element BlockSpecs) so the relayout hides under MXU work.
    patches = []
    for di in range(ksz):
        for dj in range(ksz):
            patches.append(x[:, :, di:di + downsample * Ho:downsample,
                               dj:dj + downsample * Wo:downsample])      # [B,C,Ho,Wo]
    p = jnp.stack(patches, axis=2)                                       # [B,C,k*k,Ho,Wo]
    p = p.transpose(0, 3, 4, 1, 2).reshape(B * Ho * Wo, C * ksz * ksz)

    y = conv_matmul_bias_gelu(p, params["conv_w"], params["conv_b"],
                              vmem_limit=vmem_limit)                     # gelu(conv)
    x_seq = y.reshape(B, Ho * Wo, d_model)                               # 'b c h w -> b (h w) c'
    return transformer_stack(x_seq, params, heads=heads,
                             vmem_limit=vmem_limit, cores=cores)


# --------------------------- deterministic init -------------------------------

def init_encoder_params(key, in_channel, downsample, n_layer, d_model):
    """Weights stored ONCE in bf16 (matmul layout), stacked along a layer axis."""
    ksz = downsample * 2
    kin = in_channel * ksz * ksz
    keys = iter(jax.random.split(key, 16))

    def nrm(shape, scale=0.02, dtype=jnp.float32):
        return (scale * jax.random.normal(next(keys), shape, jnp.float32)).astype(dtype)

    L = n_layer
    return {
        # conv weight pre-flattened to (C*k*k, d_model) matmul layout, bf16
        "conv_w": nrm((kin, d_model), 0.1, jnp.bfloat16),
        "conv_b": nrm((1, d_model), 0.1),
        "ln1_g": jnp.ones((L, 1, d_model), jnp.float32),
        "ln1_b": jnp.zeros((L, 1, d_model), jnp.float32),
        "wq": nrm((L, d_model, d_model), dtype=jnp.bfloat16),
        "bq": nrm((L, 1, d_model)),
        # fused [W_k | W_v] along the output dim (single MXU push)
        "wkv": nrm((L, d_model, 2 * d_model), dtype=jnp.bfloat16),
        "bkv": nrm((L, 1, 2 * d_model)),
        "wo": nrm((L, d_model, d_model), dtype=jnp.bfloat16),
        "bo": nrm((L, 1, d_model)),
        "ln2_g": jnp.ones((L, 1, d_model), jnp.float32),
        "ln2_b": jnp.zeros((L, 1, d_model), jnp.float32),
        "w1": nrm((L, d_model, 4 * d_model), dtype=jnp.bfloat16),
        "b1": nrm((L, 1, 4 * d_model)),
        "w2": nrm((L, 4 * d_model, d_model), dtype=jnp.bfloat16),
        "b2": nrm((L, 1, d_model)),
        # [:,0]=attn resweight, [:,1]=ff resweight.  NOTE: torch (ReZero) inits
        # resweight to 0 (residual blocks are the identity at init); 0.5 is used
        # here so the demo run actually exercises the attention/FF math.
        "resweight": jnp.full((L, 2), 0.5, jnp.float32),
    }


if __name__ == "__main__":
    # small, shape-consistent config: Encoder(in_channel=4, downsample=2,
    # n_layer=2, dropout=0.1, d_model=32, heads=4) on x of shape [2, 4, 18, 18]
    B, C, H, W = 2, 4, 18, 18
    downsample, n_layer, d_model, heads = 2, 2, 32, 4

    key = jax.random.PRNGKey(0)
    kx, kp = jax.random.split(key)
    x = jax.random.normal(kx, (B, C, H, W), jnp.float32)
    params = init_encoder_params(kp, C, downsample, n_layer, d_model)

    fwd = jax.jit(functools.partial(encoder_forward, downsample=downsample, heads=heads))
    out = jax.block_until_ready(fwd(x, params))

    Ho = (H - downsample * 2) // downsample + 1
    assert out.shape == (B, Ho * Ho, d_model), out.shape
    assert bool(jnp.all(jnp.isfinite(out)))
    print("KERNEL_OK")
</pallas_src>

<mosaic_0001>
module attributes {stable_mosaic.version = 11 : i64} {
  func.func @_matmul_bias_gelu_kernel(%arg0: i32, %arg1: memref<128x64xbf16, #tpu.memory_space<vmem>>, %arg2: memref<64x32xbf16, #tpu.memory_space<vmem>>, %arg3: memref<1x32xf32, #tpu.memory_space<vmem>>, %arg4: memref<128x32xf32, #tpu.memory_space<vmem>>) attributes {dimension_semantics = [#tpu.dimension_semantics<parallel>], iteration_bounds = array<i64: 1>, scalar_prefetch = 0 : i64, scratch_operands = 0 : i64, tpu.core_type = #tpu.core_type<tc>, window_params = [{transform_indices = @transform_0, window_bounds = array<i64: 128, 64>}, {pipeline_mode = #tpu.pipeline_mode<synchronous>, transform_indices = @transform_1, window_bounds = array<i64: 64, 32>}, {pipeline_mode = #tpu.pipeline_mode<synchronous>, transform_indices = @transform_2, window_bounds = array<i64: 1, 32>}, {transform_indices = @transform_3, window_bounds = array<i64: 128, 32>}]} {
    %c0 = arith.constant 0 : index
    %c0_0 = arith.constant 0 : index
    %0 = vector.load %arg1[%c0, %c0_0] : memref<128x64xbf16, #tpu.memory_space<vmem>>, vector<128x64xbf16>
    %c0_1 = arith.constant 0 : index
    %c0_2 = arith.constant 0 : index
    %1 = vector.load %arg2[%c0_1, %c0_2] : memref<64x32xbf16, #tpu.memory_space<vmem>>, vector<64x32xbf16>
    %cst = arith.constant dense<0.000000e+00> : vector<128x32xf32>
    %2 = tpu.matmul %0, %1, %cst {dimension_numbers = #tpu.dot_dimension_numbers<[1], [0], [0], [1], [0, 0, 1, 1], [], []>} : vector<128x64xbf16>, vector<64x32xbf16>, vector<128x32xf32> -> vector<128x32xf32>
    %c0_3 = arith.constant 0 : index
    %c0_4 = arith.constant 0 : index
    %3 = vector.load %arg3[%c0_3, %c0_4] : memref<1x32xf32, #tpu.memory_space<vmem>>, vector<1x32xf32>
    %4 = vector.broadcast %3 : vector<1x32xf32> to vector<128x32xf32>
    %5 = arith.addf %2, %4 : vector<128x32xf32>
    %cst_5 = arith.constant 5.000000e-01 : f32
    %6 = vector.broadcast %cst_5 : f32 to vector<128x32xf32>
    %7 = arith.mulf %6, %5 : vector<128x32xf32>
    %8 = arith.mulf %5, %5 : vector<128x32xf32>
    %9 = arith.mulf %8, %5 : vector<128x32xf32>
    %cst_6 = arith.constant 4.471500e-02 : f32
    %10 = vector.broadcast %cst_6 : f32 to vector<128x32xf32>
    %11 = arith.mulf %10, %9 : vector<128x32xf32>
    %12 = arith.addf %5, %11 : vector<128x32xf32>
    %cst_7 = arith.constant 0.797884583 : f32
    %13 = vector.broadcast %cst_7 : f32 to vector<128x32xf32>
    %14 = arith.mulf %13, %12 : vector<128x32xf32>
    %15 = math.tanh %14 : vector<128x32xf32>
    %cst_8 = arith.constant 1.000000e+00 : f32
    %16 = vector.broadcast %cst_8 : f32 to vector<128x32xf32>
    %17 = arith.addf %16, %15 : vector<128x32xf32>
    %18 = arith.mulf %7, %17 : vector<128x32xf32>
    %c0_9 = arith.constant 0 : index
    %c0_10 = arith.constant 0 : index
    %19 = vector.load %arg4[%c0_9, %c0_10] : memref<128x32xf32, #tpu.memory_space<vmem>>, vector<128x32xf32>
    tpu.vector_store %arg4[%c0_9, %c0_10], %18 {strides = array<i32>} : memref<128x32xf32, #tpu.memory_space<vmem>>, vector<128x32xf32>,
    return
  }
  func.func @transform_0(%arg0: i32) -> (i32, i32) {
    %c0_i32 = arith.constant 0 : i32
    %c0_i32_0 = arith.constant 0 : i32
    return %arg0, %c0_i32 : i32, i32
  }
  func.func @transform_1(%arg0: i32) -> (i32, i32) {
    %c0_i32 = arith.constant 0 : i32
    %c0_i32_0 = arith.constant 0 : i32
    %c0_i32_1 = arith.constant 0 : i32
    return %c0_i32, %c0_i32_0 : i32, i32
  }
  func.func @transform_2(%arg0: i32) -> (i32, i32) {
    %c0_i32 = arith.constant 0 : i32
    %c0_i32_0 = arith.constant 0 : i32
    %c0_i32_1 = arith.constant 0 : i32
    return %c0_i32, %c0_i32_0 : i32, i32
  }
  func.func @transform_3(%arg0: i32) -> (i32, i32) {
    %c0_i32 = arith.constant 0 : i32
    %c0_i32_0 = arith.constant 0 : i32
    return %arg0, %c0_i32 : i32, i32
  }
}

module attributes {stable_mosaic.version = 11 : i64} {
  func.func @_layer_kernel(%arg0: i32, %arg1: i32, %arg2: memref<2x64x32xf32, #tpu.memory_space<vmem>>, %arg3: memref<1x1x32xf32, #tpu.memory_space<vmem>>, %arg4: memref<1x1x32xf32, #tpu.memory_space<vmem>>, %arg5: memref<1x32x32xbf16, #tpu.memory_space<vmem>>, %arg6: memref<1x1x32xf32, #tpu.memory_space<vmem>>, %arg7: memref<1x32x64xbf16, #tpu.memory_space<vmem>>, %arg8: memref<1x1x64xf32, #tpu.memory_space<vmem>>, %arg9: memref<1x32x32xbf16, #tpu.memory_space<vmem>>, %arg10: memref<1x1x32xf32, #tpu.memory_space<vmem>>, %arg11: memref<1x1x32xf32, #tpu.memory_space<vmem>>, %arg12: memref<1x1x32xf32, #tpu.memory_space<vmem>>, %arg13: memref<1x32x128xbf16, #tpu.memory_space<vmem>>, %arg14: memref<1x1x128xf32, #tpu.memory_space<vmem>>, %arg15: memref<1x128x32xbf16, #tpu.memory_space<vmem>>, %arg16: memref<1x1x32xf32, #tpu.memory_space<vmem>>, %arg17: memref<2x2xf32, #tpu.memory_space<smem>>, %arg18: memref<2x64x32xf32, #tpu.memory_space<vmem>>, %arg19: memref<2x64x32xf32, #tpu.memory_space<vmem>>) attributes {dimension_semantics = [#tpu.dimension_semantics<parallel>, #tpu.dimension_semantics<arbitrary>], iteration_bounds = array<i64: 1, 2>, scalar_prefetch = 0 : i64, scratch_operands = 1 : i64, tpu.core_type = #tpu.core_type<tc>, window_params = [{transform_indices = @transform_0, window_bounds = array<i64: 2, 64, 32>}, {transform_indices = @transform_1, window_bounds = array<i64: 1, 1, 32>}, {transform_indices = @transform_2, window_bounds = array<i64: 1, 1, 32>}, {transform_indices = @transform_3, window_bounds = array<i64: 1, 32, 32>}, {transform_indices = @transform_4, window_bounds = array<i64: 1, 1, 32>}, {transform_indices = @transform_5, window_bounds = array<i64: 1, 32, 64>}, {transform_indices = @transform_6, window_bounds = array<i64: 1, 1, 64>}, {transform_indices = @transform_7, window_bounds = array<i64: 1, 32, 32>}, {transform_indices = @transform_8, window_bounds = array<i64: 1, 1, 32>}, {transform_indices = @transform_9, window_bounds = array<i64: 1, 1, 32>}, {transform_indices = @transform_10, window_bounds = array<i64: 1, 1, 32>}, {transform_indices = @transform_11, window_bounds = array<i64: 1, 32, 128>}, {transform_indices = @transform_12, window_bounds = array<i64: 1, 1, 128>}, {transform_indices = @transform_13, window_bounds = array<i64: 1, 128, 32>}, {transform_indices = @transform_14, window_bounds = array<i64: 1, 1, 32>}, {transform_indices = @transform_15, window_bounds = array<i64: 2, 2>}, {transform_indices = @transform_16, window_bounds = array<i64: 2, 64, 32>}]} {
    %c0_i32 = arith.constant 0 : i32
    %0 = arith.cmpi eq, %arg1, %c0_i32 : i32
    %1 = arith.extui %0 : i1 to i32
    %c0_i32_0 = arith.constant 0 : i32
    %2 = arith.cmpi ne, %1, %c0_i32_0 : i32
    scf.if %2 {
      %c0_103 = arith.constant 0 : index
      %c0_104 = arith.constant 0 : index
      %c0_105 = arith.constant 0 : index
      %237 = vector.load %arg2[%c0_103, %c0_104, %c0_105] : memref<2x64x32xf32, #tpu.memory_space<vmem>>, vector<2x64x32xf32>
      %c0_106 = arith.constant 0 : index
      %c0_107 = arith.constant 0 : index
      %c0_108 = arith.constant 0 : index
      %238 = vector.load %arg18[%c0_106, %c0_107, %c0_108] : memref<2x64x32xf32, #tpu.memory_space<vmem>>, vector<2x64x32xf32>
      tpu.vector_store %arg18[%c0_106, %c0_107, %c0_108], %237 {strides = array<i32>} : memref<2x64x32xf32, #tpu.memory_space<vmem>>, vector<2x64x32xf32>,
    } else {
    }
    %c0 = arith.constant 0 : index
    %c0_1 = arith.constant 0 : index
    %c0_2 = arith.constant 0 : index
    %3 = vector.load %arg18[%c0, %c0_1, %c0_2] : memref<2x64x32xf32, #tpu.memory_space<vmem>>, vector<2x64x32xf32>
    %4 = vector.shape_cast %3 : vector<2x64x32xf32> to vector<128x32xf32>
    %c0_3 = arith.constant 0 : index
    %c0_4 = arith.constant 0 : index
    %c0_5 = arith.constant 0 : index
    %5 = vector.load %arg3[%c0_3, %c0_4, %c0_5] : memref<1x1x32xf32, #tpu.memory_space<vmem>>, vector<1x1x32xf32>
    %6 = vector.shape_cast %5 : vector<1x1x32xf32> to vector<1x32xf32>
    %c0_6 = arith.constant 0 : index
    %c0_7 = arith.constant 0 : index
    %c0_8 = arith.constant 0 : index
    %7 = vector.load %arg4[%c0_6, %c0_7, %c0_8] : memref<1x1x32xf32, #tpu.memory_space<vmem>>, vector<1x1x32xf32>
    %8 = vector.shape_cast %7 : vector<1x1x32xf32> to vector<1x32xf32>
    %cst = arith.constant dense<0.000000e+00> : vector<128xf32>
    %9 = vector.multi_reduction <add>, %4, %cst [1] : vector<128x32xf32> to vector<128xf32>
    %10 = vector.shape_cast %9 : vector<128xf32> to vector<128x1xf32>
    %cst_9 = arith.constant 3.200000e+01 : f32
    %11 = vector.broadcast %cst_9 : f32 to vector<128x1xf32>
    %12 = arith.divf %10, %11 : vector<128x1xf32>
    %13 = vector.broadcast %12 : vector<128x1xf32> to vector<128x32xf32>
    %14 = arith.subf %4, %13 : vector<128x32xf32>
    %15 = arith.mulf %14, %14 : vector<128x32xf32>
    %cst_10 = arith.constant dense<0.000000e+00> : vector<128xf32>
    %16 = vector.multi_reduction <add>, %15, %cst_10 [1] : vector<128x32xf32> to vector<128xf32>
    %17 = vector.shape_cast %16 : vector<128xf32> to vector<128x1xf32>
    %cst_11 = arith.constant 3.200000e+01 : f32
    %18 = vector.broadcast %cst_11 : f32 to vector<128x1xf32>
    %19 = arith.divf %17, %18 : vector<128x1xf32>
    %20 = vector.broadcast %12 : vector<128x1xf32> to vector<128x32xf32>
    %21 = arith.subf %4, %20 : vector<128x32xf32>
    %cst_12 = arith.constant 9.99999974E-6 : f32
    %22 = vector.broadcast %cst_12 : f32 to vector<128x1xf32>
    %23 = arith.addf %19, %22 : vector<128x1xf32>
    %24 = math.rsqrt %23 : vector<128x1xf32>
    %25 = vector.broadcast %24 : vector<128x1xf32> to vector<128x32xf32>
    %26 = arith.mulf %21, %25 : vector<128x32xf32>
    %27 = vector.broadcast %6 : vector<1x32xf32> to vector<128x32xf32>
    %28 = arith.mulf %26, %27 : vector<128x32xf32>
    %29 = vector.broadcast %8 : vector<1x32xf32> to vector<128x32xf32>
    %30 = arith.addf %28, %29 : vector<128x32xf32>
    %31 = arith.truncf %30 : vector<128x32xf32> to vector<128x32xbf16>
    %c0_13 = arith.constant 0 : index
    %c0_14 = arith.constant 0 : index
    %c0_15 = arith.constant 0 : index
    %32 = vector.load %arg5[%c0_13, %c0_14, %c0_15] : memref<1x32x32xbf16, #tpu.memory_space<vmem>>, vector<1x32x32xbf16>
    %33 = vector.shape_cast %32 : vector<1x32x32xbf16> to vector<32x32xbf16>
    %cst_16 = arith.constant dense<0.000000e+00> : vector<128x32xf32>
    %34 = tpu.matmul %31, %33, %cst_16 {dimension_numbers = #tpu.dot_dimension_numbers<[1], [0], [0], [1], [0, 0, 1, 1], [], []>} : vector<128x32xbf16>, vector<32x32xbf16>, vector<128x32xf32> -> vector<128x32xf32>
    %c0_17 = arith.constant 0 : index
    %c0_18 = arith.constant 0 : index
    %c0_19 = arith.constant 0 : index
    %35 = vector.load %arg6[%c0_17, %c0_18, %c0_19] : memref<1x1x32xf32, #tpu.memory_space<vmem>>, vector<1x1x32xf32>
    %36 = vector.shape_cast %35 : vector<1x1x32xf32> to vector<1x32xf32>
    %37 = vector.broadcast %36 : vector<1x32xf32> to vector<128x32xf32>
    %38 = arith.addf %34, %37 : vector<128x32xf32>
    %39 = arith.truncf %4 : vector<128x32xf32> to vector<128x32xbf16>
    %c0_20 = arith.constant 0 : index
    %c0_21 = arith.constant 0 : index
    %c0_22 = arith.constant 0 : index
    %40 = vector.load %arg7[%c0_20, %c0_21, %c0_22] : memref<1x32x64xbf16, #tpu.memory_space<vmem>>, vector<1x32x64xbf16>
    %41 = vector.shape_cast %40 : vector<1x32x64xbf16> to vector<32x64xbf16>
    %cst_23 = arith.constant dense<0.000000e+00> : vector<128x64xf32>
    %42 = tpu.matmul %39, %41, %cst_23 {dimension_numbers = #tpu.dot_dimension_numbers<[1], [0], [0], [1], [0, 0, 1, 1], [], []>} : vector<128x32xbf16>, vector<32x64xbf16>, vector<128x64xf32> -> vector<128x64xf32>
    %c0_24 = arith.constant 0 : index
    %c0_25 = arith.constant 0 : index
    %c0_26 = arith.constant 0 : index
    %43 = vector.load %arg8[%c0_24, %c0_25, %c0_26] : memref<1x1x64xf32, #tpu.memory_space<vmem>>, vector<1x1x64xf32>
    %44 = vector.shape_cast %43 : vector<1x1x64xf32> to vector<1x64xf32>
    %45 = vector.broadcast %44 : vector<1x64xf32> to vector<128x64xf32>
    %46 = arith.addf %42, %45 : vector<128x64xf32>
    %47 = vector.extract_strided_slice %38 {offsets = [0, 0], sizes = [128, 8], strides = [1, 1]} : vector<128x32xf32> to vector<128x8xf32>
    %48 = vector.shape_cast %47 : vector<128x8xf32> to vector<2x64x8xf32>
    %49 = arith.truncf %48 : vector<2x64x8xf32> to vector<2x64x8xbf16>
    %50 = vector.extract_strided_slice %46 {offsets = [0, 0], sizes = [128, 8], strides = [1, 1]} : vector<128x64xf32> to vector<128x8xf32>
    %51 = vector.shape_cast %50 : vector<128x8xf32> to vector<2x64x8xf32>
    %52 = arith.truncf %51 : vector<2x64x8xf32> to vector<2x64x8xbf16>
    %53 = vector.extract_strided_slice %46 {offsets = [0, 32], sizes = [128, 8], strides = [1, 1]} : vector<128x64xf32> to vector<128x8xf32>
    %54 = vector.shape_cast %53 : vector<128x8xf32> to vector<2x64x8xf32>
    %55 = arith.truncf %54 : vector<2x64x8xf32> to vector<2x64x8xbf16>
    "tpu.trace_start"() <{level = 10 : i32, message = "bpd,bqd->bpq"}> : () -> ()
    %cst_27 = arith.constant dense<0.000000e+00> : vector<2x64x64xf32>
    %56 = tpu.matmul %49, %52, %cst_27 {dimension_numbers = #tpu.dot_dimension_numbers<[2], [2], [1], [1], [0, 0, 0, 1, 1, 1], [0], [0]>} : vector<2x64x8xbf16>, vector<2x64x8xbf16>, vector<2x64x64xf32> -> vector<2x64x64xf32>
    "tpu.trace_stop"() : () -> ()
    %cst_28 = arith.constant 0.353553385 : f32
    %57 = vector.broadcast %cst_28 : f32 to vector<2x64x64xf32>
    %58 = arith.mulf %56, %57 : vector<2x64x64xf32>
    %cst_29 = arith.constant dense<0xFF800000> : vector<2x64xf32>
    %59 = vector.multi_reduction <maximumf>, %58, %cst_29 [2] : vector<2x64x64xf32> to vector<2x64xf32>
    %60 = vector.shape_cast %59 : vector<2x64xf32> to vector<2x64x1xf32>
    %61 = vector.broadcast %60 : vector<2x64x1xf32> to vector<2x64x64xf32>
    %62 = arith.subf %58, %61 : vector<2x64x64xf32>
    %63 = math.exp %62 : vector<2x64x64xf32>
    %cst_30 = arith.constant dense<0.000000e+00> : vector<2x64xf32>
    %64 = vector.multi_reduction <add>, %63, %cst_30 [2] : vector<2x64x64xf32> to vector<2x64xf32>
    %65 = vector.shape_cast %64 : vector<2x64xf32> to vector<2x64x1xf32>
    %66 = tpu.reciprocal %65 {approx = true} : vector<2x64x1xf32> -> vector<2x64x1xf32>
    %67 = vector.broadcast %66 : vector<2x64x1xf32> to vector<2x64x64xf32>
    %68 = arith.mulf %63, %67 : vector<2x64x64xf32>
    %69 = arith.truncf %68 : vector<2x64x64xf32> to vector<2x64x64xbf16>
    "tpu.trace_start"() <{level = 10 : i32, message = "bpq,bqd->bpd"}> : () -> ()
    %cst_31 = arith.constant dense<0.000000e+00> : vector<2x64x8xf32>
    %70 = tpu.matmul %69, %55, %cst_31 {dimension_numbers = #tpu.dot_dimension_numbers<[2], [1], [1], [2], [0, 0, 0, 1, 1, 2], [0], [0]>} : vector<2x64x64xbf16>, vector<2x64x8xbf16>, vector<2x64x8xf32> -> vector<2x64x8xf32>
    "tpu.trace_stop"() : () -> ()
    %c0_32 = arith.constant 0 : index
    %c0_33 = arith.constant 0 : index
    %c0_34 = arith.constant 0 : index
    %71 = vector.load %arg19[%c0_32, %c0_33, %c0_34] : memref<2x64x32xf32, #tpu.memory_space<vmem>>, vector<2x64x8xf32>
    tpu.vector_store %arg19[%c0_32, %c0_33, %c0_34], %70 {strides = array<i32>} : memref<2x64x32xf32, #tpu.memory_space<vmem>>, vector<2x64x8xf32>,
    %72 = vector.extract_strided_slice %38 {offsets = [0, 8], sizes = [128, 8], strides = [1, 1]} : vector<128x32xf32> to vector<128x8xf32>
    %73 = vector.shape_cast %72 : vector<128x8xf32> to vector<2x64x8xf32>
    %74 = arith.truncf %73 : vector<2x64x8xf32> to vector<2x64x8xbf16>
    %75 = vector.extract_strided_slice %46 {offsets = [0, 8], sizes = [128, 8], strides = [1, 1]} : vector<128x64xf32> to vector<128x8xf32>
    %76 = vector.shape_cast %75 : vector<128x8xf32> to vector<2x64x8xf32>
    %77 = arith.truncf %76 : vector<2x64x8xf32> to vector<2x64x8xbf16>
    %78 = vector.extract_strided_slice %46 {offsets = [0, 40], sizes = [128, 8], strides = [1, 1]} : vector<128x64xf32> to vector<128x8xf32>
    %79 = vector.shape_cast %78 : vector<128x8xf32> to vector<2x64x8xf32>
    %80 = arith.truncf %79 : vector<2x64x8xf32> to vector<2x64x8xbf16>
    "tpu.trace_start"() <{level = 10 : i32, message = "bpd,bqd->bpq"}> : () -> ()
    %cst_35 = arith.constant dense<0.000000e+00> : vector<2x64x64xf32>
    %81 = tpu.matmul %74, %77, %cst_35 {dimension_numbers = #tpu.dot_dimension_numbers<[2], [2], [1], [1], [0, 0, 0, 1, 1, 1], [0], [0]>} : vector<2x64x8xbf16>, vector<2x64x8xbf16>, vector<2x64x64xf32> -> vector<2x64x64xf32>
    "tpu.trace_stop"() : () -> ()
    %cst_36 = arith.constant 0.353553385 : f32
    %82 = vector.broadcast %cst_36 : f32 to vector<2x64x64xf32>
    %83 = arith.mulf %81, %82 : vector<2x64x64xf32>
    %cst_37 = arith.constant dense<0xFF800000> : vector<2x64xf32>
    %84 = vector.multi_reduction <maximumf>, %83, %cst_37 [2] : vector<2x64x64xf32> to vector<2x64xf32>
    %85 = vector.shape_cast %84 : vector<2x64xf32> to vector<2x64x1xf32>
    %86 = vector.broadcast %85 : vector<2x64x1xf32> to vector<2x64x64xf32>
    %87 = arith.subf %83, %86 : vector<2x64x64xf32>
    %88 = math.exp %87 : vector<2x64x64xf32>
    %cst_38 = arith.constant dense<0.000000e+00> : vector<2x64xf32>
    %89 = vector.multi_reduction <add>, %88, %cst_38 [2] : vector<2x64x64xf32> to vector<2x64xf32>
    %90 = vector.shape_cast %89 : vector<2x64xf32> to vector<2x64x1xf32>
    %91 = tpu.reciprocal %90 {approx = true} : vector<2x64x1xf32> -> vector<2x64x1xf32>
    %92 = vector.broadcast %91 : vector<2x64x1xf32> to vector<2x64x64xf32>
    %93 = arith.mulf %88, %92 : vector<2x64x64xf32>
    %94 = arith.truncf %93 : vector<2x64x64xf32> to vector<2x64x64xbf16>
    "tpu.trace_start"() <{level = 10 : i32, message = "bpq,bqd->bpd"}> : () -> ()
    %cst_39 = arith.constant dense<0.000000e+00> : vector<2x64x8xf32>
    %95 = tpu.matmul %94, %80, %cst_39 {dimension_numbers = #tpu.dot_dimension_numbers<[2], [1], [1], [2], [0, 0, 0, 1, 1, 2], [0], [0]>} : vector<2x64x64xbf16>, vector<2x64x8xbf16>, vector<2x64x8xf32> -> vector<2x64x8xf32>
    "tpu.trace_stop"() : () -> ()
    %c0_40 = arith.constant 0 : index
    %c0_41 = arith.constant 0 : index
    %c8 = arith.constant 8 : index
    %96 = vector.load %arg19[%c0_40, %c0_41, %c8] : memref<2x64x32xf32, #tpu.memory_space<vmem>>, vector<2x64x8xf32>
    tpu.vector_store %arg19[%c0_40, %c0_41, %c8], %95 {strides = array<i32>} : memref<2x64x32xf32, #tpu.memory_space<vmem>>, vector<2x64x8xf32>,
    %97 = vector.extract_strided_slice %38 {offsets = [0, 16], sizes = [128, 8], strides = [1, 1]} : vector<128x32xf32> to vector<128x8xf32>
    %98 = vector.shape_cast %97 : vector<128x8xf32> to vector<2x64x8xf32>
    %99 = arith.truncf %98 : vector<2x64x8xf32> to vector<2x64x8xbf16>
    %100 = vector.extract_strided_slice %46 {offsets = [0, 16], sizes = [128, 8], strides = [1, 1]} : vector<128x64xf32> to vector<128x8xf32>
    %101 = vector.shape_cast %100 : vector<128x8xf32> to vector<2x64x8xf32>
    %102 = arith.truncf %101 : vector<2x64x8xf32> to vector<2x64x8xbf16>
    %103 = vector.extract_strided_slice %46 {offsets = [0, 48], sizes = [128, 8], strides = [1, 1]} : vector<128x64xf32> to vector<128x8xf32>
    %104 = vector.shape_cast %103 : vector<128x8xf32> to vector<2x64x8xf32>
    %105 = arith.truncf %104 : vector<2x64x8xf32> to vector<2x64x8xbf16>
    "tpu.trace_start"() <{level = 10 : i32, message = "bpd,bqd->bpq"}> : () -> ()
    %cst_42 = arith.constant dense<0.000000e+00> : vector<2x64x64xf32>
    %106 = tpu.matmul %99, %102, %cst_42 {dimension_numbers = #tpu.dot_dimension_numbers<[2], [2], [1], [1], [0, 0, 0, 1, 1, 1], [0], [0]>} : vector<2x64x8xbf16>, vector<2x64x8xbf16>, vector<2x64x64xf32> -> vector<2x64x64xf32>
    "tpu.trace_stop"() : () -> ()
    %cst_43 = arith.constant 0.353553385 : f32
    %107 = vector.broadcast %cst_43 : f32 to vector<2x64x64xf32>
    %108 = arith.mulf %106, %107 : vector<2x64x64xf32>
    %cst_44 = arith.constant dense<0xFF800000> : vector<2x64xf32>
    %109 = vector.multi_reduction <maximumf>, %108, %cst_44 [2] : vector<2x64x64xf32> to vector<2x64xf32>
    %110 = vector.shape_cast %109 : vector<2x64xf32> to vector<2x64x1xf32>
    %111 = vector.broadcast %110 : vector<2x64x1xf32> to vector<2x64x64xf32>
    %112 = arith.subf %108, %111 : vector<2x64x64xf32>
    %113 = math.exp %112 : vector<2x64x64xf32>
    %cst_45 = arith.constant dense<0.000000e+00> : vector<2x64xf32>
    %114 = vector.multi_reduction <add>, %113, %cst_45 [2] : vector<2x64x64xf32> to vector<2x64xf32>
    %115 = vector.shape_cast %114 : vector<2x64xf32> to vector<2x64x1xf32>
    %116 = tpu.reciprocal %115 {approx = true} : vector<2x64x1xf32> -> vector<2x64x1xf32>
    %117 = vector.broadcast %116 : vector<2x64x1xf32> to vector<2x64x64xf32>
    %118 = arith.mulf %113, %117 : vector<2x64x64xf32>
    %119 = arith.truncf %118 : vector<2x64x64xf32> to vector<2x64x64xbf16>
    "tpu.trace_start"() <{level = 10 : i32, message = "bpq,bqd->bpd"}> : () -> ()
    %cst_46 = arith.constant dense<0.000000e+00> : vector<2x64x8xf32>
    %120 = tpu.matmul %119, %105, %cst_46 {dimension_numbers = #tpu.dot_dimension_numbers<[2], [1], [1], [2], [0, 0, 0, 1, 1, 2], [0], [0]>} : vector<2x64x64xbf16>, vector<2x64x8xbf16>, vector<2x64x8xf32> -> vector<2x64x8xf32>
    "tpu.trace_stop"() : () -> ()
    %c0_47 = arith.constant 0 : index
    %c0_48 = arith.constant 0 : index
    %c16 = arith.constant 16 : index
    %121 = vector.load %arg19[%c0_47, %c0_48, %c16] : memref<2x64x32xf32, #tpu.memory_space<vmem>>, vector<2x64x8xf32>
    tpu.vector_store %arg19[%c0_47, %c0_48, %c16], %120 {strides = array<i32>} : memref<2x64x32xf32, #tpu.memory_space<vmem>>, vector<2x64x8xf32>,
    %122 = vector.extract_strided_slice %38 {offsets = [0, 24], sizes = [128, 8], strides = [1, 1]} : vector<128x32xf32> to vector<128x8xf32>
    %123 = vector.shape_cast %122 : vector<128x8xf32> to vector<2x64x8xf32>
    %124 = arith.truncf %123 : vector<2x64x8xf32> to vector<2x64x8xbf16>
    %125 = vector.extract_strided_slice %46 {offsets = [0, 24], sizes = [128, 8], strides = [1, 1]} : vector<128x64xf32> to vector<128x8xf32>
    %126 = vector.shape_cast %125 : vector<128x8xf32> to vector<2x64x8xf32>
    %127 = arith.truncf %126 : vector<2x64x8xf32> to vector<2x64x8xbf16>
    %128 = vector.extract_strided_slice %46 {offsets = [0, 56], sizes = [128, 8], strides = [1, 1]} : vector<128x64xf32> to vector<128x8xf32>
    %129 = vector.shape_cast %128 : vector<128x8xf32> to vector<2x64x8xf32>
    %130 = arith.truncf %129 : vector<2x64x8xf32> to vector<2x64x8xbf16>
    "tpu.trace_start"() <{level = 10 : i32, message = "bpd,bqd->bpq"}> : () -> ()
    %cst_49 = arith.constant dense<0.000000e+00> : vector<2x64x64xf32>
    %131 = tpu.matmul %124, %127, %cst_49 {dimension_numbers = #tpu.dot_dimension_numbers<[2], [2], [1], [1], [0, 0, 0, 1, 1, 1], [0], [0]>} : vector<2x64x8xbf16>, vector<2x64x8xbf16>, vector<2x64x64xf32> -> vector<2x64x64xf32>
    "tpu.trace_stop"() : () -> ()
    %cst_50 = arith.constant 0.353553385 : f32
    %132 = vector.broadcast %cst_50 : f32 to vector<2x64x64xf32>
    %133 = arith.mulf %131, %132 : vector<2x64x64xf32>
    %cst_51 = arith.constant dense<0xFF800000> : vector<2x64xf32>
    %134 = vector.multi_reduction <maximumf>, %133, %cst_51 [2] : vector<2x64x64xf32> to vector<2x64xf32>
    %135 = vector.shape_cast %134 : vector<2x64xf32> to vector<2x64x1xf32>
    %136 = vector.broadcast %135 : vector<2x64x1xf32> to vector<2x64x64xf32>
    %137 = arith.subf %133, %136 : vector<2x64x64xf32>
    %138 = math.exp %137 : vector<2x64x64xf32>
    %cst_52 = arith.constant dense<0.000000e+00> : vector<2x64xf32>
    %139 = vector.multi_reduction <add>, %138, %cst_52 [2] : vector<2x64x64xf32> to vector<2x64xf32>
    %140 = vector.shape_cast %139 : vector<2x64xf32> to vector<2x64x1xf32>
    %141 = tpu.reciprocal %140 {approx = true} : vector<2x64x1xf32> -> vector<2x64x1xf32>
    %142 = vector.broadcast %141 : vector<2x64x1xf32> to vector<2x64x64xf32>
    %143 = arith.mulf %138, %142 : vector<2x64x64xf32>
    %144 = arith.truncf %143 : vector<2x64x64xf32> to vector<2x64x64xbf16>
    "tpu.trace_start"() <{level = 10 : i32, message = "bpq,bqd->bpd"}> : () -> ()
    %cst_53 = arith.constant dense<0.000000e+00> : vector<2x64x8xf32>
    %145 = tpu.matmul %144, %130, %cst_53 {dimension_numbers = #tpu.dot_dimension_numbers<[2], [1], [1], [2], [0, 0, 0, 1, 1, 2], [0], [0]>} : vector<2x64x64xbf16>, vector<2x64x8xbf16>, vector<2x64x8xf32> -> vector<2x64x8xf32>
    "tpu.trace_stop"() : () -> ()
    %c0_54 = arith.constant 0 : index
    %c0_55 = arith.constant 0 : index
    %c24 = arith.constant 24 : index
    %146 = vector.load %arg19[%c0_54, %c0_55, %c24] : memref<2x64x32xf32, #tpu.memory_space<vmem>>, vector<2x64x8xf32>
    tpu.vector_store %arg19[%c0_54, %c0_55, %c24], %145 {strides = array<i32>} : memref<2x64x32xf32, #tpu.memory_space<vmem>>, vector<2x64x8xf32>,
    %c0_56 = arith.constant 0 : index
    %c0_57 = arith.constant 0 : index
    %c0_58 = arith.constant 0 : index
    %147 = vector.load %arg19[%c0_56, %c0_57, %c0_58] : memref<2x64x32xf32, #tpu.memory_space<vmem>>, vector<2x64x32xf32>
    %148 = vector.shape_cast %147 : vector<2x64x32xf32> to vector<128x32xf32>
    %149 = arith.truncf %148 : vector<128x32xf32> to vector<128x32xbf16>
    %c0_59 = arith.constant 0 : index
    %c0_60 = arith.constant 0 : index
    %c0_61 = arith.constant 0 : index
    %150 = vector.load %arg9[%c0_59, %c0_60, %c0_61] : memref<1x32x32xbf16, #tpu.memory_space<vmem>>, vector<1x32x32xbf16>
    %151 = vector.shape_cast %150 : vector<1x32x32xbf16> to vector<32x32xbf16>
    %cst_62 = arith.constant dense<0.000000e+00> : vector<128x32xf32>
    %152 = tpu.matmul %149, %151, %cst_62 {dimension_numbers = #tpu.dot_dimension_numbers<[1], [0], [0], [1], [0, 0, 1, 1], [], []>} : vector<128x32xbf16>, vector<32x32xbf16>, vector<128x32xf32> -> vector<128x32xf32>
    %c0_63 = arith.constant 0 : index
    %c0_64 = arith.constant 0 : index
    %c0_65 = arith.constant 0 : index
    %153 = vector.load %arg10[%c0_63, %c0_64, %c0_65] : memref<1x1x32xf32, #tpu.memory_space<vmem>>, vector<1x1x32xf32>
    %154 = vector.shape_cast %153 : vector<1x1x32xf32> to vector<1x32xf32>
    %155 = vector.broadcast %154 : vector<1x32xf32> to vector<128x32xf32>
    %156 = arith.addf %152, %155 : vector<128x32xf32>
    %157 = arith.index_cast %arg1 : i32 to index
    %c0_66 = arith.constant 0 : index
    %158 = memref.load %arg17[%157, %c0_66] : memref<2x2xf32, #tpu.memory_space<smem>>
    %159 = vector.broadcast %158 : f32 to vector<128x32xf32>
    %160 = arith.mulf %159, %156 : vector<128x32xf32>
    %161 = arith.addf %4, %160 : vector<128x32xf32>
    %c0_67 = arith.constant 0 : index
    %c0_68 = arith.constant 0 : index
    %c0_69 = arith.constant 0 : index
    %162 = vector.load %arg11[%c0_67, %c0_68, %c0_69] : memref<1x1x32xf32, #tpu.memory_space<vmem>>, vector<1x1x32xf32>
    %163 = vector.shape_cast %162 : vector<1x1x32xf32> to vector<1x32xf32>
    %c0_70 = arith.constant 0 : index
    %c0_71 = arith.constant 0 : index
    %c0_72 = arith.constant 0 : index
    %164 = vector.load %arg12[%c0_70, %c0_71, %c0_72] : memref<1x1x32xf32, #tpu.memory_space<vmem>>, vector<1x1x32xf32>
    %165 = vector.shape_cast %164 : vector<1x1x32xf32> to vector<1x32xf32>
    %cst_73 = arith.constant dense<0.000000e+00> : vector<128xf32>
    %166 = vector.multi_reduction <add>, %161, %cst_73 [1] : vector<128x32xf32> to vector<128xf32>
    %167 = vector.shape_cast %166 : vector<128xf32> to vector<128x1xf32>
    %cst_74 = arith.constant 3.200000e+01 : f32
    %168 = vector.broadcast %cst_74 : f32 to vector<128x1xf32>
    %169 = arith.divf %167, %168 : vector<128x1xf32>
    %170 = vector.broadcast %169 : vector<128x1xf32> to vector<128x32xf32>
    %171 = arith.subf %161, %170 : vector<128x32xf32>
    %172 = arith.mulf %171, %171 : vector<128x32xf32>
    %cst_75 = arith.constant dense<0.000000e+00> : vector<128xf32>
    %173 = vector.multi_reduction <add>, %172, %cst_75 [1] : vector<128x32xf32> to vector<128xf32>
    %174 = vector.shape_cast %173 : vector<128xf32> to vector<128x1xf32>
    %cst_76 = arith.constant 3.200000e+01 : f32
    %175 = vector.broadcast %cst_76 : f32 to vector<128x1xf32>
    %176 = arith.divf %174, %175 : vector<128x1xf32>
    %177 = vector.broadcast %169 : vector<128x1xf32> to vector<128x32xf32>
    %178 = arith.subf %161, %177 : vector<128x32xf32>
    %cst_77 = arith.constant 9.99999974E-6 : f32
    %179 = vector.broadcast %cst_77 : f32 to vector<128x1xf32>
    %180 = arith.addf %176, %179 : vector<128x1xf32>
    %181 = math.rsqrt %180 : vector<128x1xf32>
    %182 = vector.broadcast %181 : vector<128x1xf32> to vector<128x32xf32>
    %183 = arith.mulf %178, %182 : vector<128x32xf32>
    %184 = vector.broadcast %163 : vector<1x32xf32> to vector<128x32xf32>
    %185 = arith.mulf %183, %184 : vector<128x32xf32>
    %186 = vector.broadcast %165 : vector<1x32xf32> to vector<128x32xf32>
    %187 = arith.addf %185, %186 : vector<128x32xf32>
    %188 = arith.truncf %187 : vector<128x32xf32> to vector<128x32xbf16>
    %c0_78 = arith.constant 0 : index
    %c0_79 = arith.constant 0 : index
    %c0_80 = arith.constant 0 : index
    %189 = vector.load %arg13[%c0_78, %c0_79, %c0_80] : memref<1x32x128xbf16, #tpu.memory_space<vmem>>, vector<1x32x128xbf16>
    %190 = vector.shape_cast %189 : vector<1x32x128xbf16> to vector<32x128xbf16>
    %cst_81 = arith.constant dense<0.000000e+00> : vector<128x128xf32>
    %191 = tpu.matmul %188, %190, %cst_81 {dimension_numbers = #tpu.dot_dimension_numbers<[1], [0], [0], [1], [0, 0, 1, 1], [], []>} : vector<128x32xbf16>, vector<32x128xbf16>, vector<128x128xf32> -> vector<128x128xf32>
    %c0_82 = arith.constant 0 : index
    %c0_83 = arith.constant 0 : index
    %c0_84 = arith.constant 0 : index
    %192 = vector.load %arg14[%c0_82, %c0_83, %c0_84] : memref<1x1x128xf32, #tpu.memory_space<vmem>>, vector<1x1x128xf32>
    %193 = vector.shape_cast %192 : vector<1x1x128xf32> to vector<1x128xf32>
    %194 = vector.broadcast %193 : vector<1x128xf32> to vector<128x128xf32>
    %195 = arith.addf %191, %194 : vector<128x128xf32>
    %cst_85 = arith.constant 5.000000e-01 : f32
    %196 = vector.broadcast %cst_85 : f32 to vector<128x128xf32>
    %197 = arith.mulf %196, %195 : vector<128x128xf32>
    %198 = arith.mulf %195, %195 : vector<128x128xf32>
    %199 = arith.mulf %198, %195 : vector<128x128xf32>
    %cst_86 = arith.constant 4.471500e-02 : f32
    %200 = vector.broadcast %cst_86 : f32 to vector<128x128xf32>
    %201 = arith.mulf %200, %199 : vector<128x128xf32>
    %202 = arith.addf %195, %201 : vector<128x128xf32>
    %cst_87 = arith.constant 0.797884583 : f32
    %203 = vector.broadcast %cst_87 : f32 to vector<128x128xf32>
    %204 = arith.mulf %203, %202 : vector<128x128xf32>
    %205 = math.tanh %204 : vector<128x128xf32>
    %cst_88 = arith.constant 1.000000e+00 : f32
    %206 = vector.broadcast %cst_88 : f32 to vector<128x128xf32>
    %207 = arith.addf %206, %205 : vector<128x128xf32>
    %208 = arith.mulf %197, %207 : vector<128x128xf32>
    %209 = arith.truncf %208 : vector<128x128xf32> to vector<128x128xbf16>
    %c0_89 = arith.constant 0 : index
    %c0_90 = arith.constant 0 : index
    %c0_91 = arith.constant 0 : index
    %210 = vector.load %arg15[%c0_89, %c0_90, %c0_91] : memref<1x128x32xbf16, #tpu.memory_space<vmem>>, vector<1x128x32xbf16>
    %211 = vector.shape_cast %210 : vector<1x128x32xbf16> to vector<128x32xbf16>
    %cst_92 = arith.constant dense<0.000000e+00> : vector<128x32xf32>
    %212 = tpu.matmul %209, %211, %cst_92 {dimension_numbers = #tpu.dot_dimension_numbers<[1], [0], [0], [1], [0, 0, 1, 1], [], []>} : vector<128x128xbf16>, vector<128x32xbf16>, vector<128x32xf32> -> vector<128x32xf32>
    %c0_93 = arith.constant 0 : index
    %c0_94 = arith.constant 0 : index
    %c0_95 = arith.constant 0 : index
    %213 = vector.load %arg16[%c0_93, %c0_94, %c0_95] : memref<1x1x32xf32, #tpu.memory_space<vmem>>, vector<1x1x32xf32>
    %214 = vector.shape_cast %213 : vector<1x1x32xf32> to vector<1x32xf32>
    %215 = vector.broadcast %214 : vector<1x32xf32> to vector<128x32xf32>
    %216 = arith.addf %212, %215 : vector<128x32xf32>
    %cst_96 = arith.constant 5.000000e-01 : f32
    %217 = vector.broadcast %cst_96 : f32 to vector<128x32xf32>
    %218 = arith.mulf %217, %216 : vector<128x32xf32>
    %219 = arith.mulf %216, %216 : vector<128x32xf32>
    %220 = arith.mulf %219, %216 : vector<128x32xf32>
    %cst_97 = arith.constant 4.471500e-02 : f32
    %221 = vector.broadcast %cst_97 : f32 to vector<128x32xf32>
    %222 = arith.mulf %221, %220 : vector<128x32xf32>
    %223 = arith.addf %216, %222 : vector<128x32xf32>
    %cst_98 = arith.constant 0.797884583 : f32
    %224 = vector.broadcast %cst_98 : f32 to vector<128x32xf32>
    %225 = arith.mulf %224, %223 : vector<128x32xf32>
    %226 = math.tanh %225 : vector<128x32xf32>
    %cst_99 = arith.constant 1.000000e+00 : f32
    %227 = vector.broadcast %cst_99 : f32 to vector<128x32xf32>
    %228 = arith.addf %227, %226 : vector<128x32xf32>
    %229 = arith.mulf %218, %228 : vector<128x32xf32>
    %230 = arith.index_cast %arg1 : i32 to index
    %c1 = arith.constant 1 : index
    %231 = memref.load %arg17[%230, %c1] : memref<2x2xf32, #tpu.memory_space<smem>>
    %232 = vector.broadcast %231 : f32 to vector<128x32xf32>
    %233 = arith.mulf %232, %229 : vector<128x32xf32>
    %234 = arith.addf %161, %233 : vector<128x32xf32>
    %235 = vector.shape_cast %234 : vector<128x32xf32> to vector<2x64x32xf32>
    %c0_100 = arith.constant 0 : index
    %c0_101 = arith.constant 0 : index
    %c0_102 = arith.constant 0 : index
    %236 = vector.load %arg18[%c0_100, %c0_101, %c0_102] : memref<2x64x32xf32, #tpu.memory_space<vmem>>, vector<2x64x32xf32>
    tpu.vector_store %arg18[%c0_100, %c0_101, %c0_102], %235 {strides = array<i32>} : memref<2x64x32xf32, #tpu.memory_space<vmem>>, vector<2x64x32xf32>,
    return
  }
  func.func @transform_0(%arg0: i32, %arg1: i32) -> (i32, i32, i32) {
    %c0_i32 = arith.constant 0 : i32
    %c0_i32_0 = arith.constant 0 : i32
    %c0_i32_1 = arith.constant 0 : i32
    return %arg0, %c0_i32, %c0_i32_0 : i32, i32, i32
  }
  func.func @transform_1(%arg0: i32, %arg1: i32) -> (i32, i32, i32) {
    %c0_i32 = arith.constant 0 : i32
    %c0_i32_0 = arith.constant 0 : i32
    %c0_i32_1 = arith.constant 0 : i32
    return %arg1, %c0_i32, %c0_i32_0 : i32, i32, i32
  }
  func.func @transform_2(%arg0: i32, %arg1: i32) -> (i32, i32, i32) {
    %c0_i32 = arith.constant 0 : i32
    %c0_i32_0 = arith.constant 0 : i32
    %c0_i32_1 = arith.constant 0 : i32
    return %arg1, %c0_i32, %c0_i32_0 : i32, i32, i32
  }
  func.func @transform_3(%arg0: i32, %arg1: i32) -> (i32, i32, i32) {
    %c0_i32 = arith.constant 0 : i32
    %c0_i32_0 = arith.constant 0 : i32
    %c0_i32_1 = arith.constant 0 : i32
    return %arg1, %c0_i32, %c0_i32_0 : i32, i32, i32
  }
  func.func @transform_4(%arg0: i32, %arg1: i32) -> (i32, i32, i32) {
    %c0_i32 = arith.constant 0 : i32
    %c0_i32_0 = arith.constant 0 : i32
    %c0_i32_1 = arith.constant 0 : i32
    return %arg1, %c0_i32, %c0_i32_0 : i32, i32, i32
  }
  func.func @transform_5(%arg0: i32, %arg1: i32) -> (i32, i32, i32) {
    %c0_i32 = arith.constant 0 : i32
    %c0_i32_0 = arith.constant 0 : i32
    %c0_i32_1 = arith.constant 0 : i32
    return %arg1, %c0_i32, %c0_i32_0 : i32, i32, i32
  }
  func.func @transform_6(%arg0: i32, %arg1: i32) -> (i32, i32, i32) {
    %c0_i32 = arith.constant 0 : i32
    %c0_i32_0 = arith.constant 0 : i32
    %c0_i32_1 = arith.constant 0 : i32
    return %arg1, %c0_i32, %c0_i32_0 : i32, i32, i32
  }
  func.func @transform_7(%arg0: i32, %arg1: i32) -> (i32, i32, i32) {
    %c0_i32 = arith.constant 0 : i32
    %c0_i32_0 = arith.constant 0 : i32
    %c0_i32_1 = arith.constant 0 : i32
    return %arg1, %c0_i32, %c0_i32_0 : i32, i32, i32
  }
  func.func @transform_8(%arg0: i32, %arg1: i32) -> (i32, i32, i32) {
    %c0_i32 = arith.constant 0 : i32
    %c0_i32_0 = arith.constant 0 : i32
    %c0_i32_1 = arith.constant 0 : i32
    return %arg1, %c0_i32, %c0_i32_0 : i32, i32, i32
  }
  func.func @transform_9(%arg0: i32, %arg1: i32) -> (i32, i32, i32) {
    %c0_i32 = arith.constant 0 : i32
    %c0_i32_0 = arith.constant 0 : i32
    %c0_i32_1 = arith.constant 0 : i32
    return %arg1, %c0_i32, %c0_i32_0 : i32, i32, i32
  }
  func.func @transform_10(%arg0: i32, %arg1: i32) -> (i32, i32, i32) {
    %c0_i32 = arith.constant 0 : i32
    %c0_i32_0 = arith.constant 0 : i32
    %c0_i32_1 = arith.constant 0 : i32
    return %arg1, %c0_i32, %c0_i32_0 : i32, i32, i32
  }
  func.func @transform_11(%arg0: i32, %arg1: i32) -> (i32, i32, i32) {
    %c0_i32 = arith.constant 0 : i32
    %c0_i32_0 = arith.constant 0 : i32
    %c0_i32_1 = arith.constant 0 : i32
    return %arg1, %c0_i32, %c0_i32_0 : i32, i32, i32
  }
  func.func @transform_12(%arg0: i32, %arg1: i32) -> (i32, i32, i32) {
    %c0_i32 = arith.constant 0 : i32
    %c0_i32_0 = arith.constant 0 : i32
    %c0_i32_1 = arith.constant 0 : i32
    return %arg1, %c0_i32, %c0_i32_0 : i32, i32, i32
  }
  func.func @transform_13(%arg0: i32, %arg1: i32) -> (i32, i32, i32) {
    %c0_i32 = arith.constant 0 : i32
    %c0_i32_0 = arith.constant 0 : i32
    %c0_i32_1 = arith.constant 0 : i32
    return %arg1, %c0_i32, %c0_i32_0 : i32, i32, i32
  }
  func.func @transform_14(%arg0: i32, %arg1: i32) -> (i32, i32, i32) {
    %c0_i32 = arith.constant 0 : i32
    %c0_i32_0 = arith.constant 0 : i32
    %c0_i32_1 = arith.constant 0 : i32
    return %arg1, %c0_i32, %c0_i32_0 : i32, i32, i32
  }
  func.func @transform_15(%arg0: i32, %arg1: i32) -> (i32, i32) {
    %c0_i32 = arith.constant 0 : i32
    %c0_i32_0 = arith.constant 0 : i32
    %c0_i32_1 = arith.constant 0 : i32
    return %c0_i32, %c0_i32_0 : i32, i32
  }
  func.func @transform_16(%arg0: i32, %arg1: i32) -> (i32, i32, i32) {
    %c0_i32 = arith.constant 0 : i32
    %c0_i32_0 = arith.constant 0 : i32
    %c0_i32_1 = arith.constant 0 : i32
    return %arg0, %c0_i32, %c0_i32_0 : i32, i32, i32
  }
}

</mosaic_0001>

<bundles_post_ra>
// kernel: encoder_forward.2
= control target key start
LH: loop header
LB: loop body
LE: loop exit
PB: predicated region body
PF: predicated region fallthrough
CT: control target
= control target key end

     0   :  { %vm110_vm0 = vcmask 523264   ;;  %vm376_vm1 = vcmask 261120   ;;  %s749_s1 = inlined_call_operand.vmem [shape: bf16[64,32], index: 1, kind: input, shape index: {}]   ;;  %s750_s0 = inlined_call_operand.vmem [shape: bf16[128,64], index: 0, kind: input, shape index: {}]   ;;  %s751_s2 = inlined_call_operand.vmem [shape: f32[1,32], index: 2, kind: input, shape index: {}]   ;;  %s752_s3 = inlined_call_operand.vmem [shape: f32[128,32], index: 3, kind: output, shape index: {}]  }
   0x1   :  { %v462_v0 = vld [vmem:[%s749_s1] sm:$0xff]   ;;  %v463_v1 = vld [vmem:[%s749_s1 + $0x8] sm:$0xff]   ;;  %v464_v2 = vld [vmem:[%s749_s1 + $0x10] sm:$0xff]  }
   0x2   :  { %430 = vmatprep.subr.bf16.mxu0 %v462_v0  ;;  %454 = vmatprep.subr.bf16.mxu1 %v462_v0  ;;  %v466_v3 = vld [vmem:[%s750_s0] sm:$0xff]   ;;  %v465_v5 = vld [vmem:[%s749_s1 + $0x18] sm:$0xff]   ;;  %v468_v6 = vld [vmem:[%s750_s0 + $0x8] sm:$0xff]  }
   0x3   :  { %431 = vmatpush3.bf16.msra.mxu0 %v462_v0  ;;  %458 = vmatpush3.bf16.msra.mxu1 %v462_v0  ;;  %v467_v4 = vld [vmem:[%s750_s0 + $0x20] sm:$0xff]   ;;  %v469_v7 = vld [vmem:[%s750_s0 + $0x28] sm:$0xff]   ;;  %v470_v8 = vld [vmem:[%s750_s0 + $0x10] sm:$0xff]  }
   0x4   :  { %432 = vmatprep.subr.bf16.mxu0 %v463_v1  ;;  %455 = vmatprep.subr.bf16.mxu1 %v463_v1  ;;  %v471_v9 = vld [vmem:[%s750_s0 + $0x30] sm:$0xff]   ;;  %v472_v10 = vld [vmem:[%s750_s0 + $0x18] sm:$0xff]   ;;  %v573_v12 = vld [vmem:[%s751_s2] ss:$0 sm:$0xff] }
   0x5   :  { %438 = vmatprep.mubr.msk.bf16.mxu0 %vm110_vm0, %v466_v3  ;;  %446 = vmatprep.mubr.msk.bf16.mxu1 %vm110_vm0, %v467_v4  ;;  %v473_v11 = vld [vmem:[%s750_s0 + $0x38] sm:$0xff]  }
   0x7   :  { %433 = vmatpush3.bf16.msra.mxu0 %v463_v1  ;;  %459 = vmatpush3.bf16.msra.mxu1 %v463_v1 }
   0x8   :  { %434 = vmatprep.subr.bf16.mxu0 %v464_v2  ;;  %456 = vmatprep.subr.bf16.mxu1 %v464_v2 }
   0xb   :  { %435 = vmatpush3.bf16.msra.mxu0 %v464_v2  ;;  %460 = vmatpush3.bf16.msra.mxu1 %v464_v2 }
   0xc   :  { %436 = vmatprep.subr.bf16.mxu0 %v465_v5  ;;  %457 = vmatprep.subr.bf16.mxu1 %v465_v5 }
   0xf   :  { %437 = vmatpush3.bf16.msra.mxu0 %v465_v5  ;;  %461 = vmatpush3.bf16.msra.mxu1 %v465_v5 }
  0x12   :  { %439 = vmatmul.mubr.msk.bf16.vlgmr.msra.gmra.mrb[0].mxu0 %vm110_vm0, %v468_v6  ;;  %447 = vmatmul.mubr.msk.bf16.vlgmr.msra.gmra.mrb[0].mxu1 %vm110_vm0, %v469_v7 }
  0x13   :  { %442 = vmatprep.mubr.msk.bf16.mxu0 %vm110_vm0, %v470_v8  ;;  %450 = vmatprep.mubr.msk.bf16.mxu1 %vm110_vm0, %v471_v9 }
  0x1a   :  { %443 = vmatmul.mubr.msk.bf16.gmra.mrb[4].mxu0 %vm110_vm0, %v472_v10  ;;  %451 = vmatmul.mubr.msk.bf16.gmra.mrb[4].mxu1 %vm110_vm0, %v473_v11 }
  0xe5   :  { %v440_v13 = vpop.f32.mrb[0].mxu0  ;;  %v448_v14 = vpop.f32.mrb[0].mxu1 }
  0xe6   :  { %v178_v15 = vadd.f32 %v440_v13, %v573_v12  ;;  %v210_v16 = vadd.f32 %v448_v14, %v573_v12  ;;  %v169_v17 = vpop.f32.mrb[1].mxu0  ;;  %v201_v18 = vpop.f32.mrb[1].mxu1 }
  0xe7   :  { %v578_v19 = vadd.f32 %v573_v12, %v169_v17  ;;  %v581_v20 = vadd.f32 %v573_v12, %v201_v18  ;;  %v441_v21 = vpop.f32.mrb[2].mxu0  ;;  %v449_v22 = vpop.f32.mrb[2].mxu1 }
  0xe8   :  { %v250_v23 = vmul.f32 %v178_v15, %v178_v15  ;;  %v258_v24 = vmul.f32 %v210_v16, %v210_v16  ;;  %v172_v25 = vpop.f32.mrb[3].mxu0  ;;  %v204_v26 = vpop.f32.mrb[3].mxu1  ;;  %v588_v31 = vadd.f32 %v441_v21, %v573_v12  ;;  %v591_v32 = vadd.f32 %v449_v22, %v573_v12 }
  0xe9   :  { %v248_v27 = vmul.f32 %v578_v19, %v578_v19  ;;  %v256_v28 = vmul.f32 %v581_v20, %v581_v20  ;;  %v596_v35 = vadd.f32 %v573_v12, %v172_v25  ;;  %v601_v39 = vadd.f32 %v573_v12, %v204_v26 }
  0xea   :  { %v266_v29 = vmul.f32 %v250_v23, %v178_v15  ;;  %v274_v30 = vmul.f32 %v258_v24, %v210_v16  ;;  %v251_v38 = vmul.f32 %v588_v31, %v588_v31  ;;  %v259_v42 = vmul.f32 %v591_v32, %v591_v32 }
  0xeb   :  { %v264_v33 = vmul.f32 %v248_v27, %v578_v19  ;;  %v272_v34 = vmul.f32 %v256_v28, %v581_v20  ;;  %v249_v52 = vmul.f32 %v596_v35, %v596_v35  ;;  %v257_v58 = vmul.f32 %v601_v39, %v601_v39 }
  0xec   :  { %v282_v36 = vmul.f32 0.044715, %v266_v29  ;;  %v290_v37 = vmul.f32 0.044715, %v274_v30  ;;  %v267_v46 = vmul.f32 %v251_v38, %v588_v31  ;;  %v275_v51 = vmul.f32 %v259_v42, %v591_v32 }
  0xed   :  { %v280_v40 = vmul.f32 0.044715, %v264_v33  ;;  %v288_v41 = vmul.f32 0.044715, %v272_v34  ;;  %v444_v43 = vpop.f32.mrb[4].mxu0  ;;  %v452_v47 = vpop.f32.mrb[4].mxu1  ;;  %v265_v62 = vmul.f32 %v249_v52, %v596_v35  ;;  %v273_v1 = vmul.f32 %v257_v58, %v601_v39 }
  0xee   :  { %v298_v44 = vadd.f32 %v282_v36, %v178_v15  ;;  %v306_v45 = vadd.f32 %v290_v37, %v210_v16  ;;  %v185_v48 = vpop.f32.mrb[5].mxu0  ;;  %v217_v53 = vpop.f32.mrb[5].mxu1  ;;  %v283_v57 = vmul.f32 0.044715, %v267_v46  ;;  %v291_v61 = vmul.f32 0.044715, %v275_v51 }
  0xef   :  { %v296_v49 = vadd.f32 %v280_v40, %v578_v19  ;;  %v304_v50 = vadd.f32 %v288_v41, %v581_v20  ;;  %v445_v54 = vpop.f32.mrb[6].mxu0  ;;  %v234_v63 = vmul.f32 0.5, %v178_v15  ;;  %v453_v2 = vpop.f32.mrb[6].mxu1  ;;  %v281_v5 = vmul.f32 0.044715, %v265_v62 }
  0xf0   :  { %v314_v55 = vmul.f32 0.7978846, %v298_v44  ;;  %v322_v56 = vmul.f32 0.7978846, %v306_v45  ;;  %v299_v0 = vadd.f32 %v283_v57, %v588_v31  ;;  %v188_v3 = vpop.f32.mrb[7].mxu0  ;;  %v307_v4 = vadd.f32 %v291_v61, %v591_v32  ;;  %v620_v7 = vpop.f32.mrb[7].mxu1 }
  0xf1   :  { %v312_v59 = vmul.f32 0.7978846, %v296_v49  ;;  %v320_v60 = vmul.f32 0.7978846, %v304_v50  ;;  %v618_v6 = vadd.f32 %v444_v43, %v573_v12  ;;  %v289_v9 = vmul.f32 0.044715, %v273_v1 }
  0xf2   :  { %474 = vtanh.f32 %v314_v55  ;;  %v315_v8 = vmul.f32 0.7978846, %v299_v0  ;;  %v623_v10 = vadd.f32 %v452_v47, %v573_v12  ;;  %v242_v11 = vmul.f32 0.5, %v210_v16 }
  0xf3   :  { %476 = vtanh.f32 %v322_v56  ;;  %v323_v13 = vmul.f32 0.7978846, %v307_v4  ;;  %v297_v14 = vadd.f32 %v281_v5, %v596_v35  ;;  %v232_v15 = vmul.f32 0.5, %v578_v19 }
  0xf4   :  { %478 = vtanh.f32 %v312_v59  ;;  %v305_v17 = vadd.f32 %v289_v9, %v601_v39  ;;  %v254_v18 = vmul.f32 %v618_v6, %v618_v6  ;;  %v262_v22 = vmul.f32 %v623_v10, %v623_v10 }
  0xf5   :  { %480 = vtanh.f32 %v320_v60  ;;  %v313_v21 = vmul.f32 0.7978846, %v297_v14  ;;  %v633_v16 = vadd.f32 %v573_v12, %v185_v48  ;;  %v637_v25 = vadd.f32 %v573_v12, %v217_v53 }
  0xf6   :  { %482 = vtanh.f32 %v315_v8  ;;  %v321_v23 = vmul.f32 0.7978846, %v305_v17  ;;  %v270_v24 = vmul.f32 %v254_v18, %v618_v6  ;;  %v640_v19 = vadd.f32 %v445_v54, %v573_v12 }
  0xf7   :  { %484 = vtanh.f32 %v323_v13  ;;  %v240_v26 = vmul.f32 0.5, %v581_v20  ;;  %v278_v27 = vmul.f32 %v262_v22, %v623_v10  ;;  %v252_v28 = vmul.f32 %v633_v16, %v633_v16 }
  0xf8   :  { %486 = vtanh.f32 %v313_v21  ;;  %v235_v29 = vmul.f32 0.5, %v588_v31  ;;  %v286_v30 = vmul.f32 0.044715, %v270_v24  ;;  %v260_v33 = vmul.f32 %v637_v25, %v637_v25 }
  0xf9   :  { %488 = vtanh.f32 %v321_v23  ;;  %v243_v34 = vmul.f32 0.5, %v591_v32  ;;  %v294_v36 = vmul.f32 0.044715, %v278_v27  ;;  %v268_v37 = vmul.f32 %v252_v28, %v633_v16 }
  0xfa   :  { %v255_v20 = vmul.f32 %v640_v19, %v640_v19  ;;  %v233_v40 = vmul.f32 0.5, %v596_v35  ;;  %v302_v41 = vadd.f32 %v286_v30, %v618_v6  ;;  %v276_v31 = vmul.f32 %v260_v33, %v637_v25 }
  0xfb   :  { %v657_v42 = vadd.f32 %v453_v2, %v573_v12  ;;  %v310_v32 = vadd.f32 %v294_v36, %v623_v10  ;;  %v284_v45 = vmul.f32 0.044715, %v268_v37  ;;  %v661_v46 = vadd.f32 %v573_v12, %v188_v3 }
  0xfc   :  { %v475_v38 = vpop.eup %474  ;;  %v318_v49 = vmul.f32 0.7978846, %v302_v41  ;;  %v292_v50 = vmul.f32 0.044715, %v276_v31  ;;  %v271_v35 = vmul.f32 %v255_v20, %v640_v19  ;;  %v241_v8 = vmul.f32 0.5, %v601_v39 }
  0xfd   :  { %v477_v43 = vpop.eup %476  ;;  %v346_v44 = vadd.f32 1.0, %v475_v38  ;;  %v326_v54 = vmul.f32 0.7978846, %v310_v32  ;;  %v300_v55 = vadd.f32 %v284_v45, %v633_v16  ;;  %v263_v9 = vmul.f32 %v657_v42, %v657_v42 }
  0xfe   :  { %v479_v47 = vpop.eup %478  ;;  %v354_v48 = vadd.f32 1.0, %v477_v43  ;;  %490 = vtanh.f32 %v318_v49  ;;  %v308_v59 = vadd.f32 %v292_v50, %v637_v25  ;;  %v287_v3 = vmul.f32 0.044715, %v271_v35 }
  0xff   :  { %v481_v51 = vpop.eup %480  ;;  %v362_v52 = vmul.f32 %v346_v44, %v234_v63  ;;  %v344_v53 = vadd.f32 1.0, %v479_v47  ;;  %492 = vtanh.f32 %v326_v54  ;;  %v316_v63 = vmul.f32 0.7978846, %v300_v55 }
 0x100   :  { %v483_v56 = vpop.eup %482  ;;  %v370_v57 = vmul.f32 %v354_v48, %v242_v11  ;;  %v352_v58 = vadd.f32 1.0, %v481_v51  ;;  %v324_v2 = vmul.f32 0.7978846, %v308_v59  ;;  %v279_v17 = vmul.f32 %v263_v9, %v657_v42 }
 0x101   :  { %v485_v60 = vpop.eup %484  ;;  %379 = vst.msk [vmem:[%s752_s3 + $0x10] sm:$0xff] %vm376_vm1, %v362_v52  ;;  %v360_v61 = vmul.f32 %v344_v53, %v232_v15  ;;  %v347_v62 = vadd.f32 1.0, %v483_v56  ;;  %494 = vtanh.f32 %v316_v63  ;;  %v303_v15 = vadd.f32 %v287_v3, %v640_v19 }
 0x102   :  { %387 = vst.msk [vmem:[%s752_s3 + $0x50] sm:$0xff] %vm376_vm1, %v370_v57  ;;  %v368_v0 = vmul.f32 %v352_v58, %v240_v26  ;;  %v355_v1 = vadd.f32 1.0, %v485_v60  ;;  %v487_v4 = vpop.eup %486  ;;  %496 = vtanh.f32 %v324_v2  ;;  %v253_v18 = vmul.f32 %v661_v46, %v661_v46 }
 0x103   :  { %377 = vst.msk [vmem:[%s752_s3] sm:$0xff] %vm376_vm1, %v360_v61  ;;  %v363_v5 = vmul.f32 %v347_v62, %v235_v29  ;;  %v489_v11 = vpop.eup %488  ;;  %v345_v14 = vadd.f32 1.0, %v487_v4  ;;  %v221_v21 = vadd.f32 %v573_v12, %v620_v7  ;;  %v319_v23 = vmul.f32 0.7978846, %v303_v15 }
 0x104   :  { %385 = vst.msk [vmem:[%s752_s3 + $0x40] sm:$0xff] %vm376_vm1, %v368_v0  ;;  %v371_v13 = vmul.f32 %v355_v1, %v243_v34  ;;  %v353_v39 = vadd.f32 1.0, %v489_v11  ;;  %v295_v26 = vmul.f32 0.044715, %v279_v17  ;;  %v269_v27 = vmul.f32 %v253_v18, %v661_v46 }
 0x105   :  { %380 = vst.msk [vmem:[%s752_s3 + $0x18] sm:$0xff] %vm376_vm1, %v363_v5  ;;  %v361_v22 = vmul.f32 %v345_v14, %v233_v40  ;;  %498 = vtanh.f32 %v319_v23  ;;  %v261_v28 = vmul.f32 %v221_v21, %v221_v21  ;;  %v238_v34 = vmul.f32 0.5, %v618_v6 }
 0x106   :  { %388 = vst.msk [vmem:[%s752_s3 + $0x58] sm:$0xff] %vm376_vm1, %v371_v13  ;;  %v369_v24 = vmul.f32 %v353_v39, %v241_v8  ;;  %v311_v12 = vadd.f32 %v295_v26, %v657_v42  ;;  %v285_v7 = vmul.f32 0.044715, %v269_v27  ;;  %v246_v38 = vmul.f32 0.5, %v623_v10 }
 0x107   :  { %378 = vst.msk [vmem:[%s752_s3 + $0x8] sm:$0xff] %vm376_vm1, %v361_v22  ;;  %v277_v30 = vmul.f32 %v261_v28, %v221_v21  ;;  %v236_v47 = vmul.f32 0.5, %v633_v16  ;;  %v244_v6 = vmul.f32 0.5, %v637_v25  ;;  %v239_v25 = vmul.f32 0.5, %v640_v19 }
 0x108   :  { %386 = vst.msk [vmem:[%s752_s3 + $0x48] sm:$0xff] %vm376_vm1, %v369_v24  ;;  %v491_v29 = vpop.eup %490  ;;  %v327_v37 = vmul.f32 0.7978846, %v311_v12  ;;  %v301_v20 = vadd.f32 %v285_v7, %v661_v46  ;;  %v247_v55 = vmul.f32 0.5, %v657_v42  ;;  %v237_v59 = vmul.f32 0.5, %v661_v46 }
 0x109   :  { %v493_v33 = vpop.eup %492  ;;  %v350_v36 = vadd.f32 1.0, %v491_v29  ;;  %v293_v41 = vmul.f32 0.044715, %v277_v30  ;;  %v245_v62 = vmul.f32 0.5, %v221_v21 }
 0x10a   :  { %v358_v40 = vadd.f32 1.0, %v493_v33  ;;  %500 = vtanh.f32 %v327_v37  ;;  %v317_v44 = vmul.f32 0.7978846, %v301_v20 }
 0x10b   :  { %v495_v31 = vpop.eup %494  ;;  %v366_v43 = vmul.f32 %v350_v36, %v238_v34  ;;  %v309_v49 = vadd.f32 %v293_v41, %v221_v21 }
 0x10c   :  { %v497_v32 = vpop.eup %496  ;;  %v374_v45 = vmul.f32 %v358_v40, %v246_v38  ;;  %v348_v48 = vadd.f32 1.0, %v495_v31  ;;  %502 = vtanh.f32 %v317_v44 }
 0x10d   :  { %383 = vst.msk [vmem:[%s752_s3 + $0x30] sm:$0xff] %vm376_vm1, %v366_v43  ;;  %v356_v10 = vadd.f32 1.0, %v497_v32  ;;  %v325_v35 = vmul.f32 0.7978846, %v309_v49 }
 0x10e   :  { %391 = vst.msk [vmem:[%s752_s3 + $0x70] sm:$0xff] %vm376_vm1, %v374_v45  ;;  %v364_v50 = vmul.f32 %v348_v48, %v236_v47 }
 0x10f   :  { %v372_v51 = vmul.f32 %v356_v10, %v244_v6  ;;  %v499_v16 = vpop.eup %498  ;;  %504 = vtanh.f32 %v325_v35 }
 0x110   :  { %381 = vst.msk [vmem:[%s752_s3 + $0x20] sm:$0xff] %vm376_vm1, %v364_v50  ;;  %v351_v52 = vadd.f32 1.0, %v499_v16 }
 0x111   :  { %389 = vst.msk [vmem:[%s752_s3 + $0x60] sm:$0xff] %vm376_vm1, %v372_v51 }
 0x112   :  { %v367_v53 = vmul.f32 %v351_v52, %v239_v25 }
 0x114   :  { %v501_v54 = vpop.eup %500  ;;  %384 = vst.msk [vmem:[%s752_s3 + $0x38] sm:$0xff] %vm376_vm1, %v367_v53 }
 0x115   :  { %v359_v56 = vadd.f32 1.0, %v501_v54 }
 0x116   :  { %v503_v57 = vpop.eup %502 }
 0x117   :  { %v375_v58 = vmul.f32 %v359_v56, %v247_v55  ;;  %v349_v60 = vadd.f32 1.0, %v503_v57 }
 0x119   :  { %v505_v61 = vpop.eup %504  ;;  %392 = vst.msk [vmem:[%s752_s3 + $0x78] sm:$0xff] %vm376_vm1, %v375_v58  ;;  %v365_v19 = vmul.f32 %v349_v60, %v237_v59 }
 0x11a   :  { %v357_v63 = vadd.f32 1.0, %v505_v61 }
 0x11b   :  { %382 = vst.msk [vmem:[%s752_s3 + $0x28] sm:$0xff] %vm376_vm1, %v365_v19 }
 0x11c   :  { %v373_v42 = vmul.f32 %v357_v63, %v245_v62 }
 0x11e   :  { %390 = vst.msk [vmem:[%s752_s3 + $0x68] sm:$0xff] %vm376_vm1, %v373_v42 }

// kernel: encoder_forward.3
= control target key start
LH: loop header
LB: loop body
LE: loop exit
PB: predicated region body
PF: predicated region fallthrough
CT: control target
= control target key end

     0   :  { %s9119_s0 = inlined_call_operand.vmem [shape: f32[2,64,32], index: 0, kind: input, shape index: {}]   ;;  %s9120_s1 = inlined_call_operand.vmem [shape: f32[2,1,32], index: 1, kind: input, shape index: {}]   ;;  %s9121_s2 = inlined_call_operand.vmem [shape: f32[2,1,32], index: 2, kind: input, shape index: {}]   ;;  %s9122_s3 = inlined_call_operand.vmem [shape: bf16[2,32,32], index: 3, kind: input, shape index: {}]   ;;  %s9123_s4 = inlined_call_operand.vmem [shape: f32[2,1,32], index: 4, kind: input, shape index: {}]   ;;  %s9124_s5 = inlined_call_operand.vmem [shape: bf16[2,32,64], index: 5, kind: input, shape index: {}]   ;;  %s9125_s6 = inlined_call_operand.vmem [shape: f32[2,1,64], index: 6, kind: input, shape index: {}]   ;;  %s9126_s7 = inlined_call_operand.vmem [shape: bf16[2,32,32], index: 7, kind: input, shape index: {}]   ;;  %s9127_s8 = inlined_call_operand.vmem [shape: f32[2,1,32], index: 8, kind: input, shape index: {}]   ;;  %s9128_s9 = inlined_call_operand.vmem [shape: f32[2,1,32], index: 9, kind: input, shape index: {}]   ;;  %s9129_s10 = inlined_call_operand.vmem [shape: f32[2,1,32], index: 10, kind: input, shape index: {}]   ;;  %s9130_s11 = inlined_call_operand.vmem [shape: bf16[2,32,128], index: 11, kind: input, shape index: {}]   ;;  %s9131_s12 = inlined_call_operand.vmem [shape: f32[2,1,128], index: 12, kind: input, shape index: {}]   ;;  %s9132_s13 = inlined_call_operand.vmem [shape: bf16[2,128,32], index: 13, kind: input, shape index: {}]   ;;  %s9133_s14 = inlined_call_operand.vmem [shape: f32[2,1,32], index: 14, kind: input, shape index: {}]   ;;  %s9134_s15 = inlined_call_operand.vmem [shape: f32[2,2], index: 15, kind: input, shape index: {}]   ;;  %s9135_s16 = inlined_call_operand.vmem [shape: f32[2,64,32], index: 16, kind: output, shape index: {}]  }
   0x1   :  { %9139 = sst [smem:[#allocation16_spill]] %s9119_s0 }
   0x2   :  { %9140 = sst [smem:[#allocation17_spill]] %s9120_s1 }
   0x3   :  { %9141 = sst [smem:[#allocation18_spill]] %s9121_s2 }
   0x4   :  { %9142 = sst [smem:[#allocation19_spill]] %s9122_s3 }
   0x5   :  { %9143 = sst [smem:[#allocation20_spill]] %s9123_s4 }
   0x6   :  { %9144 = sst [smem:[#allocation21_spill]] %s9124_s5 }
   0x7   :  { %9145 = sst [smem:[#allocation22_spill]] %s9126_s7 }
   0x8   :  { %9146 = sst [smem:[#allocation23_spill]] %s9134_s15 }
   0x9   :  { %21 = vsyncpa [#allocation4], 0  ;;  %s6686_s21 = smov 0   ;;  %s6688_s22 = smov 0  }
   0xa   :  { %s6690_s23 = smov 0  }
   0xb LB: > { %9147 = sst [smem:[#allocation6_spill]] %s6584_s22  ;;  %s5353_s24 = sadd.s32 4294967295, %s6588_s23   ;;  %s6588_s23 = sphi %s6690_s23, %s27_s23   ;;  %s6584_s22 = sphi %s6688_s22, %s9184_s22   ;;  %s6580_s21 = sphi %s6686_s21, %s9183_s21  }
   0xc   : > { %9148 = sst [smem:[#allocation7_spill]] %s6588_s23  ;;  %s36_s25 = sadd.s32 1, %s6584_s22 }
   0xd   : > { %p37_p0 = scmp.ge.s32.totalorder %s36_s25, 2  ;;  %p5354_p1 = scmp.ge.s32.totalorder %s6588_s23, 1 }
   0xe   : > { %p481_p2 = scmp.lt.s32.totalorder %s6588_s23, 3  ;;  %p6711_p4 = scmp.eq.s32.totalorder %s5353_s24, 0 }
   0xf   : > { %s9186_s25 = smov (%p37_p0, %s36_s25), 0  ;;  %s9152_s15 = sld [smem:[#allocation23_spill]] }
  0x10   : > { %9149 = sst [smem:[#allocation8_spill]] %s9186_s25  ;;  %p6707_p3 = pnand %p5354_p1, %p481_p2 }
  0x12   : > { %p6090_p5 = pneg %p6707_p3 }
  0x14   : > { %p6091_p6 = pnand %p6711_p4, %p6090_p5 }
  0x15   : > { %s504_s30 = sshll.u32 %s9152_s15, 4  ;;  %s505_s30 = int_to_ptr.vmem [resolvable:$true] %s504_s30 }
  0x16   : > { %s6547_s0 = scalar_lea.vmem %s505_s30, 32  ;;  %p6549_p8 = pneg %p6091_p6 }
  0x17   : > { %p6548_p7 = scmp.ne.s32.totalorder %s505_s30, %s6547_s0  ;;  %p6555_p11 = scmp.lt.s32.totalorder %s505_s30, %s505_s30 }
  0x18   : > { %p6556_p12 = scmp.lt.s32.totalorder %s6547_s0, %s6547_s0 }
  0x19   : > { %p6550_p9 = pnand %p6549_p8, %p6548_p7 }
  0x1a   : > { %p6557_p13 = por %p6556_p12, %p6555_p11 }
  0x1b   : > { %p6551_p10 = pneg %p6550_p9 }
  0x1d   : > { %p6558_p0 = pnand %p6557_p13, %p6551_p10 }
  0x1f   : > { %6561 = shalt.err (!%p6558_p0)
}
  0x20   : > { %s6590_s17 = smov [#allocation3]   ;;  %611 = sbr.rel (%p6707_p3) target bundleno = 4877 (0x130d), region = 84 }
  0x21   : > { %6093 = dma.vmem_to_smem (!%p6091_p6), %s505_s30, 32, %s6590_s17, [#allocation4]  }
  0x27   : > { %6575 = dma.done.wait (%p6711_p4), [#allocation4], 32  }
  0x28   : > { %6577 = vsyncadd (%p6711_p4), [#allocation4], 4294967264 }
  0x29   : > { %617 = sfence }
  0x2a   : > { %p723_p1 = scmp.lt.s32.totalorder %s6580_s21, 1  ;;  %s9156_s3 = sld [smem:[#allocation19_spill]] }
  0x2b   : > { %s9157_s5 = sld [smem:[#allocation21_spill]]  ;;  %s9158_s7 = sld [smem:[#allocation22_spill]] }
  0x2c   : > { %s6730_s18 = scalar_select %p723_p1, %s6580_s21, 1 }
  0x2d   : > { %p5370_p2 = scmp.ne.s32.totalorder %s6580_s21, 0 }
  0x2e   : > { %s5497_s29 = sshll.u32 %s6730_s18, 4  ;;  %s766_s26 = scalar_lea.vmem %s9131_s12, %s6730_s18  ;;  %vm803_vm0 = vcmask (!%p5370_p2), 261120  }
  0x2f   : > { %s6779_s24 = scalar_lea.vmem %s9130_s11, %s5497_s29  ;;  %s774_s22 = scalar_lea.vmem %s9133_s14, %s6730_s18 }
  0x30   : > { %s6748_s15 = scalar_lea.vmem %s9156_s3, %s5497_s29  ;;  %s755_s3 = scalar_lea.vmem %s9128_s9, %s6730_s18 }
  0x31   : > { %s6753_s23 = scalar_lea.vmem %s9157_s5, %s5497_s29  ;;  %s6762_s2 = scalar_lea.vmem %s9158_s7, %s5497_s29 }
  0x32   : > { %s758_s5 = scalar_lea.vmem %s9129_s10, %s6730_s18  ;;  %s5501_s7 = sshll.u32 %s6730_s18, 6 }
  0x33   : > { %s6789_s19 = scalar_lea.vmem %s9132_s13, %s5501_s7  ;;  %786 = sbr.rel (%p5370_p2) target bundleno = 67 (0x43), region = 92 }
  0x34   : > { %s9159_s25 = sld [smem:[#allocation16_spill]] (!%p5370_p2) }
  0x3a   : > { %v787_v0 = vld [vmem:[%s9159_s25] sm:$0xff]  ;;  %v788_v1 = vld [vmem:[%s9159_s25 + $0x8] sm:$0xff]  ;;  %v789_v2 = vld [vmem:[%s9159_s25 + $0x10] sm:$0xff] }
  0x3b   : > { %804 = vst.msk [vmem:[%s9135_s16] sm:$0xff] %vm803_vm0, %v787_v0  ;;  %805 = vst.msk [vmem:[%s9135_s16 + $0x8] sm:$0xff] %vm803_vm0, %v788_v1  ;;  %v790_v3 = vld [vmem:[%s9159_s25 + $0x18] sm:$0xff]  ;;  %v791_v4 = vld [vmem:[%s9159_s25 + $0x20] sm:$0xff] }
  0x3c   : > { %806 = vst.msk [vmem:[%s9135_s16 + $0x10] sm:$0xff] %vm803_vm0, %v789_v2  ;;  %v792_v5 = vld [vmem:[%s9159_s25 + $0x28] sm:$0xff]  ;;  %807 = vst.msk [vmem:[%s9135_s16 + $0x18] sm:$0xff] %vm803_vm0, %v790_v3  ;;  %v793_v6 = vld [vmem:[%s9159_s25 + $0x30] sm:$0xff] }
  0x3d   : > { %808 = vst.msk [vmem:[%s9135_s16 + $0x20] sm:$0xff] %vm803_vm0, %v791_v4  ;;  %809 = vst.msk [vmem:[%s9135_s16 + $0x28] sm:$0xff] %vm803_vm0, %v792_v5  ;;  %v794_v7 = vld [vmem:[%s9159_s25 + $0x38] sm:$0xff]  ;;  %v795_v8 = vld [vmem:[%s9159_s25 + $0x40] sm:$0xff] }
  0x3e   : > { %810 = vst.msk [vmem:[%s9135_s16 + $0x30] sm:$0xff] %vm803_vm0, %v793_v6  ;;  %811 = vst.msk [vmem:[%s9135_s16 + $0x38] sm:$0xff] %vm803_vm0, %v794_v7  ;;  %v796_v9 = vld [vmem:[%s9159_s25 + $0x48] sm:$0xff]  ;;  %v797_v10 = vld [vmem:[%s9159_s25 + $0x50] sm:$0xff] }
  0x3f   : > { %812 = vst.msk [vmem:[%s9135_s16 + $0x40] sm:$0xff] %vm803_vm0, %v795_v8  ;;  %v798_v11 = vld [vmem:[%s9159_s25 + $0x58] sm:$0xff]  ;;  %813 = vst.msk [vmem:[%s9135_s16 + $0x48] sm:$0xff] %vm803_vm0, %v796_v9  ;;  %v799_v12 = vld [vmem:[%s9159_s25 + $0x60] sm:$0xff] }
  0x40   : > { %814 = vst.msk [vmem:[%s9135_s16 + $0x50] sm:$0xff] %vm803_vm0, %v797_v10  ;;  %815 = vst.msk [vmem:[%s9135_s16 + $0x58] sm:$0xff] %vm803_vm0, %v798_v11  ;;  %v800_v13 = vld [vmem:[%s9159_s25 + $0x68] sm:$0xff]  ;;  %v801_v14 = vld [vmem:[%s9159_s25 + $0x70] sm:$0xff] }
  0x41   : > { %816 = vst.msk [vmem:[%s9135_s16 + $0x60] sm:$0xff] %vm803_vm0, %v799_v12  ;;  %817 = vst.msk [vmem:[%s9135_s16 + $0x68] sm:$0xff] %vm803_vm0, %v800_v13  ;;  %v802_v15 = vld [vmem:[%s9159_s25 + $0x78] sm:$0xff] }
  0x42   : > { %818 = vst.msk [vmem:[%s9135_s16 + $0x70] sm:$0xff] %vm803_vm0, %v801_v14  ;;  %819 = vst.msk [vmem:[%s9135_s16 + $0x78] sm:$0xff] %vm803_vm0, %v802_v15 }
  0x43 PF: > { %v6911_v16 = vld [vmem:[%s9135_s16] sm:$0xff]  ;;  %vm838_vm1 = vcmask 261120   ;;  %v6916_v17 = vld [vmem:[%s9135_s16 + $0x10] sm:$0xff]  ;;  %v6921_v18 = vld [vmem:[%s9135_s16 + $0x8] sm:$0xff]  ;;  %s9160_s0 = scalar_lea.vmem %s9125_s6, %s6730_s18  ;;  %vm1412_vm2 = vcmask 64512   ;;  %s6592_s17 = smov 120  }
  0x44   : > { %v839_v19 = vsel %vm838_vm1, %v6911_v16, 0.0  ;;  %v845_v20 = vsel %vm838_vm1, %v6916_v17, 0.0  ;;  %v6930_v21 = vld [vmem:[%s9135_s16 + $0x18] sm:$0xff]  ;;  %v6935_v22 = vld [vmem:[%s9135_s16 + $0x20] sm:$0xff]  ;;  %v6940_v23 = vld [vmem:[%s9135_s16 + $0x28] sm:$0xff]  ;;  %v842_v26 = vsel %vm838_vm1, %v6921_v18, 0.0  ;;  %v1244_v50 = vpack.c.bf16 %v6921_v18, %v6911_v16 }
  0x45   : > { %840 = vadd.xlane.f32.xlu0 %v839_v19  ;;  %846 = vadd.xlane.f32.xlu1 %v845_v20  ;;  %v6945_v24 = vld [vmem:[%s9135_s16 + $0x30] sm:$0xff]  ;;  %v6950_v25 = vld [vmem:[%s9135_s16 + $0x38] sm:$0xff]  ;;  %v848_v27 = vsel %vm838_vm1, %v6930_v21, 0.0  ;;  %v851_v30 = vsel %vm838_vm1, %v6935_v22, 0.0  ;;  %v854_v31 = vsel %vm838_vm1, %v6940_v23, 0.0  ;;  %v6131_v48 = vld [vmem:[%s6753_s23] sm:$0xff]   ;;  %v1245_v51 = vpack.c.bf16 %v6930_v21, %v6916_v17 }
  0x46   : > { %v6959_v28 = vld [vmem:[%s9135_s16 + $0x40] sm:$0xff]  ;;  %v6964_v29 = vld [vmem:[%s9135_s16 + $0x48] sm:$0xff]  ;;  %v857_v32 = vsel %vm838_vm1, %v6945_v24, 0.0  ;;  %v860_v33 = vsel %vm838_vm1, %v6950_v25, 0.0  ;;  %5706 = vmatprep.subr.bf16.mxu1 %v6131_v48  ;;  %5710 = vmatprep.mubr.msk.bf16.mxu1 %vm838_vm1, %v1244_v50  ;;  %v1246_v52 = vpack.c.bf16 %v6940_v23, %v6935_v22  ;;  %v1247_v53 = vpack.c.bf16 %v6950_v25, %v6945_v24  ;;  %s9161_s29 = sld [smem:[#allocation17_spill]]  ;;  %s9163_s30 = sld [smem:[#allocation18_spill]] }
  0x47   : > { %v863_v34 = vsel %vm838_vm1, %v6959_v28, 0.0  ;;  %v866_v35 = vsel %vm838_vm1, %v6964_v29, 0.0  ;;  %v6981_v36 = vld [vmem:[%s9135_s16 + $0x50] sm:$0xff]  ;;  %v6986_v37 = vld [vmem:[%s9135_s16 + $0x58] sm:$0xff]  ;;  %v6132_v49 = vld [vmem:[%s6753_s23 + $0x8] sm:$0xff]   ;;  %5707 = vmatpush3.bf16.msra.mxu1 %v6131_v48  ;;  %s9165_s20 = sld [smem:[#allocation20_spill]] }
  0x48   : > { %v869_v38 = vsel %vm838_vm1, %v6981_v36, 0.0  ;;  %v872_v39 = vsel %vm838_vm1, %v6986_v37, 0.0  ;;  %v6995_v40 = vld [vmem:[%s9135_s16 + $0x60] sm:$0xff]  ;;  %v7000_v41 = vld [vmem:[%s9135_s16 + $0x68] sm:$0xff]  ;;  %5708 = vmatprep.subr.bf16.mxu1 %v6132_v49  ;;  %vm1607_vm3 = vcmask 523264   ;;  %s6597_s28 = smov 72  }
  0x49   : > { %843 = vadd.xlane.f32.xlu0 %v842_v26  ;;  %849 = vadd.xlane.f32.xlu1 %v848_v27  ;;  %v875_v42 = vsel %vm838_vm1, %v6995_v40, 0.0  ;;  %v878_v43 = vsel %vm838_vm1, %v7000_v41, 0.0  ;;  %v7009_v44 = vld [vmem:[%s9135_s16 + $0x70] sm:$0xff]  ;;  %v7014_v45 = vld [vmem:[%s9135_s16 + $0x78] sm:$0xff]  ;;  %s6598_s27 = smov 8   ;;  %vm2654_vm4 = vcmask 130112  }
  0x4a   : > { %v881_v46 = vsel %vm838_vm1, %v7009_v44, 0.0  ;;  %v884_v47 = vsel %vm838_vm1, %v7014_v45, 0.0  ;;  %vm3323_vm5 = vcmask 195712   ;;  %vm3992_vm6 = vcmask 261312  }
  0x4b   : > { %5709 = vmatpush3.bf16.msra.mxu1 %v6132_v49 }
  0x4c   : > { %s9162_s1 = scalar_lea.vmem %s9161_s29, %s6730_s18  ;;  %s9164_s23 = scalar_lea.vmem %s9163_s30, %s6730_s18 }
  0x4d   : > { %852 = vadd.xlane.f32.xlu0 %v851_v30  ;;  %855 = vadd.xlane.f32.xlu1 %v854_v31  ;;  %s9166_s4 = scalar_lea.vmem %s9165_s20, %s6730_s18  ;;  %s6595_s29 = smov 80  }
  0x4e   : > { %5711 = vmatmul.mubr.msk.bf16.vlgmr.msra.gmra.mrb[0].mxu1 %vm838_vm1, %v1245_v51  ;;  %s6599_s30 = smov 16  }
  0x4f   : > { %5714 = vmatprep.mubr.msk.bf16.mxu1 %vm838_vm1, %v1246_v52 }
  0x51   : > { %858 = vadd.xlane.f32.xlu0 %v857_v32  ;;  %861 = vadd.xlane.f32.xlu1 %v860_v33 }
  0x55   : > { %864 = vadd.xlane.f32.xlu0 %v863_v34  ;;  %867 = vadd.xlane.f32.xlu1 %v866_v35 }
  0x56   : > { %5715 = vmatmul.mubr.msk.bf16.gmra.mrb[4].mxu1 %vm838_vm1, %v1247_v53 }
  0x59   : > { %870 = vadd.xlane.f32.xlu0 %v869_v38  ;;  %873 = vadd.xlane.f32.xlu1 %v872_v39 }
  0x5d   : > { %876 = vadd.xlane.f32.xlu0 %v875_v42  ;;  %879 = vadd.xlane.f32.xlu1 %v878_v43 }
  0x61   : > { %882 = vadd.xlane.f32.xlu0 %v881_v46  ;;  %885 = vadd.xlane.f32.xlu1 %v884_v47 }
  0xd2   : > { %v841_v54 = vpop.xlane.xlu0 %840  ;;  %v847_v55 = vpop.xlane.xlu1 %846 }
  0xd3   : > { %v888_v56 = vmul.f32 0.03125, %v841_v54  ;;  %v890_v57 = vmul.f32 0.03125, %v847_v55 }
  0xd5   : > { %v7035_v58 = vsub.f32 %v6911_v16, %v888_v56  ;;  %v7038_v59 = vsub.f32 %v6916_v17, %v890_v57 }
  0xd6   : > { %v844_v60 = vpop.xlane.xlu0 %843  ;;  %v850_v61 = vpop.xlane.xlu1 %849 }
  0xd7   : > { %v889_v62 = vmul.f32 0.03125, %v844_v60  ;;  %v891_v63 = vmul.f32 0.03125, %v850_v61  ;;  %v920_v0 = vmul.f32 %v7035_v58, %v7035_v58  ;;  %v922_v1 = vmul.f32 %v7038_v59, %v7038_v59 }
  0xd9   : > { %v7045_v2 = vsub.f32 %v6921_v18, %v889_v62  ;;  %v7048_v3 = vsub.f32 %v6930_v21, %v891_v63  ;;  %v936_v4 = vsel %vm838_vm1, %v920_v0, 0.0  ;;  %v942_v7 = vsel %vm838_vm1, %v922_v1, 0.0 }
  0xda   : > { %937 = vadd.xlane.f32.xlu0 %v936_v4  ;;  %v853_v5 = vpop.xlane.xlu0 %852  ;;  %v856_v6 = vpop.xlane.xlu1 %855  ;;  %v1248_v62 = vpack.c.bf16 %v6964_v29, %v6959_v28  ;;  %v1249_v63 = vpack.c.bf16 %v6986_v37, %v6981_v36 }
  0xdb   : > { %v892_v8 = vmul.f32 0.03125, %v853_v5  ;;  %v893_v9 = vmul.f32 0.03125, %v856_v6  ;;  %v921_v10 = vmul.f32 %v7045_v2, %v7045_v2  ;;  %v923_v11 = vmul.f32 %v7048_v3, %v7048_v3 }
  0xdc   : > { %5718 = vmatprep.mubr.msk.bf16.mxu1 %vm838_vm1, %v1248_v62 }
  0xdd   : > { %v7057_v12 = vsub.f32 %v6935_v22, %v892_v8  ;;  %v7060_v13 = vsub.f32 %v6940_v23, %v893_v9  ;;  %v939_v14 = vsel %vm838_vm1, %v921_v10, 0.0  ;;  %v945_v17 = vsel %vm838_vm1, %v923_v11, 0.0  ;;  %5719 = vmatmul.mubr.msk.bf16.gmra.mrb[8].mxu1 %vm838_vm1, %v1249_v63 }
  0xde   : > { %943 = vadd.xlane.f32.xlu0 %v942_v7  ;;  %940 = vadd.xlane.f32.xlu1 %v939_v14  ;;  %v859_v15 = vpop.xlane.xlu0 %858  ;;  %v862_v16 = vpop.xlane.xlu1 %861 }
  0xdf   : > { %v894_v18 = vmul.f32 0.03125, %v859_v15  ;;  %v895_v19 = vmul.f32 0.03125, %v862_v16  ;;  %v924_v20 = vmul.f32 %v7057_v12, %v7057_v12  ;;  %v925_v21 = vmul.f32 %v7060_v13, %v7060_v13 }
  0xe1   : > { %v7069_v22 = vsub.f32 %v6945_v24, %v894_v18  ;;  %v7072_v23 = vsub.f32 %v6950_v25, %v895_v19  ;;  %v948_v26 = vsel %vm838_vm1, %v924_v20, 0.0  ;;  %v951_v31 = vsel %vm838_vm1, %v925_v21, 0.0  ;;  %v6133_v20 = vld [vmem:[%s6748_s15] sm:$0xff]   ;;  %v6134_v21 = vld [vmem:[%s6748_s15 + $0x8] sm:$0xff]   ;;  %s6591_s15 = smov 96  }
  0xe2   : > { %946 = vadd.xlane.f32.xlu1 %v945_v17  ;;  %949 = vadd.xlane.f32.xlu0 %v948_v26  ;;  %v865_v27 = vpop.xlane.xlu0 %864  ;;  %v868_v30 = vpop.xlane.xlu1 %867  ;;  %v1250_v18 = vpack.c.bf16 %v7000_v41, %v6995_v40  ;;  %v1251_v19 = vpack.c.bf16 %v7014_v45, %v7009_v44  ;;  %v7149_v26 = vld [vmem:[%s9160_s0] ss:$0 sm:$0xff] }
  0xe3   : > { %v896_v32 = vmul.f32 0.03125, %v865_v27  ;;  %v897_v33 = vmul.f32 0.03125, %v868_v30  ;;  %v926_v34 = vmul.f32 %v7069_v22, %v7069_v22  ;;  %v927_v24 = vmul.f32 %v7072_v23, %v7072_v23  ;;  %5686 = vmatprep.subr.bf16.mxu0 %v6133_v20 }
  0xe4   : > { %5722 = vmatprep.mubr.msk.bf16.mxu1 %vm838_vm1, %v1250_v18  ;;  %5687 = vmatpush3.bf16.msra.mxu0 %v6133_v20 }
  0xe5   : > { %v7081_v35 = vsub.f32 %v6959_v28, %v896_v32  ;;  %v7084_v25 = vsub.f32 %v6964_v29, %v897_v33  ;;  %v954_v38 = vsel %vm838_vm1, %v926_v34, 0.0  ;;  %v957_v43 = vsel %vm838_vm1, %v927_v24, 0.0  ;;  %5723 = vmatmul.mubr.msk.bf16.gmra.mrb[12].mxu1 %vm838_vm1, %v1251_v19  ;;  %5688 = vmatprep.subr.bf16.mxu0 %v6134_v21 }
  0xe6   : > { %952 = vadd.xlane.f32.xlu1 %v951_v31  ;;  %955 = vadd.xlane.f32.xlu0 %v954_v38  ;;  %v871_v39 = vpop.xlane.xlu0 %870  ;;  %v874_v42 = vpop.xlane.xlu1 %873 }
  0xe7   : > { %v898_v46 = vmul.f32 0.03125, %v871_v39  ;;  %v899_v47 = vmul.f32 0.03125, %v874_v42  ;;  %v928_v48 = vmul.f32 %v7081_v35, %v7081_v35  ;;  %v929_v49 = vmul.f32 %v7084_v25, %v7084_v25 }
  0xe8   : > { %5689 = vmatpush3.bf16.msra.mxu0 %v6134_v21 }
  0xe9   : > { %v7093_v50 = vsub.f32 %v6981_v36, %v898_v46  ;;  %v7096_v51 = vsub.f32 %v6986_v37, %v899_v47  ;;  %v960_v52 = vsel %vm838_vm1, %v928_v48, 0.0  ;;  %v963_v55 = vsel %vm838_vm1, %v929_v49, 0.0 }
  0xea   : > { %958 = vadd.xlane.f32.xlu1 %v957_v43  ;;  %961 = vadd.xlane.f32.xlu0 %v960_v52  ;;  %v877_v53 = vpop.xlane.xlu0 %876  ;;  %v880_v54 = vpop.xlane.xlu1 %879 }
  0xeb   : > { %v900_v56 = vmul.f32 0.03125, %v877_v53  ;;  %v901_v57 = vmul.f32 0.03125, %v880_v54  ;;  %v930_v60 = vmul.f32 %v7093_v50, %v7093_v50  ;;  %v931_v61 = vmul.f32 %v7096_v51, %v7096_v51 }
  0xed   : > { %v7109_v0 = vsub.f32 %v6995_v40, %v900_v56  ;;  %v7112_v1 = vsub.f32 %v7000_v41, %v901_v57  ;;  %v966_v4 = vsel %vm838_vm1, %v930_v60, 0.0  ;;  %v969_v7 = vsel %vm838_vm1, %v931_v61, 0.0 }
  0xee   : > { %964 = vadd.xlane.f32.xlu1 %v963_v55  ;;  %967 = vadd.xlane.f32.xlu0 %v966_v4  ;;  %v883_v5 = vpop.xlane.xlu0 %882  ;;  %v886_v6 = vpop.xlane.xlu1 %885 }
  0xef   : > { %v902_v8 = vmul.f32 0.03125, %v883_v5  ;;  %v903_v9 = vmul.f32 0.03125, %v886_v6  ;;  %v932_v28 = vmul.f32 %v7109_v0, %v7109_v0  ;;  %v933_v29 = vmul.f32 %v7112_v1, %v7112_v1 }
  0xf1   : > { %v7123_v36 = vsub.f32 %v7009_v44, %v902_v8  ;;  %v7126_v37 = vsub.f32 %v7014_v45, %v903_v9  ;;  %v972_v10 = vsel %vm838_vm1, %v932_v28, 0.0  ;;  %v975_v11 = vsel %vm838_vm1, %v933_v29, 0.0 }
  0xf2   : > { %970 = vadd.xlane.f32.xlu1 %v969_v7  ;;  %973 = vadd.xlane.f32.xlu0 %v972_v10 }
  0xf3   : > { %v934_v14 = vmul.f32 %v7123_v36, %v7123_v36  ;;  %v935_v15 = vmul.f32 %v7126_v37, %v7126_v37 }
  0xf5   : > { %v978_v16 = vsel %vm838_vm1, %v934_v14, 0.0  ;;  %v981_v17 = vsel %vm838_vm1, %v935_v15, 0.0 }
  0xf6   : > { %976 = vadd.xlane.f32.xlu1 %v975_v11  ;;  %979 = vadd.xlane.f32.xlu0 %v978_v16 }
  0xfa   : > { %982 = vadd.xlane.f32.xlu1 %v981_v17 }
 0x121   : > { %v5712_v40 = vpop.f32.mrb[0].mxu1 }
 0x122   : > { %v1342_v41 = vadd.f32 %v5712_v40, %v7149_v26  ;;  %v1333_v44 = vpop.f32.mrb[1].mxu1  ;;  %v7187_v40 = vld [vmem:[%s9162_s1] ss:$0 sm:$0xff]  ;;  %s6596_s1 = smov 104  }
 0x123   : > { %v1334_v45 = vadd.f32 %v7149_v26, %v1333_v44  ;;  %v5713_v27 = vpop.f32.mrb[2].mxu1 }
 0x124   : > { %v1345_v30 = vadd.f32 %v5713_v27, %v7149_v26  ;;  %v1336_v31 = vpop.f32.mrb[3].mxu1 }
 0x125   : > { %v1337_v32 = vadd.f32 %v7149_v26, %v1336_v31 }
 0x126   : > { %v7155_v33 = vpack.c.bf16 %v1345_v30, %v1342_v41 }
 0x127   : > { %v7157_v34 = vpack.c.bf16 %v1337_v32, %v1334_v45 }
 0x128   : > { %1798 = vrot.lane.b32.xlu1 %v7155_v33, %s6591_s15 }
 0x129   : > { %6054 = vmatprep.subr.msk.bf16.mxu0 %vm1412_vm2, %v7157_v34  ;;  %1796 = vrot.lane.b32.xlu0 %v7157_v34, %s6591_s15  ;;  %v5716_v24 = vpop.f32.mrb[4].mxu1 }
 0x12a   : > { %v1358_v38 = vadd.f32 %v5716_v24, %v7149_v26  ;;  %v1349_v39 = vpop.f32.mrb[5].mxu1 }
 0x12b   : > { %v1350_v42 = vadd.f32 %v7149_v26, %v1349_v39  ;;  %v5717_v43 = vpop.f32.mrb[6].mxu1  ;;  %v7196_v39 = vld [vmem:[%s9164_s23] ss:$0 sm:$0xff]  ;;  %s6600_s23 = smov 24  }
 0x12c   : > { %v1361_v46 = vadd.f32 %v5717_v43, %v7149_v26  ;;  %v1352_v47 = vpop.f32.mrb[7].mxu1  ;;  %2008 = vrot.lane.b32.xlu1 %v7155_v33, %s6592_s17 }
 0x12d   : > { %2006 = vrot.lane.b32.xlu0 %v7157_v34, %s6592_s17  ;;  %v1353_v48 = vadd.f32 %v7149_v26, %v1352_v47 }
 0x12e   : > { %v7173_v49 = vpack.c.bf16 %v1361_v46, %v1358_v38 }
 0x12f   : > { %v7175_v52 = vpack.c.bf16 %v1353_v48, %v1350_v42 }
 0x130   : > { %1802 = vrot.lane.b32.xlu1 %v7173_v49, %s6591_s15 }
 0x131   : > { %1800 = vrot.lane.b32.xlu0 %v7175_v52, %s6591_s15 }
 0x167   : > { %v938_v53 = vpop.xlane.xlu0 %937 }
 0x168   : > { %v984_v54 = vmul.f32 0.03125, %v938_v53 }
 0x16a   : > { %v1000_v55 = vadd.f32 1e-05, %v984_v54 }
 0x16b   : > { %v941_v56 = vpop.xlane.xlu1 %940  ;;  %v944_v57 = vpop.xlane.xlu0 %943 }
 0x16c   : > { %6147 = vrsqrt.f32 %v1000_v55  ;;  %v985_v60 = vmul.f32 0.03125, %v941_v56  ;;  %v986_v61 = vmul.f32 0.03125, %v944_v57 }
 0x16e   : > { %v1001_v62 = vadd.f32 1e-05, %v985_v60  ;;  %v1002_v63 = vadd.f32 1e-05, %v986_v61 }
 0x16f   : > { %v947_v4 = vpop.xlane.xlu1 %946  ;;  %v950_v5 = vpop.xlane.xlu0 %949 }
 0x170   : > { %6149 = vrsqrt.f32 %v1001_v62  ;;  %v987_v6 = vmul.f32 0.03125, %v947_v4  ;;  %v988_v7 = vmul.f32 0.03125, %v950_v5 }
 0x171   : > { %6151 = vrsqrt.f32 %v1002_v63 }
 0x172   : > { %v1003_v8 = vadd.f32 1e-05, %v987_v6  ;;  %v1004_v9 = vadd.f32 1e-05, %v988_v7 }
 0x173   : > { %v953_v28 = vpop.xlane.xlu1 %952  ;;  %v956_v29 = vpop.xlane.xlu0 %955 }
 0x174   : > { %6153 = vrsqrt.f32 %v1003_v8  ;;  %v989_v10 = vmul.f32 0.03125, %v953_v28  ;;  %v990_v11 = vmul.f32 0.03125, %v956_v29 }
 0x175   : > { %6155 = vrsqrt.f32 %v1004_v9 }
 0x176   : > { %v6148_v14 = vpop.eup %6147  ;;  %v1005_v15 = vadd.f32 1e-05, %v989_v10  ;;  %v1006_v16 = vadd.f32 1e-05, %v990_v11 }
 0x177   : > { %v959_v17 = vpop.xlane.xlu1 %958  ;;  %v962_v18 = vpop.xlane.xlu0 %961  ;;  %v1032_v19 = vmul.f32 %v6148_v14, %v7035_v58 }
 0x178   : > { %6157 = vrsqrt.f32 %v1005_v15  ;;  %v991_v20 = vmul.f32 0.03125, %v959_v17  ;;  %v992_v21 = vmul.f32 0.03125, %v962_v18  ;;  %v1426_v18 = vsel %vm1412_vm2, %v7157_v34, 0 }
 0x179   : > { %6159 = vrsqrt.f32 %v1006_v16  ;;  %v1054_v58 = vmul.f32 %v7187_v40, %v1032_v19 }
 0x17a   : > { %v6150_v41 = vpop.eup %6149  ;;  %v1007_v44 = vadd.f32 1e-05, %v991_v20  ;;  %v1008_v45 = vadd.f32 1e-05, %v992_v21 }
 0x17b   : > { %v6152_v27 = vpop.eup %6151  ;;  %v965_v30 = vpop.xlane.xlu1 %964  ;;  %v1033_v32 = vmul.f32 %v6150_v41, %v7045_v2  ;;  %v1076_v55 = vadd.f32 %v7196_v39, %v1054_v58 }
 0x17c   : > { %v968_v31 = vpop.xlane.xlu0 %967  ;;  %6161 = vrsqrt.f32 %v1007_v44  ;;  %v993_v24 = vmul.f32 0.03125, %v965_v30  ;;  %v1034_v42 = vmul.f32 %v6152_v27, %v7038_v59 }
 0x17d   : > { %v994_v38 = vmul.f32 0.03125, %v968_v31  ;;  %6163 = vrsqrt.f32 %v1008_v45  ;;  %v1055_v43 = vmul.f32 %v7187_v40, %v1033_v32 }
 0x17e   : > { %v6154_v46 = vpop.eup %6153  ;;  %v1009_v47 = vadd.f32 1e-05, %v993_v24  ;;  %v1056_v60 = vmul.f32 %v7187_v40, %v1034_v42 }
 0x17f   : > { %v1010_v48 = vadd.f32 1e-05, %v994_v38  ;;  %v6156_v2 = vpop.eup %6155  ;;  %v971_v53 = vpop.xlane.xlu1 %970  ;;  %v1077_v56 = vadd.f32 %v7196_v39, %v1055_v43  ;;  %v1035_v57 = vmul.f32 %v6154_v46, %v7048_v3 }
 0x180   : > { %v974_v54 = vpop.xlane.xlu0 %973  ;;  %6165 = vrsqrt.f32 %v1009_v47  ;;  %v995_v61 = vmul.f32 0.03125, %v971_v53  ;;  %v1036_v4 = vmul.f32 %v6156_v2, %v7057_v12  ;;  %v1078_v3 = vadd.f32 %v7196_v39, %v1056_v60 }
 0x181   : > { %v996_v59 = vmul.f32 0.03125, %v974_v54  ;;  %6167 = vrsqrt.f32 %v1010_v48  ;;  %v1092_v62 = vpack.c.bf16 %v1077_v56, %v1076_v55  ;;  %v1057_v63 = vmul.f32 %v7187_v40, %v1035_v57 }
 0x182   : > { %v6158_v5 = vpop.eup %6157  ;;  %v1011_v6 = vadd.f32 1e-05, %v995_v61  ;;  %v1058_v11 = vmul.f32 %v7187_v40, %v1036_v4  ;;  %v1429_v53 = vsel %vm1412_vm2, %v7155_v33, 0 }
 0x183   : > { %v1012_v7 = vadd.f32 1e-05, %v996_v59  ;;  %v6160_v8 = vpop.eup %6159  ;;  %v977_v9 = vpop.xlane.xlu1 %976  ;;  %5690 = vmatprep.mubr.msk.bf16.mxu0 %vm838_vm1, %v1092_v62  ;;  %v1079_v29 = vadd.f32 %v7196_v39, %v1057_v63  ;;  %v1037_v10 = vmul.f32 %v6158_v5, %v7060_v13 }
 0x184   : > { %v980_v28 = vpop.xlane.xlu0 %979  ;;  %6169 = vrsqrt.f32 %v1011_v6  ;;  %v997_v14 = vmul.f32 0.03125, %v977_v9  ;;  %v1038_v12 = vmul.f32 %v6160_v8, %v7069_v22  ;;  %v1080_v13 = vadd.f32 %v7196_v39, %v1058_v11 }
 0x185   : > { %v998_v15 = vmul.f32 0.03125, %v980_v28  ;;  %6171 = vrsqrt.f32 %v1012_v7  ;;  %v1093_v16 = vpack.c.bf16 %v1079_v29, %v1078_v3  ;;  %v1059_v17 = vmul.f32 %v7187_v40, %v1037_v10 }
 0x186   : > { %v6162_v19 = vpop.eup %6161  ;;  %v1013_v20 = vadd.f32 1e-05, %v997_v14  ;;  %v1060_v27 = vmul.f32 %v7187_v40, %v1038_v12  ;;  %v1432_v9 = vsel %vm1412_vm2, %v7175_v52, 0 }
 0x187   : > { %v1014_v21 = vadd.f32 1e-05, %v998_v15  ;;  %v6164_v41 = vpop.eup %6163  ;;  %v983_v44 = vpop.xlane.xlu1 %982  ;;  %5691 = vmatmul.mubr.msk.bf16.vlgmr.msra.gmra.mrb[0].mxu0 %vm838_vm1, %v1093_v16  ;;  %v1081_v45 = vadd.f32 %v7196_v39, %v1059_v17  ;;  %v1039_v22 = vmul.f32 %v6162_v19, %v7072_v23  ;;  %v1435_v16 = vsel %vm1412_vm2, %v7173_v49, 0 }
 0x188   : > { %6173 = vrsqrt.f32 %v1013_v20  ;;  %v999_v30 = vmul.f32 0.03125, %v983_v44  ;;  %v1040_v31 = vmul.f32 %v6164_v41, %v7081_v35  ;;  %5727 = vmatpush3.bf16.xpose.msra.mxu0 %v1426_v18  ;;  %v1082_v23 = vadd.f32 %v7196_v39, %v1060_v27 }
 0x189   : > { %6175 = vrsqrt.f32 %v1014_v21  ;;  %v1094_v32 = vpack.c.bf16 %v1081_v45, %v1080_v13  ;;  %v1061_v58 = vmul.f32 %v7187_v40, %v1039_v22  ;;  %6055 = vmatprep.subr.msk.bf16.mxu0 %vm1412_vm2, %v7155_v33 }
 0x18a   : > { %v6166_v24 = vpop.eup %6165  ;;  %v1015_v38 = vadd.f32 1e-05, %v999_v30  ;;  %v1062_v35 = vmul.f32 %v7187_v40, %v1040_v31 }
 0x18b   : > { %v6168_v42 = vpop.eup %6167  ;;  %5694 = vmatprep.mubr.msk.bf16.mxu0 %vm838_vm1, %v1094_v32  ;;  %v1083_v43 = vadd.f32 %v7196_v39, %v1061_v58  ;;  %v1041_v46 = vmul.f32 %v6166_v24, %v7084_v25 }
 0x18c   : > { %6177 = vrsqrt.f32 %v1015_v38  ;;  %v1042_v47 = vmul.f32 %v6168_v42, %v7093_v50  ;;  %v1084_v56 = vadd.f32 %v7196_v39, %v1062_v35 }
 0x18d   : > { %v1095_v48 = vpack.c.bf16 %v1083_v43, %v1082_v23  ;;  %v1063_v2 = vmul.f32 %v7187_v40, %v1041_v46 }
 0x18e   : > { %v6170_v54 = vpop.eup %6169  ;;  %v1064_v60 = vmul.f32 %v7187_v40, %v1042_v47 }
 0x18f   : > { %v6172_v55 = vpop.eup %6171  ;;  %5695 = vmatmul.mubr.msk.bf16.gmra.mrb[4].mxu0 %vm838_vm1, %v1095_v48  ;;  %v1085_v57 = vadd.f32 %v7196_v39, %v1063_v2  ;;  %v1043_v25 = vmul.f32 %v6170_v54, %v7096_v51  ;;  %v5373_v48 = vld [vmem:[%s9166_s4] ss:$0 sm:$0xff]  ;;  %s9181_s4 = scalar_lea.vmem %s9127_s8, %s6730_s18 }
 0x190   : > { %v1044_v50 = vmul.f32 %v6172_v55, %v7109_v0  ;;  %5729 = vmatpush3.bf16.xpose.msra.mxu0 %v1429_v53  ;;  %v1086_v4 = vadd.f32 %v7196_v39, %v1064_v60 }
 0x191   : > { %v1096_v61 = vpack.c.bf16 %v1085_v57, %v1084_v56  ;;  %v1065_v59 = vmul.f32 %v7187_v40, %v1043_v25  ;;  %6056 = vmatprep.subr.msk.bf16.mxu0 %vm1412_vm2, %v7175_v52 }
 0x192   : > { %v6174_v62 = vpop.eup %6173  ;;  %v1066_v6 = vmul.f32 %v7187_v40, %v1044_v50 }
 0x193   : > { %v6176_v63 = vpop.eup %6175  ;;  %5698 = vmatprep.mubr.msk.bf16.mxu0 %vm838_vm1, %v1096_v61  ;;  %v1087_v5 = vadd.f32 %v7196_v39, %v1065_v59  ;;  %v1045_v51 = vmul.f32 %v6174_v62, %v7112_v1 }
 0x194   : > { %v1046_v0 = vmul.f32 %v6176_v63, %v7123_v36  ;;  %v1088_v3 = vadd.f32 %v7196_v39, %v1066_v6 }
 0x195   : > { %v1097_v7 = vpack.c.bf16 %v1087_v5, %v1086_v4  ;;  %v1067_v8 = vmul.f32 %v7187_v40, %v1045_v51 }
 0x196   : > { %v6178_v28 = vpop.eup %6177  ;;  %v1068_v1 = vmul.f32 %v7187_v40, %v1046_v0 }
 0x197   : > { %5699 = vmatmul.mubr.msk.bf16.gmra.mrb[8].mxu0 %vm838_vm1, %v1097_v7  ;;  %v1089_v29 = vadd.f32 %v7196_v39, %v1067_v8  ;;  %v1047_v10 = vmul.f32 %v6178_v28, %v7126_v37 }
 0x198   : > { %5731 = vmatpush3.bf16.xpose.msra.mxu0 %v1432_v9  ;;  %v1090_v14 = vadd.f32 %v7196_v39, %v1068_v1 }
 0x199   : > { %v1098_v11 = vpack.c.bf16 %v1089_v29, %v1088_v3  ;;  %v1069_v36 = vmul.f32 %v7187_v40, %v1047_v10  ;;  %6057 = vmatprep.subr.msk.bf16.mxu0 %vm1412_vm2, %v7173_v49 }
 0x19a   : > { %v1799_v54 = vpop.permute.xlu1 %1798 }
 0x19b   : > { %5702 = vmatprep.mubr.msk.bf16.mxu0 %vm838_vm1, %v1098_v11  ;;  %v1091_v15 = vadd.f32 %v7196_v39, %v1069_v36  ;;  %v1797_v46 = vpop.permute.xlu0 %1796 }
 0x19d   : > { %v1099_v12 = vpack.c.bf16 %v1091_v15, %v1090_v14 }
 0x19e   : > { %v2009_v63 = vpop.permute.xlu1 %2008 }
 0x19f   : > { %5703 = vmatmul.mubr.msk.bf16.gmra.mrb[12].mxu0 %vm838_vm1, %v1099_v12  ;;  %v2007_v35 = vpop.permute.xlu0 %2006  ;;  %v2030_v3 = vsel %vm1412_vm2, %v2009_v63, 0 }
 0x1a0   : > { %5733 = vmatpush3.bf16.xpose.msra.mxu0 %v1435_v16  ;;  %v2027_v59 = vsel %vm1412_vm2, %v2007_v35, 0 }
 0x1a1   : > { %6062 = vmatprep.subr.msk.bf16.mxu0 %vm1412_vm2, %v2007_v35 }
 0x1b0   : > { %v5720_v37 = vpop.f32.mrb[8].mxu1 }
 0x1b1   : > { %v1374_v17 = vadd.f32 %v5720_v37, %v7149_v26  ;;  %v1365_v40 = vpop.f32.mrb[9].mxu1 }
 0x1b2   : > { %v1366_v18 = vadd.f32 %v7149_v26, %v1365_v40  ;;  %v5721_v19 = vpop.f32.mrb[10].mxu1 }
 0x1b3   : > { %v1377_v20 = vadd.f32 %v5721_v19, %v7149_v26  ;;  %v1368_v21 = vpop.f32.mrb[11].mxu1  ;;  %v1801_v19 = vpop.permute.xlu0 %1800 }
 0x1b4   : > { %v1369_v41 = vadd.f32 %v7149_v26, %v1368_v21 }
 0x1b5   : > { %v7269_v39 = vpack.c.bf16 %v1377_v20, %v1374_v17 }
 0x1b6   : > { %v7271_v44 = vpack.c.bf16 %v1369_v41, %v1366_v18 }
 0x1b7   : > { %1891 = vrot.lane.b32.xlu0 %v7269_v39, %s6591_s15  ;;  %v1518_v22 = vsel %vm1412_vm2, %v7269_v39, 0 }
 0x1b8   : > { %6058 = vmatprep.subr.msk.bf16.mxu1 %vm1412_vm2, %v7271_v44  ;;  %v1515_v13 = vsel %vm1412_vm2, %v7271_v44, 0  ;;  %v5724_v45 = vpop.f32.mrb[12].mxu1 }
 0x1b9   : > { %5743 = vmatpush3.bf16.xpose.msra.mxu1 %v1515_v13  ;;  %v1390_v27 = vadd.f32 %v5724_v45, %v7149_v26  ;;  %v1381_v30 = vpop.f32.mrb[13].mxu1 }
 0x1ba   : > { %6059 = vmatprep.subr.msk.bf16.mxu1 %vm1412_vm2, %v7269_v39  ;;  %v1382_v31 = vadd.f32 %v7149_v26, %v1381_v30  ;;  %v5725_v32 = vpop.f32.mrb[14].mxu1 }
 0x1bb   : > { %1889 = vrot.lane.b32.xlu0 %v7271_v44, %s6591_s15  ;;  %v1393_v58 = vadd.f32 %v5725_v32, %v7149_v26  ;;  %v1384_v24 = vpop.f32.mrb[15].mxu1 }
 0x1bc   : > { %v1385_v38 = vadd.f32 %v7149_v26, %v1384_v24 }
 0x1bd   : > { %v7289_v42 = vpack.c.bf16 %v1393_v58, %v1390_v27 }
 0x1be   : > { %v7291_v23 = vpack.c.bf16 %v1385_v38, %v1382_v31  ;;  %v1803_v31 = vpop.permute.xlu1 %1802 }
 0x1bf   : > { %1895 = vrot.lane.b32.xlu0 %v7289_v42, %s6591_s15  ;;  %v1524_v26 = vsel %vm1412_vm2, %v7289_v42, 0 }
 0x1c0   : > { %v1521_v43 = vsel %vm1412_vm2, %v7291_v23, 0  ;;  %1893 = vrot.lane.b32.xlu1 %v7291_v23, %s6591_s15  ;;  %s6593_s15 = smov 88  }
 0x1c1   : > { %5745 = vmatpush3.bf16.xpose.msra.mxu1 %v1518_v22 }
 0x1c2   : > { %6060 = vmatprep.subr.msk.bf16.mxu1 %vm1412_vm2, %v7291_v23 }
 0x1c9   : > { %5747 = vmatpush3.bf16.xpose.msra.mxu1 %v1521_v43 }
 0x1ca   : > { %6061 = vmatprep.subr.msk.bf16.mxu1 %vm1412_vm2, %v7289_v42 }
 0x1d1   : > { %5749 = vmatpush3.bf16.xpose.msra.mxu1 %v1524_v26 }
 0x1d2   : > { %5758 = vmatprep.subr.bf16.mxu1 %v1797_v46 }
 0x229   : > { %v7342_v30 = vpop.permute.xlu0 %1891 }
 0x22d   : > { %v7348_v32 = vpop.permute.xlu0 %1889 }
 0x25a   : > { %v5692_v47 = vpop.f32.mrb[0].mxu0 }
 0x25b   : > { %v1181_v2 = vpop.f32.mrb[1].mxu0  ;;  %v1190_v55 = vadd.f32 %v5692_v47, %v5373_v48 }
 0x25c   : > { %v5693_v53 = vpop.f32.mrb[2].mxu0  ;;  %v1182_v25 = vadd.f32 %v5373_v48, %v1181_v2 }
 0x25d   : > { %v1193_v56 = vadd.f32 %v5693_v53, %v5373_v48  ;;  %v1184_v57 = vpop.f32.mrb[3].mxu0 }
 0x25e   : > { %v1185_v60 = vadd.f32 %v5373_v48, %v1184_v57 }
 0x25f   : > { %v7311_v50 = vpack.c.bf16 %v1193_v56, %v1190_v55 }
 0x260   : > { %v7313_v61 = vpack.c.bf16 %v1185_v60, %v1182_v25 }
 0x262   : > { %v5696_v62 = vpop.f32.mrb[4].mxu0  ;;  %5734 = vmatprep.mubr.msk.bf16.mxu0 %vm1412_vm2, %v7313_v61 }
 0x263   : > { %v1197_v4 = vpop.f32.mrb[5].mxu0  ;;  %5735 = vmatmul.mubr.msk.bf16.vlgmr.msra.gmra.mrb[16].mxu0 %vm1412_vm2, %v7311_v50  ;;  %v1206_v51 = vadd.f32 %v5696_v62, %v5373_v48 }
 0x264   : > { %v5697_v5 = vpop.f32.mrb[6].mxu0  ;;  %5791 = vmatpush3.bf16.xpose.msra.mxu0 %v2027_v59  ;;  %v1198_v7 = vadd.f32 %v5373_v48, %v1197_v4 }
 0x265   : > { %v1209_v6 = vadd.f32 %v5697_v5, %v5373_v48  ;;  %v1200_v0 = vpop.f32.mrb[7].mxu0  ;;  %6063 = vmatprep.subr.msk.bf16.mxu0 %vm1412_vm2, %v2009_v63 }
 0x266   : > { %v1201_v8 = vadd.f32 %v5373_v48, %v1200_v0 }
 0x267   : > { %v7321_v9 = vpack.c.bf16 %v1209_v6, %v1206_v51 }
 0x268   : > { %v7323_v28 = vpack.c.bf16 %v1201_v8, %v1198_v7 }
 0x26a   : > { %v5700_v29 = vpop.f32.mrb[8].mxu0  ;;  %5738 = vmatprep.mubr.msk.bf16.mxu0 %vm1412_vm2, %v7323_v28 }
 0x26b   : > { %v1213_v10 = vpop.f32.mrb[9].mxu0  ;;  %5739 = vmatmul.mubr.msk.bf16.gmra.mrb[20].mxu0 %vm1412_vm2, %v7321_v9  ;;  %v1222_v11 = vadd.f32 %v5700_v29, %v5373_v48 }
 0x26c   : > { %v5701_v1 = vpop.f32.mrb[10].mxu0  ;;  %5793 = vmatpush3.bf16.xpose.msra.mxu0 %v2030_v3  ;;  %v1214_v15 = vadd.f32 %v5373_v48, %v1213_v10 }
 0x26d   : > { %v1225_v36 = vadd.f32 %v5701_v1, %v5373_v48  ;;  %v1216_v14 = vpop.f32.mrb[11].mxu0 }
 0x26e   : > { %v1217_v12 = vadd.f32 %v5373_v48, %v1216_v14 }
 0x26f   : > { %v7330_v16 = vpack.c.bf16 %v1225_v36, %v1222_v11 }
 0x270   : > { %v7332_v37 = vpack.c.bf16 %v1217_v12, %v1214_v15 }
 0x272   : > { %v5704_v17 = vpop.f32.mrb[12].mxu0  ;;  %5750 = vmatprep.mubr.msk.bf16.mxu1 %vm1412_vm2, %v7332_v37 }
 0x273   : > { %v1229_v40 = vpop.f32.mrb[13].mxu0  ;;  %5751 = vmatmul.mubr.msk.bf16.vlgmr.msra.gmra.mrb[16].mxu1 %vm1412_vm2, %v7330_v16  ;;  %v1238_v20 = vadd.f32 %v5704_v17, %v5373_v48 }
 0x274   : > { %v5705_v18 = vpop.f32.mrb[14].mxu0  ;;  %5759 = vmatpush3.bf16.msra.mxu1 %v1797_v46  ;;  %v1230_v13 = vadd.f32 %v5373_v48, %v1229_v40 }
 0x275   : > { %v1241_v21 = vadd.f32 %v5705_v18, %v5373_v48  ;;  %v1232_v41 = vpop.f32.mrb[15].mxu0  ;;  %5760 = vmatprep.subr.bf16.mxu1 %v1799_v54 }
 0x276   : > { %v1233_v45 = vadd.f32 %v5373_v48, %v1232_v41 }
 0x277   : > { %v7338_v22 = vpack.c.bf16 %v1241_v21, %v1238_v20 }
 0x278   : > { %v7340_v27 = vpack.c.bf16 %v1233_v45, %v1230_v13  ;;  %5761 = vmatpush3.bf16.msra.mxu1 %v1799_v54 }
 0x279   : > { %5762 = vmatprep.subr.bf16.mxu1 %v1801_v19 }
 0x27a   : > { %5754 = vmatprep.mubr.msk.bf16.mxu1 %vm1412_vm2, %v7340_v27 }
 0x27b   : > { %5755 = vmatmul.mubr.msk.bf16.gmra.mrb[20].mxu1 %vm1412_vm2, %v7338_v22 }
 0x27c   : > { %5763 = vmatpush3.bf16.msra.mxu1 %v1801_v19 }
 0x27d   : > { %5764 = vmatprep.subr.bf16.mxu1 %v1803_v31 }
 0x280   : > { %5765 = vmatpush3.bf16.msra.mxu1 %v1803_v31 }
 0x281   : > { %5774 = vmatprep.subr.bf16.mxu1 %v7348_v32 }
 0x336   : > { %v5736_v58 = vpop.f32.mrb[16].mxu0 }
 0x337   : > { %v7351_v24 = vmul.f32 0.35355338, %v5736_v58  ;;  %v1471_v38 = vpop.f32.mrb[17].mxu0 }
 0x338   : > { %v5737_v43 = vpop.f32.mrb[18].mxu0  ;;  %v7353_v26 = vmul.f32 0.35355338, %v1471_v38 }
 0x339   : > { %v7355_v46 = vmul.f32 0.35355338, %v5737_v43  ;;  %v1474_v35 = vpop.f32.mrb[19].mxu0  ;;  %v1614_v47 = vsel %vm1607_vm3, %v7351_v24, -inf  ;;  %v7423_v43 = vpop.permute.xlu0 %1895 }
 0x33a   : > { %1615 = vmax.xlane.f32.xlu0 %v1614_v47  ;;  %v7359_v48 = vmul.f32 0.35355338, %v1474_v35  ;;  %v1608_v53 = vsel %vm1607_vm3, %v7353_v26, -inf  ;;  %v7425_v35 = vpop.permute.xlu1 %1893 }
 0x33b   : > { %v1617_v2 = vsel %vm1607_vm3, %v7355_v46, -inf }
 0x33c   : > { %1618 = vmax.xlane.f32.xlu1 %v1617_v2  ;;  %v1611_v57 = vsel %vm1607_vm3, %v7359_v48, -inf }
 0x33e   : > { %1609 = vmax.xlane.f32.xlu0 %v1608_v53  ;;  %v5740_v54 = vpop.f32.mrb[20].mxu0 }
 0x33f   : > { %v7365_v55 = vmul.f32 0.35355338, %v5740_v54  ;;  %v1487_v56 = vpop.f32.mrb[21].mxu0 }
 0x340   : > { %1612 = vmax.xlane.f32.xlu1 %v1611_v57  ;;  %v5741_v25 = vpop.f32.mrb[22].mxu0  ;;  %v7369_v60 = vmul.f32 0.35355338, %v1487_v56 }
 0x341   : > { %v7371_v59 = vmul.f32 0.35355338, %v5741_v25  ;;  %v1490_v62 = vpop.f32.mrb[23].mxu0  ;;  %v1626_v63 = vsel %vm1607_vm3, %v7365_v55, -inf }
 0x342   : > { %1627 = vmax.xlane.f32.xlu0 %v1626_v63  ;;  %v7375_v4 = vmul.f32 0.35355338, %v1490_v62  ;;  %v1620_v51 = vsel %vm1607_vm3, %v7369_v60, -inf }
 0x343   : > { %v1629_v5 = vsel %vm1607_vm3, %v7371_v59, -inf }
 0x344   : > { %1630 = vmax.xlane.f32.xlu1 %v1629_v5  ;;  %v1623_v8 = vsel %vm1607_vm3, %v7375_v4, -inf }
 0x346   : > { %v5752_v6 = vpop.f32.mrb[16].mxu1  ;;  %1621 = vmax.xlane.f32.xlu0 %v1620_v51 }
 0x347   : > { %v7381_v0 = vmul.f32 0.35355338, %v5752_v6  ;;  %v1560_v7 = vpop.f32.mrb[17].mxu1 }
 0x348   : > { %v5753_v3 = vpop.f32.mrb[18].mxu1  ;;  %1624 = vmax.xlane.f32.xlu1 %v1623_v8  ;;  %v7385_v29 = vmul.f32 0.35355338, %v1560_v7 }
 0x349   : > { %v7387_v10 = vmul.f32 0.35355338, %v5753_v3  ;;  %v1563_v1 = vpop.f32.mrb[19].mxu1  ;;  %v1638_v11 = vsel %vm1607_vm3, %v7381_v0, -inf }
 0x34a   : > { %1639 = vmax.xlane.f32.xlu0 %v1638_v11  ;;  %v7391_v36 = vmul.f32 0.35355338, %v1563_v1  ;;  %v1632_v15 = vsel %vm1607_vm3, %v7385_v29, -inf }
 0x34b   : > { %v1641_v14 = vsel %vm1607_vm3, %v7387_v10, -inf }
 0x34c   : > { %1642 = vmax.xlane.f32.xlu1 %v1641_v14  ;;  %v1635_v18 = vsel %vm1607_vm3, %v7391_v36, -inf }
 0x34e   : > { %1633 = vmax.xlane.f32.xlu0 %v1632_v15  ;;  %v5756_v12 = vpop.f32.mrb[20].mxu1 }
 0x34f   : > { %v7397_v17 = vmul.f32 0.35355338, %v5756_v12  ;;  %v1576_v40 = vpop.f32.mrb[21].mxu1 }
 0x350   : > { %1636 = vmax.xlane.f32.xlu1 %v1635_v18  ;;  %v5757_v19 = vpop.f32.mrb[22].mxu1  ;;  %v7401_v20 = vmul.f32 0.35355338, %v1576_v40 }
 0x351   : > { %v1579_v21 = vpop.f32.mrb[23].mxu1  ;;  %v1650_v41 = vsel %vm1607_vm3, %v7397_v17, -inf  ;;  %v7415_v45 = vmul.f32 0.35355338, %v5757_v19 }
 0x352   : > { %1651 = vmax.xlane.f32.xlu0 %v1650_v41  ;;  %v1644_v13 = vsel %vm1607_vm3, %v7401_v20, -inf  ;;  %v7417_v31 = vmul.f32 0.35355338, %v1579_v21 }
 0x353   : > { %v1653_v58 = vsel %vm1607_vm3, %v7415_v45, -inf }
 0x354   : > { %v1647_v38 = vsel %vm1607_vm3, %v7417_v31, -inf }
 0x356   : > { %1645 = vmax.xlane.f32.xlu0 %v1644_v13 }
 0x361   : > { %2115 = vrot.lane.b32.xlu1 %v7271_v44, %s6592_s17 }
 0x365   : > { %2012 = vrot.lane.b32.xlu1 %v7173_v49, %s6592_s17 }
 0x369   : > { %2117 = vrot.lane.b32.xlu1 %v7269_v39, %s6592_s17 }
 0x36c   : > { %2010 = vrot.lane.b32.xlu0 %v7175_v52, %s6592_s17 }
 0x38d   : > { %1654 = vmax.xlane.f32.xlu1 %v1653_v58 }
 0x391   : > { %1648 = vmax.xlane.f32.xlu1 %v1647_v38 }
 0x3c7   : > { %v1616_v47 = vpop.xlane.xlu0 %1615 }
 0x3c8   : > { %v1658_v2 = vsub.f32 %v7351_v24, %v1616_v47 }
 0x3c9   : > { %v1619_v53 = vpop.xlane.xlu1 %1618 }
 0x3ca   : > { %v1676_v54 = vmul.f32 1.442695, %v1658_v2  ;;  %v1659_v56 = vsub.f32 %v7355_v46, %v1619_v53 }
 0x3cb   : > { %v1610_v57 = vpop.xlane.xlu0 %1609 }
 0x3cc   : > { %6179 = vpow2.f32 %v1676_v54  ;;  %v1678_v25 = vmul.f32 1.442695, %v1659_v56  ;;  %v1656_v62 = vsub.f32 %v7353_v26, %v1610_v57 }
 0x3cd   : > { %v1613_v63 = vpop.xlane.xlu1 %1612 }
 0x3ce   : > { %6181 = vpow2.f32 %v1678_v25  ;;  %v1672_v5 = vmul.f32 1.442695, %v1656_v62  ;;  %v1657_v51 = vsub.f32 %v7359_v48, %v1613_v63 }
 0x3cf   : > { %v1628_v6 = vpop.xlane.xlu0 %1627 }
 0x3d0   : > { %6183 = vpow2.f32 %v1672_v5  ;;  %v1674_v7 = vmul.f32 1.442695, %v1657_v51  ;;  %v1662_v8 = vsub.f32 %v7365_v55, %v1628_v6 }
 0x3d1   : > { %v1631_v24 = vpop.xlane.xlu1 %1630 }
 0x3d2   : > { %6185 = vpow2.f32 %v1674_v7  ;;  %v1684_v3 = vmul.f32 1.442695, %v1662_v8  ;;  %v1663_v46 = vsub.f32 %v7371_v59, %v1631_v24 }
 0x3d3   : > { %v1622_v1 = vpop.xlane.xlu0 %1621 }
 0x3d4   : > { %6187 = vpow2.f32 %v1684_v3  ;;  %v1686_v11 = vmul.f32 1.442695, %v1663_v46  ;;  %v1660_v26 = vsub.f32 %v7369_v60, %v1622_v1 }
 0x3d5   : > { %v1625_v14 = vpop.xlane.xlu1 %1624 }
 0x3d6   : > { %v7434_v15 = vpop.eup %6179  ;;  %v1680_v12 = vmul.f32 1.442695, %v1660_v26  ;;  %v1661_v48 = vsub.f32 %v7375_v4, %v1625_v14  ;;  %6189 = vpow2.f32 %v1686_v11 }
 0x3d7   : > { %v1640_v40 = vpop.xlane.xlu0 %1639  ;;  %v1710_v55 = vsel %vm1607_vm3, %v7434_v15, 0.0 }
 0x3d8   : > { %v7439_v18 = vpop.eup %6181  ;;  %6191 = vpow2.f32 %v1680_v12  ;;  %v1682_v59 = vmul.f32 1.442695, %v1661_v48  ;;  %v1666_v19 = vsub.f32 %v7381_v0, %v1640_v40  ;;  %1711 = vadd.xlane.f32.xlu0 %v1710_v55 }
 0x3d9   : > { %v1643_v21 = vpop.xlane.xlu1 %1642  ;;  %v1713_v60 = vsel %vm1607_vm3, %v7439_v18, 0.0 }
 0x3da   : > { %v7444_v41 = vpop.eup %6183  ;;  %1714 = vadd.xlane.f32.xlu1 %v1713_v60  ;;  %v1692_v4 = vmul.f32 1.442695, %v1666_v19  ;;  %6193 = vpow2.f32 %v1682_v59  ;;  %v1667_v47 = vsub.f32 %v7387_v10, %v1643_v21 }
 0x3db   : > { %v1634_v13 = vpop.xlane.xlu0 %1633  ;;  %v1704_v58 = vsel %vm1607_vm3, %v7444_v41, 0.0 }
 0x3dc   : > { %v7448_v38 = vpop.eup %6185  ;;  %v1664_v0 = vsub.f32 %v7385_v29, %v1634_v13  ;;  %1705 = vadd.xlane.f32.xlu0 %v1704_v58  ;;  %6195 = vpow2.f32 %v1692_v4  ;;  %v1694_v25 = vmul.f32 1.442695, %v1667_v47 }
 0x3dd   : > { %v1637_v2 = vpop.xlane.xlu1 %1636  ;;  %v1707_v53 = vsel %vm1607_vm3, %v7448_v38, 0.0 }
 0x3de   : > { %v7454_v54 = vpop.eup %6187  ;;  %v1688_v56 = vmul.f32 1.442695, %v1664_v0  ;;  %1708 = vadd.xlane.f32.xlu1 %v1707_v53  ;;  %v1665_v62 = vsub.f32 %v7391_v36, %v1637_v2 }
 0x3df   : > { %v1652_v57 = vpop.xlane.xlu0 %1651  ;;  %v1722_v29 = vsel %vm1607_vm3, %v7454_v54, 0.0 }
 0x3e0   : > { %6197 = vpow2.f32 %v1688_v56  ;;  %v7457_v63 = vpop.eup %6189  ;;  %v1690_v7 = vmul.f32 1.442695, %v1665_v62  ;;  %v1670_v21 = vsub.f32 %v7397_v17, %v1652_v57 }
 0x3e1   : > { %v7463_v5 = vpop.permute.xlu1 %2115  ;;  %6199 = vpow2.f32 %v1694_v25  ;;  %v1725_v36 = vsel %vm1607_vm3, %v7457_v63, 0.0 }
 0x3e2   : > { %v7461_v10 = vpop.eup %6191  ;;  %1723 = vadd.xlane.f32.xlu1 %v1722_v29  ;;  %6201 = vpow2.f32 %v1690_v7  ;;  %v1700_v60 = vmul.f32 1.442695, %v1670_v21 }
 0x3e3   : > { %v1646_v51 = vpop.xlane.xlu0 %1645  ;;  %v1716_v6 = vsel %vm1607_vm3, %v7461_v10, 0.0 }
 0x3e4   : > { %1717 = vadd.xlane.f32.xlu0 %v1716_v6  ;;  %v7469_v8 = vpop.eup %6193  ;;  %v1668_v4 = vsub.f32 %v7401_v20, %v1646_v51  ;;  %6203 = vpow2.f32 %v1700_v60 }
 0x3e5   : > { %v2013_v1 = vpop.permute.xlu1 %2012  ;;  %v1719_v11 = vsel %vm1607_vm3, %v7469_v8, 0.0 }
 0x3e6   : > { %1726 = vadd.xlane.f32.xlu1 %v1725_v36  ;;  %v7473_v46 = vpop.eup %6195  ;;  %v2036_v40 = vsel %vm1412_vm2, %v2013_v1, 0  ;;  %v1696_v13 = vmul.f32 1.442695, %v1668_v4 }
 0x3e7   : > { %v2011_v24 = vpop.permute.xlu0 %2010  ;;  %v1734_v12 = vsel %vm1607_vm3, %v7473_v46, 0.0 }
 0x3e8   : > { %6064 = vmatprep.subr.msk.bf16.mxu0 %vm1412_vm2, %v2011_v24  ;;  %v2033_v3 = vsel %vm1412_vm2, %v2011_v24, 0  ;;  %6205 = vpow2.f32 %v1696_v13 }
 0x3e9   : > { %5795 = vmatpush3.bf16.xpose.msra.mxu0 %v2033_v3  ;;  %v7499_v58 = vpop.permute.xlu1 %2117 }
 0x3ea   : > { %v7477_v26 = vpop.eup %6197  ;;  %1720 = vadd.xlane.f32.xlu1 %v1719_v11  ;;  %6065 = vmatprep.subr.msk.bf16.mxu0 %vm1412_vm2, %v2013_v1 }
 0x3eb   : > { %v1728_v14 = vsel %vm1607_vm3, %v7477_v26, 0.0  ;;  %v7484_v48 = vpop.eup %6199 }
 0x3ec   : > { %1729 = vadd.xlane.f32.xlu0 %v1728_v14  ;;  %v1737_v55 = vsel %vm1607_vm3, %v7484_v48, 0.0  ;;  %v7489_v59 = vpop.eup %6201 }
 0x3ed   : > { %v1731_v19 = vsel %vm1607_vm3, %v7489_v59, 0.0 }
 0x3ee   : > { %1735 = vadd.xlane.f32.xlu1 %v1734_v12  ;;  %v7502_v2 = vpop.eup %6203 }
 0x3ef   : > { %v1746_v17 = vsel %vm1607_vm3, %v7502_v2, 0.0 }
 0x3f1   : > { %5797 = vmatpush3.bf16.xpose.msra.mxu0 %v2036_v40 }
 0x3f2   : > { %1738 = vadd.xlane.f32.xlu1 %v1737_v55  ;;  %v7507_v57 = vpop.eup %6205 }
 0x3f3   : > { %v1740_v62 = vsel %vm1607_vm3, %v7507_v57, 0.0 }
 0x3f6   : > { %1732 = vadd.xlane.f32.xlu1 %v1731_v19 }
 0x402   : > { %1998 = vrot.lane.b32.xlu0 %v7313_v61, %s6592_s17 }
 0x407   : > { %2000 = vrot.lane.b32.xlu1 %v7311_v50, %s6592_s17 }
 0x41a   : > { %v1655_v47 = vpop.xlane.xlu1 %1654 }
 0x41b   : > { %v1671_v0 = vsub.f32 %v7415_v45, %v1655_v47 }
 0x41d   : > { %v1702_v53 = vmul.f32 1.442695, %v1671_v0 }
 0x41e   : > { %v1649_v56 = vpop.xlane.xlu1 %1648 }
 0x41f   : > { %6207 = vpow2.f32 %v1702_v53  ;;  %v1669_v25 = vsub.f32 %v7417_v31, %v1649_v56 }
 0x421   : > { %v1698_v20 = vmul.f32 1.442695, %v1669_v25  ;;  %1747 = vadd.xlane.f32.xlu0 %v1746_v17 }
 0x423   : > { %6209 = vpow2.f32 %v1698_v20 }
 0x425   : > { %1741 = vadd.xlane.f32.xlu0 %v1740_v62 }
 0x429   : > { %v7511_v45 = vpop.eup %6207 }
 0x42a   : > { %v1749_v29 = vsel %vm1607_vm3, %v7511_v45, 0.0 }
 0x42b   : > { %1750 = vadd.xlane.f32.xlu0 %v1749_v29 }
 0x42d   : > { %v7515_v51 = vpop.eup %6209 }
 0x42e   : > { %v1743_v31 = vsel %vm1607_vm3, %v7515_v51, 0.0 }
 0x42f   : > { %1744 = vadd.xlane.f32.xlu1 %v1743_v31 }
 0x440   : > { %2121 = vrot.lane.b32.xlu1 %v7289_v42, %s6592_s17 }
 0x441   : > { %2119 = vrot.lane.b32.xlu0 %v7291_v23, %s6592_s17 }
 0x444   : > { %2109 = vrot.lane.b32.xlu1 %v7330_v16, %s6592_s17 }
 0x445   : > { %2107 = vrot.lane.b32.xlu0 %v7332_v37, %s6592_s17 }
 0x448   : > { %2004 = vrot.lane.b32.xlu1 %v7321_v9, %s6592_s17 }
 0x449   : > { %2002 = vrot.lane.b32.xlu0 %v7323_v28, %s6592_s17 }
 0x44c   : > { %2113 = vrot.lane.b32.xlu1 %v7338_v22, %s6592_s17 }
 0x44d   : > { %2111 = vrot.lane.b32.xlu0 %v7340_v27, %s6592_s17  ;;  %s6594_s17 = smov 112  }
 0x465   : > { %v1712_v6 = vpop.xlane.xlu0 %1711 }
 0x467   : > { %v1715_v7 = vpop.xlane.xlu1 %1714 }
 0x468   : > { %6211 = vrcp.f32 %v1715_v7 }
 0x469   : > { %v1706_v36 = vpop.xlane.xlu0 %1705 }
 0x46a   : > { %6213 = vrcp.f32 %v1706_v36 }
 0x46b   : > { %6215 = vrcp.f32 %v1712_v6  ;;  %v1709_v24 = vpop.xlane.xlu1 %1708 }
 0x46c   : > { %6217 = vrcp.f32 %v1709_v24 }
 0x46f   : > { %v1724_v3 = vpop.xlane.xlu1 %1723 }
 0x471   : > { %v1718_v11 = vpop.xlane.xlu0 %1717 }
 0x472   : > { %v6212_v1 = vpop.eup %6211 }
 0x473   : > { %v1727_v14 = vpop.xlane.xlu1 %1726  ;;  %v1771_v19 = vmul.f32 %v6212_v1, %v7439_v18 }
 0x474   : > { %v6214_v12 = vpop.eup %6213  ;;  %6219 = vrcp.f32 %v1727_v14 }
 0x475   : > { %v6216_v40 = vpop.eup %6215  ;;  %6221 = vrcp.f32 %v1718_v11  ;;  %v1768_v60 = vmul.f32 %v6214_v12, %v7444_v41 }
 0x476   : > { %v6218_v55 = vpop.eup %6217  ;;  %6223 = vrcp.f32 %v1724_v3  ;;  %v1770_v13 = vmul.f32 %v6216_v40, %v7434_v15 }
 0x477   : > { %v1721_v21 = vpop.xlane.xlu1 %1720  ;;  %v1769_v4 = vmul.f32 %v6218_v55, %v7448_v38 }
 0x478   : > { %6225 = vrcp.f32 %v1721_v21  ;;  %v1785_v53 = vpack.c.bf16 %v1771_v19, %v1770_v13 }
 0x479   : > { %v1730_v47 = vpop.xlane.xlu0 %1729  ;;  %v1784_v0 = vpack.c.bf16 %v1769_v4, %v1768_v60 }
 0x47b   : > { %v1736_v56 = vpop.xlane.xlu1 %1735  ;;  %5766 = vmatprep.mubr.msk.bf16.mxu1 %vm1607_vm3, %v1784_v0 }
 0x47c   : > { %5767 = vmatmul.mubr.msk.bf16.vlgmr.msra.gmra.mrb[24].mxu1 %vm1607_vm3, %v1785_v53 }
 0x47d   : > { %5775 = vmatpush3.bf16.msra.mxu1 %v7348_v32  ;;  %v1999_v18 = vpop.permute.xlu0 %1998 }
 0x47e   : > { %5776 = vmatprep.subr.bf16.mxu1 %v7342_v30  ;;  %5798 = vmatprep.mubr.msk.bf16.mxu0 %vm1412_vm2, %v1999_v18  ;;  %v6220_v41 = vpop.eup %6219 }
 0x47f   : > { %v1739_v38 = vpop.xlane.xlu1 %1738  ;;  %v6222_v25 = vpop.eup %6221  ;;  %v1775_v20 = vmul.f32 %v6220_v41, %v7457_v63 }
 0x480   : > { %v6224_v15 = vpop.eup %6223  ;;  %6227 = vrcp.f32 %v1739_v38  ;;  %v1772_v62 = vmul.f32 %v6222_v25, %v7461_v10 }
 0x481   : > { %5777 = vmatpush3.bf16.msra.mxu1 %v7342_v30  ;;  %6229 = vrcp.f32 %v1730_v47  ;;  %v1774_v31 = vmul.f32 %v6224_v15, %v7454_v54 }
 0x482   : > { %v6226_v17 = vpop.eup %6225  ;;  %5778 = vmatprep.subr.bf16.mxu1 %v7425_v35  ;;  %6231 = vrcp.f32 %v1736_v56 }
 0x483   : > { %v1733_v32 = vpop.xlane.xlu1 %1732  ;;  %v1773_v29 = vmul.f32 %v6226_v17, %v7469_v8  ;;  %v1787_v30 = vpack.c.bf16 %v1775_v20, %v1774_v31 }
 0x484   : > { %6233 = vrcp.f32 %v1733_v32 }
 0x485   : > { %5779 = vmatpush3.bf16.msra.mxu1 %v7425_v35  ;;  %v1786_v6 = vpack.c.bf16 %v1773_v29, %v1772_v62 }
 0x486   : > { %5780 = vmatprep.subr.bf16.mxu1 %v7423_v43 }
 0x487   : > { %v2001_v7 = vpop.permute.xlu1 %2000  ;;  %5770 = vmatprep.mubr.msk.bf16.mxu1 %vm1607_vm3, %v1786_v6 }
 0x488   : > { %5771 = vmatmul.mubr.msk.bf16.gmra.mrb[28].mxu1 %vm1607_vm3, %v1787_v30  ;;  %5799 = vmatmul.mubr.msk.bf16.vlgmr.msra.gmra.mrb[24].mxu0 %vm1412_vm2, %v2001_v7 }
 0x489   : > { %5781 = vmatpush3.bf16.msra.mxu1 %v7423_v43  ;;  %v2136_v43 = vsel %vm1412_vm2, %v7463_v5, 0 }
 0x48a   : > { %6066 = vmatprep.subr.msk.bf16.mxu1 %vm1412_vm2, %v7463_v5  ;;  %v6228_v63 = vpop.eup %6227 }
 0x48b   : > { %v6230_v54 = vpop.eup %6229  ;;  %v1779_v8 = vmul.f32 %v6228_v63, %v7484_v48 }
 0x48c   : > { %v6232_v10 = vpop.eup %6231  ;;  %v1776_v36 = vmul.f32 %v6230_v54, %v7477_v26  ;;  %v2139_v26 = vsel %vm1412_vm2, %v7499_v58, 0 }
 0x48d   : > { %v1778_v3 = vmul.f32 %v6232_v10, %v7473_v46 }
 0x48e   : > { %v6234_v35 = vpop.eup %6233 }
 0x48f   : > { %v1777_v24 = vmul.f32 %v6234_v35, %v7489_v59  ;;  %v1789_v11 = vpack.c.bf16 %v1779_v8, %v1778_v3 }
 0x491   : > { %v1788_v1 = vpack.c.bf16 %v1777_v24, %v1776_v36 }
 0x493   : > { %5782 = vmatprep.mubr.msk.bf16.mxu1 %vm1607_vm3, %v1788_v1 }
 0x494   : > { %5783 = vmatmul.mubr.msk.bf16.vlgmr.msra.gmra.mrb[32].mxu1 %vm1607_vm3, %v1789_v11 }
 0x495   : > { %5807 = vmatpush3.bf16.xpose.msra.mxu1 %v2136_v43 }
 0x496   : > { %6067 = vmatprep.subr.msk.bf16.mxu1 %vm1412_vm2, %v7499_v58 }
 0x49d   : > { %5809 = vmatpush3.bf16.xpose.msra.mxu1 %v2139_v26 }
 0x4ae   : > { %v1748_v48 = vpop.xlane.xlu0 %1747 }
 0x4b2   : > { %v1742_v59 = vpop.xlane.xlu0 %1741 }
 0x4b8   : > { %v1751_v46 = vpop.xlane.xlu0 %1750 }
 0x4b9   : > { %6235 = vrcp.f32 %v1751_v46 }
 0x4ba   : > { %6237 = vrcp.f32 %v1742_v59 }
 0x4bb   : > { %6239 = vrcp.f32 %v1748_v48 }
 0x4bc   : > { %v1745_v14 = vpop.xlane.xlu1 %1744  ;;  %v2120_v12 = vpop.permute.xlu0 %2119 }
 0x4bd   : > { %6241 = vrcp.f32 %v1745_v14  ;;  %6068 = vmatprep.subr.msk.bf16.mxu1 %vm1412_vm2, %v2120_v12  ;;  %v2142_v5 = vsel %vm1412_vm2, %v2120_v12, 0 }
 0x4be   : > { %5811 = vmatpush3.bf16.xpose.msra.mxu1 %v2142_v5 }
 0x4c0   : > { %v2122_v40 = vpop.permute.xlu1 %2121  ;;  %v2108_v55 = vpop.permute.xlu0 %2107 }
 0x4c1   : > { %6069 = vmatprep.subr.msk.bf16.mxu1 %vm1412_vm2, %v2122_v40  ;;  %v2145_v4 = vsel %vm1412_vm2, %v2122_v40, 0 }
 0x4c3   : > { %v6236_v58 = vpop.eup %6235 }
 0x4c4   : > { %v2110_v19 = vpop.permute.xlu1 %2109  ;;  %v2003_v21 = vpop.permute.xlu0 %2002  ;;  %v1783_v0 = vmul.f32 %v6236_v58, %v7511_v45 }
 0x4c5   : > { %v6238_v60 = vpop.eup %6237  ;;  %5802 = vmatprep.mubr.msk.bf16.mxu0 %vm1412_vm2, %v2003_v21 }
 0x4c6   : > { %v6240_v13 = vpop.eup %6239  ;;  %5813 = vmatpush3.bf16.xpose.msra.mxu1 %v2145_v4  ;;  %v1780_v56 = vmul.f32 %v6238_v60, %v7507_v57 }
 0x4c7   : > { %v6242_v47 = vpop.eup %6241  ;;  %v1782_v41 = vmul.f32 %v6240_v13, %v7502_v2 }
 0x4c8   : > { %v2005_v53 = vpop.permute.xlu1 %2004  ;;  %v1781_v18 = vmul.f32 %v6242_v47, %v7515_v51  ;;  %v2112_v15 = vpop.permute.xlu0 %2111 }
 0x4c9   : > { %5803 = vmatmul.mubr.msk.bf16.gmra.mrb[28].mxu0 %vm1412_vm2, %v2005_v53  ;;  %v1791_v25 = vpack.c.bf16 %v1783_v0, %v1782_v41 }
 0x4ca   : > { %v1790_v38 = vpack.c.bf16 %v1781_v18, %v1780_v56 }
 0x4cc   : > { %5786 = vmatprep.mubr.msk.bf16.mxu1 %vm1607_vm3, %v1790_v38  ;;  %v2114_v57 = vpop.permute.xlu1 %2113 }
 0x4cd   : > { %5787 = vmatmul.mubr.msk.bf16.gmra.mrb[36].mxu1 %vm1607_vm3, %v1791_v25 }
 0x4ce   : > { %5814 = vmatprep.mubr.msk.bf16.mxu1 %vm1412_vm2, %v2108_v55 }
 0x4d5   : > { %5815 = vmatmul.mubr.msk.bf16.vlgmr.msra.gmra.mrb[40].mxu1 %vm1412_vm2, %v2110_v19 }
 0x4d6   : > { %5818 = vmatprep.mubr.msk.bf16.mxu1 %vm1412_vm2, %v2112_v15 }
 0x4dd   : > { %5819 = vmatmul.mubr.msk.bf16.gmra.mrb[44].mxu1 %vm1412_vm2, %v2114_v57 }
 0x54f   : > { %v5768_v45 = vpop.f32.mrb[24].mxu1 }
 0x550   : > { %1980 = vst.msk [vmem:[#allocation2 + $0x10] sm:$0xff] %vm1412_vm2, %v5768_v45  ;;  %v1854_v2 = vpop.f32.mrb[25].mxu1 }
 0x551   : > { %1978 = vst.msk [vmem:[#allocation2] sm:$0xff] %vm1412_vm2, %v1854_v2  ;;  %v5769_v51 = vpop.f32.mrb[26].mxu1 }
 0x552   : > { %1981 = vst.msk [vmem:[#allocation2 + $0x18] sm:$0xff] %vm1412_vm2, %v5769_v51  ;;  %v1857_v17 = vpop.f32.mrb[27].mxu1 }
 0x553   : > { %1979 = vst.msk [vmem:[#allocation2 + $0x8] sm:$0xff] %vm1412_vm2, %v1857_v17 }
 0x55b   : > { %v5772_v20 = vpop.f32.mrb[28].mxu1  ;;  %v5800_v32 = vpop.f32.mrb[24].mxu0 }
 0x55c   : > { %1984 = vst.msk [vmem:[#allocation2 + $0x30] sm:$0xff] %vm1412_vm2, %v5772_v20  ;;  %v1870_v62 = vpop.f32.mrb[29].mxu1  ;;  %v2072_v29 = vpop.f32.mrb[25].mxu0  ;;  %v7595_v54 = vmul.f32 0.35355338, %v5800_v32 }
 0x55d   : > { %1982 = vst.msk [vmem:[#allocation2 + $0x20] sm:$0xff] %vm1412_vm2, %v1870_v62  ;;  %v7592_v31 = vmul.f32 0.35355338, %v2072_v29  ;;  %v5773_v6 = vpop.f32.mrb[30].mxu1  ;;  %v5801_v30 = vpop.f32.mrb[26].mxu0 }
 0x55e   : > { %1985 = vst.msk [vmem:[#allocation2 + $0x38] sm:$0xff] %vm1412_vm2, %v5773_v6  ;;  %v1873_v7 = vpop.f32.mrb[31].mxu1  ;;  %v2075_v63 = vpop.f32.mrb[27].mxu0  ;;  %v7604_v36 = vmul.f32 0.35355338, %v5801_v30  ;;  %v2234_v24 = vsel %vm1607_vm3, %v7595_v54, -inf }
 0x55f   : > { %1983 = vst.msk [vmem:[#allocation2 + $0x28] sm:$0xff] %vm1412_vm2, %v1873_v7  ;;  %v7598_v10 = vmul.f32 0.35355338, %v2075_v63  ;;  %v2228_v35 = vsel %vm1607_vm3, %v7592_v31, -inf }
 0x560   : > { %2229 = vmax.xlane.f32.xlu0 %v2228_v35  ;;  %v2237_v1 = vsel %vm1607_vm3, %v7604_v36, -inf }
 0x561   : > { %v2231_v8 = vsel %vm1607_vm3, %v7598_v10, -inf }
 0x562   : > { %2232 = vmax.xlane.f32.xlu1 %v2231_v8 }
 0x564   : > { %2235 = vmax.xlane.f32.xlu0 %v2234_v24 }
 0x567   : > { %v5784_v3 = vpop.f32.mrb[32].mxu1 }
 0x568   : > { %1988 = vst.msk [vmem:[#allocation2 + $0x50] sm:$0xff] %vm1412_vm2, %v5784_v3  ;;  %v1947_v11 = vpop.f32.mrb[33].mxu1  ;;  %2238 = vmax.xlane.f32.xlu0 %v2237_v1 }
 0x569   : > { %1986 = vst.msk [vmem:[#allocation2 + $0x40] sm:$0xff] %vm1412_vm2, %v1947_v11  ;;  %v5785_v43 = vpop.f32.mrb[34].mxu1 }
 0x56a   : > { %1989 = vst.msk [vmem:[#allocation2 + $0x58] sm:$0xff] %vm1412_vm2, %v5785_v43  ;;  %v1950_v26 = vpop.f32.mrb[35].mxu1 }
 0x56b   : > { %1987 = vst.msk [vmem:[#allocation2 + $0x48] sm:$0xff] %vm1412_vm2, %v1950_v26 }
 0x59c   : > { %v5804_v48 = vpop.f32.mrb[28].mxu0 }
 0x59d   : > { %v2088_v59 = vpop.f32.mrb[29].mxu0  ;;  %v7616_v5 = vmul.f32 0.35355338, %v5804_v48 }
 0x59e   : > { %v7614_v46 = vmul.f32 0.35355338, %v2088_v59  ;;  %v5805_v14 = vpop.f32.mrb[30].mxu0 }
 0x59f   : > { %v2091_v12 = vpop.f32.mrb[31].mxu0  ;;  %v7623_v21 = vmul.f32 0.35355338, %v5805_v14  ;;  %v2246_v47 = vsel %vm1607_vm3, %v7616_v5, -inf }
 0x5a0   : > { %v7618_v40 = vmul.f32 0.35355338, %v2091_v12  ;;  %v5788_v55 = vpop.f32.mrb[36].mxu1  ;;  %v2240_v58 = vsel %vm1607_vm3, %v7614_v46, -inf }
 0x5a1   : > { %1992 = vst.msk [vmem:[#allocation2 + $0x70] sm:$0xff] %vm1412_vm2, %v5788_v55  ;;  %v1963_v19 = vpop.f32.mrb[37].mxu1  ;;  %2241 = vmax.xlane.f32.xlu0 %v2240_v58  ;;  %v2249_v0 = vsel %vm1607_vm3, %v7623_v21, -inf }
 0x5a2   : > { %1990 = vst.msk [vmem:[#allocation2 + $0x60] sm:$0xff] %vm1412_vm2, %v1963_v19  ;;  %v5789_v60 = vpop.f32.mrb[38].mxu1  ;;  %v2243_v4 = vsel %vm1607_vm3, %v7618_v40, -inf }
 0x5a3   : > { %1993 = vst.msk [vmem:[#allocation2 + $0x78] sm:$0xff] %vm1412_vm2, %v5789_v60  ;;  %v1966_v13 = vpop.f32.mrb[39].mxu1  ;;  %2244 = vmax.xlane.f32.xlu1 %v2243_v4 }
 0x5a4   : > { %1991 = vst.msk [vmem:[#allocation2 + $0x68] sm:$0xff] %vm1412_vm2, %v1966_v13 }
 0x5a5   : > { %2247 = vmax.xlane.f32.xlu0 %v2246_v47 }
 0x5a7   : > { %2250 = vmax.xlane.f32.xlu1 %v2249_v0 }
 0x5a8   : > { %v7634_v53 = vpop.f32.mrb[40].mxu1 }
 0x5a9   : > { %v7636_v56 = vpop.f32.mrb[41].mxu1 }
 0x5aa   : > { %v7638_v18 = vpop.f32.mrb[42].mxu1 }
 0x5ab   : > { %v7640_v41 = vpop.f32.mrb[43].mxu1  ;;  %v7689_v0 = vmul.f32 0.35355338, %v7638_v18 }
 0x5ac   : > { %v7700_v18 = vmul.f32 0.35355338, %v7640_v41 }
 0x5ae   : > { %v2255_v41 = vsel %vm1607_vm3, %v7700_v18, -inf }
 0x5b0   : > { %v7642_v38 = vpop.f32.mrb[44].mxu1 }
 0x5b1   : > { %v7644_v25 = vpop.f32.mrb[45].mxu1 }
 0x5b2   : > { %v7646_v15 = vpop.f32.mrb[46].mxu1 }
 0x5b3   : > { %v7648_v57 = vpop.f32.mrb[47].mxu1 }
 0x5b8   : > { %2414 = vrot.lane.b32.xlu1 %v7155_v33, %s6593_s15 }
 0x5bb   : > { %2412 = vrot.lane.b32.xlu0 %v7157_v34, %s6593_s15 }
 0x5bc   : > { %2418 = vrot.lane.b32.xlu1 %v7173_v49, %s6593_s15 }
 0x5bf   : > { %2416 = vrot.lane.b32.xlu0 %v7175_v52, %s6593_s15 }
 0x5c0   : > { %2503 = vrot.lane.b32.xlu1 %v7269_v39, %s6593_s15 }
 0x5c3   : > { %2501 = vrot.lane.b32.xlu0 %v7271_v44, %s6593_s15 }
 0x5c4   : > { %2679 = vrot.lane.b32.xlu1 %v7157_v34, %s6594_s17 }
 0x5c7   : > { %2507 = vrot.lane.b32.xlu0 %v7289_v42, %s6593_s15 }
 0x5c8   : > { %2505 = vrot.lane.b32.xlu1 %v7291_v23, %s6593_s15 }
 0x5cc   : > { %2681 = vrot.lane.b32.xlu1 %v7155_v33, %s6594_s17 }
 0x5ed   : > { %v2230_v45 = vpop.xlane.xlu0 %2229 }
 0x5ee   : > { %v2276_v2 = vsub.f32 %v7592_v31, %v2230_v45 }
 0x5ef   : > { %v2233_v51 = vpop.xlane.xlu1 %2232 }
 0x5f0   : > { %v2292_v32 = vmul.f32 1.442695, %v2276_v2  ;;  %v2277_v62 = vsub.f32 %v7598_v10, %v2233_v51 }
 0x5f1   : > { %v2236_v17 = vpop.xlane.xlu0 %2235 }
 0x5f2   : > { %v2278_v20 = vsub.f32 %v7595_v54, %v2236_v17  ;;  %v2294_v7 = vmul.f32 1.442695, %v2277_v62 }
 0x5f4   : > { %v2296_v29 = vmul.f32 1.442695, %v2278_v20 }
 0x5f5   : > { %v2239_v6 = vpop.xlane.xlu0 %2238 }
 0x5f6   : > { %6243 = vpow2.f32 %v2296_v29  ;;  %v2279_v30 = vsub.f32 %v7604_v36, %v2239_v6 }
 0x5f7   : > { %6245 = vpow2.f32 %v2292_v32  ;;  %v2261_v32 = vsel %vm1607_vm3, %v7689_v0, -inf }
 0x5f8   : > { %v2298_v63 = vmul.f32 1.442695, %v2279_v30  ;;  %v7712_v30 = vmul.f32 0.35355338, %v7634_v53 }
 0x5fa   : > { %6247 = vpow2.f32 %v2298_v63 }
 0x5fb   : > { %6249 = vpow2.f32 %v2294_v7 }
 0x600   : > { %v7666_v35 = vpop.eup %6243 }
 0x601   : > { %v2330_v31 = vsel %vm1607_vm3, %v7666_v35, 0.0  ;;  %v7670_v8 = vpop.eup %6245 }
 0x602   : > { %2331 = vadd.xlane.f32.xlu0 %v2330_v31  ;;  %v2324_v10 = vsel %vm1607_vm3, %v7670_v8, 0.0  ;;  %v7717_v31 = vmul.f32 0.35355338, %v7636_v56 }
 0x604   : > { %v7672_v54 = vpop.eup %6247  ;;  %v2252_v53 = vsel %vm1607_vm3, %v7717_v31, -inf }
 0x605   : > { %v2333_v36 = vsel %vm1607_vm3, %v7672_v54, 0.0  ;;  %v7678_v24 = vpop.eup %6249 }
 0x606   : > { %2325 = vadd.xlane.f32.xlu0 %v2324_v10  ;;  %2334 = vadd.xlane.f32.xlu1 %v2333_v36  ;;  %v2327_v3 = vsel %vm1607_vm3, %v7678_v24, 0.0  ;;  %v2258_v10 = vsel %vm1607_vm3, %v7712_v30, -inf  ;;  %v7722_v36 = vmul.f32 0.35355338, %v7642_v38  ;;  %v7740_v38 = vmul.f32 0.35355338, %v7646_v15 }
 0x60a   : > { %2328 = vadd.xlane.f32.xlu1 %v2327_v3  ;;  %v7727_v3 = vmul.f32 0.35355338, %v7644_v25  ;;  %v7743_v25 = vmul.f32 0.35355338, %v7648_v57 }
 0x60c   : > { %v2264_v56 = vsel %vm1607_vm3, %v7727_v3, -inf }
 0x62e   : > { %v2242_v1 = vpop.xlane.xlu0 %2241 }
 0x62f   : > { %v2280_v43 = vsub.f32 %v7614_v46, %v2242_v1  ;;  %v2270_v1 = vsel %vm1607_vm3, %v7722_v36, -inf }
 0x630   : > { %v2245_v11 = vpop.xlane.xlu1 %2244 }
 0x631   : > { %v2281_v26 = vsub.f32 %v7618_v40, %v2245_v11  ;;  %v2300_v55 = vmul.f32 1.442695, %v2280_v43  ;;  %v2273_v11 = vsel %vm1607_vm3, %v7740_v38, -inf  ;;  %v2267_v43 = vsel %vm1607_vm3, %v7743_v25, -inf }
 0x632   : > { %v2248_v48 = vpop.xlane.xlu0 %2247 }
 0x633   : > { %v2302_v59 = vmul.f32 1.442695, %v2281_v26  ;;  %v2282_v14 = vsub.f32 %v7616_v5, %v2248_v48 }
 0x634   : > { %v2251_v12 = vpop.xlane.xlu1 %2250 }
 0x635   : > { %6251 = vpow2.f32 %v2302_v59  ;;  %v2304_v58 = vmul.f32 1.442695, %v2282_v14  ;;  %v2283_v19 = vsub.f32 %v7623_v21, %v2251_v12 }
 0x636   : > { %v2413_v60 = vpop.permute.xlu0 %2412 }
 0x637   : > { %6253 = vpow2.f32 %v2304_v58  ;;  %5822 = vmatprep.subr.bf16.mxu0 %v2413_v60  ;;  %v2306_v13 = vmul.f32 1.442695, %v2283_v19 }
 0x638   : > { %v2415_v4 = vpop.permute.xlu1 %2414  ;;  %5823 = vmatpush3.bf16.msra.mxu0 %v2413_v60  ;;  %6255 = vpow2.f32 %v2300_v55 }
 0x639   : > { %5824 = vmatprep.subr.bf16.mxu0 %v2415_v4  ;;  %6257 = vpow2.f32 %v2306_v13 }
 0x63a   : > { %v2417_v46 = vpop.permute.xlu0 %2416 }
 0x63c   : > { %v2419_v40 = vpop.permute.xlu1 %2418  ;;  %5825 = vmatpush3.bf16.msra.mxu0 %v2415_v4 }
 0x63d   : > { %5826 = vmatprep.subr.bf16.mxu0 %v2417_v46 }
 0x63e   : > { %v2502_v5 = vpop.permute.xlu0 %2501 }
 0x63f   : > { %v7686_v47 = vpop.eup %6251  ;;  %5838 = vmatprep.subr.bf16.mxu1 %v2502_v5 }
 0x640   : > { %v2504_v21 = vpop.permute.xlu1 %2503  ;;  %5827 = vmatpush3.bf16.msra.mxu0 %v2417_v46  ;;  %5839 = vmatpush3.bf16.msra.mxu1 %v2502_v5  ;;  %v2339_v45 = vsel %vm1607_vm3, %v7686_v47, 0.0 }
 0x641   : > { %v7693_v2 = vpop.eup %6253  ;;  %2340 = vadd.xlane.f32.xlu1 %v2339_v45  ;;  %5828 = vmatprep.subr.bf16.mxu0 %v2419_v40 }
 0x642   : > { %5840 = vmatprep.subr.bf16.mxu1 %v2504_v21  ;;  %v2342_v51 = vsel %vm1607_vm3, %v7693_v2, 0.0  ;;  %v7697_v17 = vpop.eup %6255  ;;  %v2508_v7 = vpop.permute.xlu0 %2507 }
 0x643   : > { %2343 = vadd.xlane.f32.xlu0 %v2342_v51  ;;  %v2336_v62 = vsel %vm1607_vm3, %v7697_v17, 0.0  ;;  %v7707_v29 = vpop.eup %6257 }
 0x644   : > { %v2680_v20 = vpop.permute.xlu1 %2679  ;;  %5829 = vmatpush3.bf16.msra.mxu0 %v2419_v40  ;;  %5841 = vmatpush3.bf16.msra.mxu1 %v2504_v21  ;;  %v2345_v63 = vsel %vm1607_vm3, %v7707_v29, 0.0 }
 0x645   : > { %2262 = vmax.xlane.f32.xlu1 %v2261_v32  ;;  %6070 = vmatprep.subr.msk.bf16.mxu0 %vm1412_vm2, %v2680_v20  ;;  %v2700_v5 = vsel %vm1412_vm2, %v2680_v20, 0 }
 0x647   : > { %2337 = vadd.xlane.f32.xlu0 %v2336_v62 }
 0x648   : > { %v2506_v6 = vpop.permute.xlu1 %2505 }
 0x649   : > { %2256 = vmax.xlane.f32.xlu1 %v2255_v41  ;;  %5842 = vmatprep.subr.bf16.mxu1 %v2506_v6 }
 0x64a   : > { %5843 = vmatpush3.bf16.msra.mxu1 %v2506_v6 }
 0x64b   : > { %2346 = vadd.xlane.f32.xlu0 %v2345_v63  ;;  %5844 = vmatprep.subr.bf16.mxu1 %v2508_v7 }
 0x64c   : > { %v2682_v26 = vpop.permute.xlu1 %2681 }
 0x64d   : > { %v2703_v21 = vsel %vm1412_vm2, %v2682_v26, 0 }
 0x64e   : > { %5845 = vmatpush3.bf16.msra.mxu1 %v2508_v7 }
 0x64f   : > { %2259 = vmax.xlane.f32.xlu0 %v2258_v10 }
 0x653   : > { %2253 = vmax.xlane.f32.xlu0 %v2252_v53 }
 0x657   : > { %2271 = vmax.xlane.f32.xlu0 %v2270_v1 }
 0x65a   : > { %2784 = vrot.lane.b32.xlu1 %v7271_v44, %s6594_s17 }
 0x65b   : > { %2265 = vmax.xlane.f32.xlu0 %v2264_v56 }
 0x65e   : > { %2685 = vrot.lane.b32.xlu1 %v7173_v49, %s6594_s17 }
 0x671   : > { %2683 = vrot.lane.b32.xlu0 %v7175_v52, %s6594_s17 }
 0x682   : > { %2274 = vmax.xlane.f32.xlu1 %v2273_v11 }
 0x686   : > { %2268 = vmax.xlane.f32.xlu1 %v2267_v43 }
 0x68f   : > { %v2332_v48 = vpop.xlane.xlu0 %2331 }
 0x693   : > { %v2335_v59 = vpop.xlane.xlu1 %2334  ;;  %v2326_v14 = vpop.xlane.xlu0 %2325 }
 0x694   : > { %6259 = vrcp.f32 %v2335_v59 }
 0x695   : > { %6261 = vrcp.f32 %v2326_v14 }
 0x696   : > { %6263 = vrcp.f32 %v2332_v48 }
 0x697   : > { %2786 = vrot.lane.b32.xlu1 %v7269_v39, %s6594_s17  ;;  %v2329_v15 = vpop.xlane.xlu1 %2328 }
 0x698   : > { %6265 = vrcp.f32 %v2329_v15 }
 0x69e   : > { %v6260_v57 = vpop.eup %6259 }
 0x69f   : > { %v6262_v12 = vpop.eup %6261  ;;  %v2391_v19 = vmul.f32 %v6260_v57, %v7672_v54 }
 0x6a0   : > { %v6264_v55 = vpop.eup %6263  ;;  %v2388_v60 = vmul.f32 %v6262_v12, %v7670_v8 }
 0x6a1   : > { %v2390_v13 = vmul.f32 %v6264_v55, %v7666_v35 }
 0x6a2   : > { %v6266_v58 = vpop.eup %6265 }
 0x6a3   : > { %v2389_v4 = vmul.f32 %v6266_v58, %v7678_v24  ;;  %v2405_v40 = vpack.c.bf16 %v2391_v19, %v2390_v13 }
 0x6a5   : > { %v2404_v46 = vpack.c.bf16 %v2389_v4, %v2388_v60 }
 0x6a7   : > { %5830 = vmatprep.mubr.msk.bf16.mxu0 %vm1607_vm3, %v2404_v46 }
 0x6a8   : > { %5831 = vmatmul.mubr.msk.bf16.vlgmr.msra.gmra.mrb[32].mxu0 %vm1607_vm3, %v2405_v40 }
 0x6a9   : > { %5855 = vmatpush3.bf16.xpose.msra.mxu0 %v2700_v5 }
 0x6aa   : > { %6071 = vmatprep.subr.msk.bf16.mxu0 %vm1412_vm2, %v2682_v26 }
 0x6b1   : > { %5857 = vmatpush3.bf16.xpose.msra.mxu0 %v2703_v21 }
 0x6ce   : > { %v2341_v54 = vpop.xlane.xlu1 %2340 }
 0x6cf   : > { %6267 = vrcp.f32 %v2341_v54 }
 0x6d0   : > { %v2344_v8 = vpop.xlane.xlu0 %2343 }
 0x6d2   : > { %v2263_v45 = vpop.xlane.xlu1 %2262 }
 0x6d3   : > { %v2287_v10 = vsub.f32 %v7689_v0, %v2263_v45 }
 0x6d4   : > { %v2338_v24 = vpop.xlane.xlu0 %2337 }
 0x6d5   : > { %6269 = vrcp.f32 %v2338_v24  ;;  %v2314_v59 = vmul.f32 1.442695, %v2287_v10 }
 0x6d6   : > { %v2257_v35 = vpop.xlane.xlu1 %2256  ;;  %6271 = vrcp.f32 %v2344_v8 }
 0x6d7   : > { %v2285_v51 = vsub.f32 %v7700_v18, %v2257_v35 }
 0x6d8   : > { %v2347_v32 = vpop.xlane.xlu0 %2346 }
 0x6d9   : > { %v2310_v62 = vmul.f32 1.442695, %v2285_v51  ;;  %6273 = vrcp.f32 %v2347_v32  ;;  %v6268_v41 = vpop.eup %6267 }
 0x6da   : > { %v7761_v20 = vpop.permute.xlu1 %2784  ;;  %v2393_v56 = vmul.f32 %v6268_v41, %v7686_v47 }
 0x6db   : > { %6275 = vpow2.f32 %v2310_v62  ;;  %6074 = vmatprep.subr.msk.bf16.mxu1 %vm1412_vm2, %v7761_v20 }
 0x6dc   : > { %v2260_v6 = vpop.xlane.xlu0 %2259 }
 0x6dd   : > { %v2286_v7 = vsub.f32 %v7712_v30, %v2260_v6 }
 0x6de   : > { %v2686_v58 = vpop.permute.xlu1 %2685 }
 0x6df   : > { %v6270_v63 = vpop.eup %6269  ;;  %v2312_v53 = vmul.f32 1.442695, %v2286_v7  ;;  %v2709_v46 = vsel %vm1412_vm2, %v2686_v58, 0 }
 0x6e0   : > { %v2254_v1 = vpop.xlane.xlu0 %2253  ;;  %v2392_v18 = vmul.f32 %v6270_v63, %v7697_v17  ;;  %v6272_v11 = vpop.eup %6271 }
 0x6e1   : > { %6277 = vpow2.f32 %v2312_v53  ;;  %v2284_v43 = vsub.f32 %v7717_v31, %v2254_v1  ;;  %v2394_v15 = vmul.f32 %v6272_v11, %v7693_v2 }
 0x6e2   : > { %v2406_v26 = vpack.c.bf16 %v2393_v56, %v2392_v18 }
 0x6e3   : > { %v6274_v48 = vpop.eup %6273  ;;  %v2308_v14 = vmul.f32 1.442695, %v2284_v43 }
 0x6e4   : > { %5834 = vmatprep.mubr.msk.bf16.mxu0 %vm1607_vm3, %v2406_v26  ;;  %v2272_v30 = vpop.xlane.xlu0 %2271  ;;  %v2395_v0 = vmul.f32 %v6274_v48, %v7707_v29 }
 0x6e5   : > { %v7773_v57 = vpop.eup %6275  ;;  %6279 = vpow2.f32 %v2308_v14  ;;  %v2290_v40 = vsub.f32 %v7722_v36, %v2272_v30 }
 0x6e6   : > { %v2351_v47 = vsel %vm1607_vm3, %v7773_v57, 0.0  ;;  %v2407_v17 = vpack.c.bf16 %v2395_v0, %v2394_v15  ;;  %6281 = vpow2.f32 %v2314_v59 }
 0x6e7   : > { %2352 = vadd.xlane.f32.xlu0 %v2351_v47  ;;  %v2320_v5 = vmul.f32 1.442695, %v2290_v40 }
 0x6e8   : > { %5835 = vmatmul.mubr.msk.bf16.gmra.mrb[36].mxu0 %vm1607_vm3, %v2407_v17  ;;  %v2266_v31 = vpop.xlane.xlu0 %2265 }
 0x6e9   : > { %v2288_v21 = vsub.f32 %v7727_v3, %v2266_v31  ;;  %6283 = vpow2.f32 %v2320_v5 }
 0x6eb   : > { %v7778_v12 = vpop.eup %6277  ;;  %v2316_v54 = vmul.f32 1.442695, %v2288_v21 }
 0x6ec   : > { %v2684_v55 = vpop.permute.xlu0 %2683  ;;  %v2354_v2 = vsel %vm1607_vm3, %v7778_v12, 0.0 }
 0x6ed   : > { %2355 = vadd.xlane.f32.xlu1 %v2354_v2  ;;  %6072 = vmatprep.subr.msk.bf16.mxu0 %vm1412_vm2, %v2684_v55  ;;  %v2706_v29 = vsel %vm1412_vm2, %v2684_v55, 0  ;;  %6285 = vpow2.f32 %v2316_v54 }
 0x6ee   : > { %5859 = vmatpush3.bf16.xpose.msra.mxu0 %v2706_v29 }
 0x6ef   : > { %v7784_v19 = vpop.eup %6279  ;;  %6073 = vmatprep.subr.msk.bf16.mxu0 %vm1412_vm2, %v2686_v58  ;;  %v2805_v58 = vsel %vm1412_vm2, %v7761_v20, 0 }
 0x6f0   : > { %v2348_v60 = vsel %vm1607_vm3, %v7784_v19, 0.0  ;;  %v7789_v4 = vpop.eup %6281 }
 0x6f1   : > { %2349 = vadd.xlane.f32.xlu1 %v2348_v60  ;;  %v2357_v13 = vsel %vm1607_vm3, %v7789_v4, 0.0 }
 0x6f3   : > { %v7802_v32 = vpop.eup %6283 }
 0x6f4   : > { %v2366_v62 = vsel %vm1607_vm3, %v7802_v32, 0.0 }
 0x6f5   : > { %2358 = vadd.xlane.f32.xlu1 %v2357_v13 }
 0x6f6   : > { %5861 = vmatpush3.bf16.xpose.msra.mxu0 %v2709_v46 }
 0x6f7   : > { %v7806_v6 = vpop.eup %6285 }
 0x6f8   : > { %v2360_v3 = vsel %vm1607_vm3, %v7806_v6, 0.0 }
 0x6fd   : > { %2671 = vrot.lane.b32.xlu0 %v7313_v61, %s6594_s17 }
 0x706   : > { %2673 = vrot.lane.b32.xlu1 %v7311_v50, %s6594_s17 }
 0x70f   : > { %v2275_v8 = vpop.xlane.xlu1 %2274 }
 0x710   : > { %v2291_v45 = vsub.f32 %v7740_v38, %v2275_v8 }
 0x712   : > { %v2322_v24 = vmul.f32 1.442695, %v2291_v45 }
 0x713   : > { %v2269_v35 = vpop.xlane.xlu1 %2268 }
 0x714   : > { %v2289_v51 = vsub.f32 %v7743_v25, %v2269_v35  ;;  %6287 = vpow2.f32 %v2322_v24 }
 0x716   : > { %v2318_v36 = vmul.f32 1.442695, %v2289_v51 }
 0x717   : > { %v2787_v10 = vpop.permute.xlu1 %2786 }
 0x718   : > { %6289 = vpow2.f32 %v2318_v36 }
 0x71c   : > { %2367 = vadd.xlane.f32.xlu0 %v2366_v62 }
 0x71e   : > { %v7810_v38 = vpop.eup %6287 }
 0x71f   : > { %v2369_v25 = vsel %vm1607_vm3, %v7810_v38, 0.0 }
 0x720   : > { %2361 = vadd.xlane.f32.xlu0 %v2360_v3 }
 0x722   : > { %v7814_v41 = vpop.eup %6289 }
 0x723   : > { %v2363_v7 = vsel %vm1607_vm3, %v7814_v41, 0.0 }
 0x724   : > { %2370 = vadd.xlane.f32.xlu0 %v2369_v25 }
 0x72a   : > { %2364 = vadd.xlane.f32.xlu1 %v2363_v7 }
 0x73a   : > { %2788 = vrot.lane.b32.xlu0 %v7291_v23, %s6594_s17 }
 0x73b   : > { %2790 = vrot.lane.b32.xlu1 %v7289_v42, %s6594_s17 }
 0x73e   : > { %2776 = vrot.lane.b32.xlu0 %v7332_v37, %s6594_s17 }
 0x73f   : > { %2778 = vrot.lane.b32.xlu1 %v7330_v16, %s6594_s17 }
 0x742   : > { %2675 = vrot.lane.b32.xlu0 %v7323_v28, %s6594_s17 }
 0x743   : > { %2677 = vrot.lane.b32.xlu1 %v7321_v9, %s6594_s17 }
 0x746   : > { %2780 = vrot.lane.b32.xlu0 %v7340_v27, %s6594_s17 }
 0x747   : > { %2782 = vrot.lane.b32.xlu1 %v7338_v22, %s6594_s17 }
 0x774   : > { %v2353_v63 = vpop.xlane.xlu0 %2352 }
 0x775   : > { %6291 = vrcp.f32 %v2353_v63 }
 0x778   : > { %v2672_v53 = vpop.permute.xlu0 %2671 }
 0x779   : > { %5862 = vmatprep.mubr.msk.bf16.mxu0 %vm1412_vm2, %v2672_v53 }
 0x77a   : > { %v2356_v1 = vpop.xlane.xlu1 %2355 }
 0x77b   : > { %v7835_v18 = vpop.f32.mrb[32].mxu0 }
 0x77c   : > { %v7837_v56 = vpop.f32.mrb[33].mxu0 }
 0x77d   : > { %v7839_v11 = vpop.f32.mrb[34].mxu0 }
 0x77e   : > { %v7841_v43 = vpop.f32.mrb[35].mxu0  ;;  %v2350_v26 = vpop.xlane.xlu1 %2349 }
 0x77f   : > { %6293 = vrcp.f32 %v2350_v26  ;;  %v6292_v14 = vpop.eup %6291 }
 0x780   : > { %6295 = vrcp.f32 %v2356_v1  ;;  %v2397_v0 = vmul.f32 %v6292_v14, %v7773_v57  ;;  %v2808_v57 = vsel %vm1412_vm2, %v2787_v10, 0 }
 0x782   : > { %v2359_v48 = vpop.xlane.xlu1 %2358 }
 0x783   : > { %6297 = vrcp.f32 %v2359_v48 }
 0x786   : > { %v2674_v59 = vpop.permute.xlu1 %2673 }
 0x787   : > { %5863 = vmatmul.mubr.msk.bf16.vlgmr.msra.gmra.mrb[40].mxu0 %vm1412_vm2, %v2674_v59 }
 0x789   : > { %v6294_v30 = vpop.eup %6293 }
 0x78a   : > { %v2396_v15 = vmul.f32 %v6294_v30, %v7784_v19  ;;  %v6296_v47 = vpop.eup %6295 }
 0x78b   : > { %v2398_v55 = vmul.f32 %v6296_v47, %v7778_v12 }
 0x78c   : > { %v2408_v17 = vpack.c.bf16 %v2397_v0, %v2396_v15 }
 0x78d   : > { %v6298_v31 = vpop.eup %6297 }
 0x78e   : > { %v2399_v2 = vmul.f32 %v6298_v31, %v7789_v4  ;;  %5846 = vmatprep.mubr.msk.bf16.mxu1 %vm1607_vm3, %v2408_v17 }
 0x790   : > { %v2409_v29 = vpack.c.bf16 %v2399_v2, %v2398_v55 }
 0x792   : > { %5847 = vmatmul.mubr.msk.bf16.vlgmr.msra.gmra.mrb[48].mxu1 %vm1607_vm3, %v2409_v29 }
 0x793   : > { %5871 = vmatpush3.bf16.xpose.msra.mxu1 %v2805_v58 }
 0x794   : > { %6075 = vmatprep.subr.msk.bf16.mxu1 %vm1412_vm2, %v2787_v10 }
 0x79b   : > { %5873 = vmatpush3.bf16.xpose.msra.mxu1 %v2808_v57 }
 0x7a9   : > { %v2368_v19 = vpop.xlane.xlu0 %2367 }
 0x7ad   : > { %v2362_v60 = vpop.xlane.xlu0 %2361 }
 0x7b1   : > { %v2371_v13 = vpop.xlane.xlu0 %2370 }
 0x7b2   : > { %6299 = vrcp.f32 %v2371_v13 }
 0x7b3   : > { %6301 = vrcp.f32 %v2362_v60 }
 0x7b4   : > { %6303 = vrcp.f32 %v2368_v19 }
 0x7b5   : > { %v2789_v12 = vpop.permute.xlu0 %2788 }
 0x7b6   : > { %6076 = vmatprep.subr.msk.bf16.mxu1 %vm1412_vm2, %v2789_v12  ;;  %v2811_v4 = vsel %vm1412_vm2, %v2789_v12, 0 }
 0x7b7   : > { %v2365_v46 = vpop.xlane.xlu1 %2364  ;;  %5875 = vmatpush3.bf16.xpose.msra.mxu1 %v2811_v4 }
 0x7b8   : > { %6305 = vrcp.f32 %v2365_v46 }
 0x7b9   : > { %v2777_v20 = vpop.permute.xlu0 %2776 }
 0x7bb   : > { %v7856_v40 = vpop.f32.mrb[36].mxu0  ;;  %v2791_v5 = vpop.permute.xlu1 %2790 }
 0x7bc   : > { %v7858_v21 = vpop.f32.mrb[37].mxu0  ;;  %6077 = vmatprep.subr.msk.bf16.mxu1 %vm1412_vm2, %v2791_v5  ;;  %v2814_v24 = vsel %vm1412_vm2, %v2791_v5, 0  ;;  %v6300_v35 = vpop.eup %6299 }
 0x7bd   : > { %v7861_v54 = vpop.f32.mrb[38].mxu0  ;;  %v2676_v8 = vpop.permute.xlu0 %2675  ;;  %v2403_v25 = vmul.f32 %v6300_v35, %v7810_v38 }
 0x7be   : > { %v7863_v45 = vpop.f32.mrb[39].mxu0  ;;  %5866 = vmatprep.mubr.msk.bf16.mxu0 %vm1412_vm2, %v2676_v8  ;;  %v6302_v36 = vpop.eup %6301 }
 0x7bf   : > { %v2779_v51 = vpop.permute.xlu1 %2778  ;;  %5877 = vmatpush3.bf16.xpose.msra.mxu1 %v2814_v24  ;;  %v6304_v62 = vpop.eup %6303  ;;  %v2400_v63 = vmul.f32 %v6302_v36, %v7806_v6 }
 0x7c0   : > { %v2402_v53 = vmul.f32 %v6304_v62, %v7802_v32 }
 0x7c1   : > { %v2781_v48 = vpop.permute.xlu0 %2780 }
 0x7c2   : > { %v6306_v3 = vpop.eup %6305  ;;  %v2411_v26 = vpack.c.bf16 %v2403_v25, %v2402_v53 }
 0x7c3   : > { %v2678_v7 = vpop.permute.xlu1 %2677  ;;  %v2401_v10 = vmul.f32 %v6306_v3, %v7814_v41 }
 0x7c4   : > { %5867 = vmatmul.mubr.msk.bf16.gmra.mrb[44].mxu0 %vm1412_vm2, %v2678_v7 }
 0x7c5   : > { %v2410_v1 = vpack.c.bf16 %v2401_v10, %v2400_v63 }
 0x7c7   : > { %5850 = vmatprep.mubr.msk.bf16.mxu1 %vm1607_vm3, %v2410_v1  ;;  %v2783_v6 = vpop.permute.xlu1 %2782 }
 0x7c8   : > { %5851 = vmatmul.mubr.msk.bf16.gmra.mrb[52].mxu1 %vm1607_vm3, %v2411_v26 }
 0x7c9   : > { %5878 = vmatprep.mubr.msk.bf16.mxu1 %vm1412_vm2, %v2777_v20 }
 0x7d0   : > { %5879 = vmatmul.mubr.msk.bf16.vlgmr.msra.gmra.mrb[56].mxu1 %vm1412_vm2, %v2779_v51 }
 0x7d1   : > { %5882 = vmatprep.mubr.msk.bf16.mxu1 %vm1412_vm2, %v2781_v48 }
 0x7d8   : > { %5883 = vmatmul.mubr.msk.bf16.gmra.mrb[60].mxu1 %vm1412_vm2, %v2783_v6 }
 0x85a   : > { %v5864_v38 = vpop.f32.mrb[40].mxu0 }
 0x85b   : > { %v2745_v41 = vpop.f32.mrb[41].mxu0  ;;  %v7880_v30 = vmul.f32 0.35355338, %v5864_v38 }
 0x85c   : > { %v7878_v59 = vmul.f32 0.35355338, %v2745_v41  ;;  %v5865_v32 = vpop.f32.mrb[42].mxu0 }
 0x85d   : > { %v2748_v14 = vpop.f32.mrb[43].mxu0  ;;  %v7888_v17 = vmul.f32 0.35355338, %v5865_v32  ;;  %v2903_v31 = vsel %vm1607_vm3, %v7880_v30, -inf }
 0x85e   : > { %v7882_v15 = vmul.f32 0.35355338, %v2748_v14  ;;  %v2897_v0 = vsel %vm1607_vm3, %v7878_v59, -inf }
 0x85f   : > { %2898 = vmax.xlane.f32.xlu0 %v2897_v0  ;;  %v2906_v29 = vsel %vm1607_vm3, %v7888_v17, -inf }
 0x860   : > { %v2900_v47 = vsel %vm1607_vm3, %v7882_v15, -inf }
 0x861   : > { %2901 = vmax.xlane.f32.xlu1 %v2900_v47 }
 0x863   : > { %2904 = vmax.xlane.f32.xlu0 %v2903_v31 }
 0x865   : > { %v7892_v55 = vpop.f32.mrb[48].mxu1 }
 0x866   : > { %v7894_v2 = vpop.f32.mrb[49].mxu1 }
 0x867   : > { %v7898_v58 = vpop.f32.mrb[50].mxu1  ;;  %2907 = vmax.xlane.f32.xlu0 %v2906_v29 }
 0x868   : > { %v7900_v57 = vpop.f32.mrb[51].mxu1 }
 0x897   : > { %v5868_v19 = vpop.f32.mrb[44].mxu0 }
 0x898   : > { %v2761_v60 = vpop.f32.mrb[45].mxu0  ;;  %v7904_v46 = vmul.f32 0.35355338, %v5868_v19 }
 0x899   : > { %v7902_v13 = vmul.f32 0.35355338, %v2761_v60  ;;  %v5869_v12 = vpop.f32.mrb[46].mxu0 }
 0x89a   : > { %v2764_v4 = vpop.f32.mrb[47].mxu0  ;;  %v7914_v35 = vmul.f32 0.35355338, %v5869_v12  ;;  %v2915_v3 = vsel %vm1607_vm3, %v7904_v46, -inf }
 0x89b   : > { %v7906_v20 = vmul.f32 0.35355338, %v2764_v4  ;;  %v7908_v5 = vpop.f32.mrb[52].mxu1  ;;  %v2909_v8 = vsel %vm1607_vm3, %v7902_v13, -inf }
 0x89c   : > { %9167 = vst [vmem:[#allocation9_spill] sm:$0xff] %v7908_v5  ;;  %v7912_v24 = vpop.f32.mrb[53].mxu1  ;;  %2910 = vmax.xlane.f32.xlu0 %v2909_v8  ;;  %v2918_v25 = vsel %vm1607_vm3, %v7914_v35, -inf }
 0x89d   : > { %v7916_v51 = vpop.f32.mrb[54].mxu1  ;;  %v2912_v36 = vsel %vm1607_vm3, %v7906_v20, -inf }
 0x89e   : > { %9168 = vst [vmem:[#allocation10_spill] sm:$0xff] %v7916_v51  ;;  %v7920_v62 = vpop.f32.mrb[55].mxu1  ;;  %2913 = vmax.xlane.f32.xlu1 %v2912_v36 }
 0x89f   : > { %9169 = vst [vmem:[#allocation11_spill] sm:$0xff] %v7920_v62 }
 0x8a0   : > { %2916 = vmax.xlane.f32.xlu0 %v2915_v3 }
 0x8a2   : > { %2919 = vmax.xlane.f32.xlu1 %v2918_v25 }
 0x8a3   : > { %v7926_v7 = vpop.f32.mrb[56].mxu1 }
 0x8a4   : > { %v7928_v63 = vpop.f32.mrb[57].mxu1 }
 0x8a5   : > { %v7930_v10 = vpop.f32.mrb[58].mxu1 }
 0x8a6   : > { %v7932_v53 = vpop.f32.mrb[59].mxu1 }
 0x8ab   : > { %v7934_v1 = vpop.f32.mrb[60].mxu1 }
 0x8ac   : > { %v7936_v26 = vpop.f32.mrb[61].mxu1 }
 0x8ad   : > { %v7938_v48 = vpop.f32.mrb[62].mxu1 }
 0x8ae   : > { %v7940_v6 = vpop.f32.mrb[63].mxu1 }
 0x8b3   : > { %3083 = vrot.lane.b32.xlu1 %v7155_v33, %s6595_s29 }
 0x8b6   : > { %3081 = vrot.lane.b32.xlu0 %v7157_v34, %s6595_s29 }
 0x8b7   : > { %3087 = vrot.lane.b32.xlu1 %v7173_v49, %s6595_s29 }
 0x8ba   : > { %3085 = vrot.lane.b32.xlu0 %v7175_v52, %s6595_s29 }
 0x8bb   : > { %3172 = vrot.lane.b32.xlu1 %v7269_v39, %s6595_s29 }
 0x8be   : > { %3170 = vrot.lane.b32.xlu0 %v7271_v44, %s6595_s29 }
 0x8bf   : > { %3348 = vrot.lane.b32.xlu1 %v7157_v34, %s6596_s1 }
 0x8c2   : > { %3176 = vrot.lane.b32.xlu0 %v7289_v42, %s6595_s29 }
 0x8c3   : > { %3174 = vrot.lane.b32.xlu1 %v7291_v23, %s6595_s29 }
 0x8c6   : > { %3352 = vrot.lane.b32.xlu0 %v7175_v52, %s6596_s1 }
 0x8c7   : > { %3350 = vrot.lane.b32.xlu1 %v7155_v33, %s6596_s1 }
 0x8cb   : > { %3453 = vrot.lane.b32.xlu1 %v7271_v44, %s6596_s1 }
 0x8cf   : > { %3354 = vrot.lane.b32.xlu1 %v7173_v49, %s6596_s1 }
 0x8d3   : > { %3455 = vrot.lane.b32.xlu1 %v7269_v39, %s6596_s1 }
 0x8ec   : > { %v2899_v38 = vpop.xlane.xlu0 %2898 }
 0x8ed   : > { %v2945_v41 = vsub.f32 %v7878_v59, %v2899_v38 }
 0x8ee   : > { %v2902_v32 = vpop.xlane.xlu1 %2901 }
 0x8ef   : > { %v2961_v47 = vmul.f32 1.442695, %v2945_v41  ;;  %v2946_v31 = vsub.f32 %v7882_v15, %v2902_v32 }
 0x8f0   : > { %v2905_v14 = vpop.xlane.xlu0 %2904 }
 0x8f1   : > { %v2947_v0 = vsub.f32 %v7880_v30, %v2905_v14  ;;  %v2963_v12 = vmul.f32 1.442695, %v2946_v31 }
 0x8f3   : > { %v2965_v29 = vmul.f32 1.442695, %v2947_v0 }
 0x8f4   : > { %v2908_v19 = vpop.xlane.xlu0 %2907 }
 0x8f5   : > { %6307 = vpow2.f32 %v2965_v29  ;;  %v2948_v60 = vsub.f32 %v7888_v17, %v2908_v19 }
 0x8f6   : > { %6309 = vpow2.f32 %v2961_v47 }
 0x8f7   : > { %v2967_v4 = vmul.f32 1.442695, %v2948_v60 }
 0x8f9   : > { %6311 = vpow2.f32 %v2967_v4 }
 0x8fa   : > { %6313 = vpow2.f32 %v2963_v12 }
 0x8ff   : > { %v7966_v8 = vpop.eup %6307 }
 0x900   : > { %v2999_v59 = vsel %vm1607_vm3, %v7966_v8, 0.0  ;;  %v7970_v36 = vpop.eup %6309 }
 0x901   : > { %3000 = vadd.xlane.f32.xlu0 %v2999_v59  ;;  %v2993_v15 = vsel %vm1607_vm3, %v7970_v36, 0.0 }
 0x903   : > { %v7972_v30 = vpop.eup %6311 }
 0x904   : > { %v3002_v17 = vsel %vm1607_vm3, %v7972_v30, 0.0  ;;  %v7978_v3 = vpop.eup %6313 }
 0x905   : > { %2994 = vadd.xlane.f32.xlu0 %v2993_v15  ;;  %3003 = vadd.xlane.f32.xlu1 %v3002_v17  ;;  %v2996_v25 = vsel %vm1607_vm3, %v7978_v3, 0.0 }
 0x909   : > { %2997 = vadd.xlane.f32.xlu1 %v2996_v25  ;;  %v7989_v25 = vmul.f32 0.35355338, %v7930_v10  ;;  %v8000_v10 = vmul.f32 0.35355338, %v7932_v53  ;;  %v8013_v53 = vmul.f32 0.35355338, %v7938_v48 }
 0x929   : > { %v2911_v38 = vpop.xlane.xlu0 %2910 }
 0x92a   : > { %v2949_v32 = vsub.f32 %v7902_v13, %v2911_v38 }
 0x92b   : > { %v2914_v41 = vpop.xlane.xlu1 %2913 }
 0x92c   : > { %v2950_v14 = vsub.f32 %v7906_v20, %v2914_v41  ;;  %v2969_v19 = vmul.f32 1.442695, %v2949_v32 }
 0x92d   : > { %v2917_v0 = vpop.xlane.xlu0 %2916 }
 0x92e   : > { %v2971_v47 = vmul.f32 1.442695, %v2950_v14  ;;  %v2951_v31 = vsub.f32 %v7904_v46, %v2917_v0 }
 0x92f   : > { %v2920_v29 = vpop.xlane.xlu1 %2919 }
 0x930   : > { %6315 = vpow2.f32 %v2971_v47  ;;  %v2973_v60 = vmul.f32 1.442695, %v2951_v31  ;;  %v2952_v12 = vsub.f32 %v7914_v35, %v2920_v29  ;;  %v2930_v47 = vsel %vm1607_vm3, %v7989_v25, -inf }
 0x931   : > { %v3082_v4 = vpop.permute.xlu0 %3081 }
 0x932   : > { %6317 = vpow2.f32 %v2973_v60  ;;  %5886 = vmatprep.subr.bf16.mxu0 %v3082_v4  ;;  %v2975_v15 = vmul.f32 1.442695, %v2952_v12  ;;  %v2924_v60 = vsel %vm1607_vm3, %v8000_v10, -inf  ;;  %v8018_v12 = vmul.f32 0.35355338, %v7926_v7 }
 0x933   : > { %v3084_v59 = vpop.permute.xlu1 %3083  ;;  %5887 = vmatpush3.bf16.msra.mxu0 %v3082_v4  ;;  %6319 = vpow2.f32 %v2969_v19 }
 0x934   : > { %5888 = vmatprep.subr.bf16.mxu0 %v3084_v59  ;;  %6321 = vpow2.f32 %v2975_v15  ;;  %v8023_v15 = vmul.f32 0.35355338, %v7940_v6  ;;  %v2927_v7 = vsel %vm1607_vm3, %v8018_v12, -inf  ;;  %v8039_v6 = vmul.f32 0.35355338, %v7934_v1 }
 0x935   : > { %v3086_v13 = vpop.permute.xlu0 %3085 }
 0x937   : > { %v3088_v20 = vpop.permute.xlu1 %3087  ;;  %5889 = vmatpush3.bf16.msra.mxu0 %v3084_v59 }
 0x938   : > { %5890 = vmatprep.subr.bf16.mxu0 %v3086_v13 }
 0x939   : > { %v3171_v46 = vpop.permute.xlu0 %3170 }
 0x93a   : > { %v7986_v17 = vpop.eup %6315  ;;  %5902 = vmatprep.subr.bf16.mxu1 %v3171_v46 }
 0x93b   : > { %v3173_v35 = vpop.permute.xlu1 %3172  ;;  %5891 = vmatpush3.bf16.msra.mxu0 %v3086_v13  ;;  %5903 = vmatpush3.bf16.msra.mxu1 %v3171_v46  ;;  %v3008_v38 = vsel %vm1607_vm3, %v7986_v17, 0.0  ;;  %v2942_v13 = vsel %vm1607_vm3, %v8013_v53, -inf }
 0x93c   : > { %v7993_v41 = vpop.eup %6317  ;;  %3009 = vadd.xlane.f32.xlu1 %v3008_v38  ;;  %5892 = vmatprep.subr.bf16.mxu0 %v3088_v20  ;;  %v8044_v38 = vmul.f32 0.35355338, %v7936_v26 }
 0x93d   : > { %5904 = vmatprep.subr.bf16.mxu1 %v3173_v35  ;;  %v3011_v32 = vsel %vm1607_vm3, %v7993_v41, 0.0  ;;  %v7997_v14 = vpop.eup %6319  ;;  %v3177_v4 = vpop.permute.xlu0 %3176 }
 0x93e   : > { %3012 = vadd.xlane.f32.xlu0 %v3011_v32  ;;  %v3005_v31 = vsel %vm1607_vm3, %v7997_v14, 0.0  ;;  %v8010_v29 = vpop.eup %6321  ;;  %v2939_v32 = vsel %vm1607_vm3, %v8039_v6, -inf }
 0x93f   : > { %v8002_v0 = vpop.permute.xlu1 %3348  ;;  %5893 = vmatpush3.bf16.msra.mxu0 %v3088_v20  ;;  %5905 = vmatpush3.bf16.msra.mxu1 %v3173_v35  ;;  %v3014_v59 = vsel %vm1607_vm3, %v8010_v29, 0.0  ;;  %v8028_v20 = vmul.f32 0.35355338, %v7928_v63  ;;  %v2936_v35 = vsel %vm1607_vm3, %v8023_v15, -inf }
 0x940   : > { %2931 = vmax.xlane.f32.xlu1 %v2930_v47  ;;  %6078 = vmatprep.subr.msk.bf16.mxu0 %vm1412_vm2, %v8002_v0  ;;  %v2933_v47 = vsel %vm1607_vm3, %v8044_v38, -inf }
 0x941   : > { %v2921_v63 = vsel %vm1607_vm3, %v8028_v20, -inf }
 0x942   : > { %3006 = vadd.xlane.f32.xlu0 %v3005_v31  ;;  %v3353_v31 = vpop.permute.xlu0 %3352 }
 0x943   : > { %v3175_v19 = vpop.permute.xlu1 %3174 }
 0x944   : > { %2925 = vmax.xlane.f32.xlu1 %v2924_v60  ;;  %5906 = vmatprep.subr.bf16.mxu1 %v3175_v19 }
 0x945   : > { %5907 = vmatpush3.bf16.msra.mxu1 %v3175_v19 }
 0x946   : > { %3015 = vadd.xlane.f32.xlu0 %v3014_v59  ;;  %5908 = vmatprep.subr.bf16.mxu1 %v3177_v4 }
 0x947   : > { %v3351_v48 = vpop.permute.xlu1 %3350 }
 0x948   : > { %2943 = vmax.xlane.f32.xlu1 %v2942_v13 }
 0x949   : > { %5909 = vmatpush3.bf16.msra.mxu1 %v3177_v4 }
 0x94a   : > { %2928 = vmax.xlane.f32.xlu0 %v2927_v7 }
 0x94b   : > { %v8032_v46 = vpop.permute.xlu1 %3453 }
 0x94c   : > { %2937 = vmax.xlane.f32.xlu1 %v2936_v35  ;;  %6082 = vmatprep.subr.msk.bf16.mxu1 %vm1412_vm2, %v8032_v46 }
 0x94e   : > { %2922 = vmax.xlane.f32.xlu0 %v2921_v63 }
 0x94f   : > { %v3355_v1 = vpop.permute.xlu1 %3354 }
 0x952   : > { %2940 = vmax.xlane.f32.xlu0 %v2939_v32 }
 0x953   : > { %v8054_v19 = vpop.permute.xlu1 %3455 }
 0x956   : > { %2934 = vmax.xlane.f32.xlu0 %v2933_v47 }
 0x95d   : > { %3342 = vrot.lane.b32.xlu1 %v7311_v50, %s6596_s1 }
 0x96c   : > { %3340 = vrot.lane.b32.xlu0 %v7313_v61, %s6596_s1 }
 0x98e   : > { %v3001_v26 = vpop.xlane.xlu0 %3000 }
 0x992   : > { %v3004_v60 = vpop.xlane.xlu1 %3003  ;;  %v2995_v4 = vpop.xlane.xlu0 %2994 }
 0x993   : > { %6323 = vrcp.f32 %v3004_v60 }
 0x994   : > { %6325 = vrcp.f32 %v2995_v4 }
 0x995   : > { %6327 = vrcp.f32 %v3001_v26  ;;  %v3369_v26 = vsel %vm1412_vm2, %v8002_v0, 0 }
 0x996   : > { %v2998_v59 = vpop.xlane.xlu1 %2997 }
 0x997   : > { %6329 = vrcp.f32 %v2998_v59 }
 0x99d   : > { %v6324_v13 = vpop.eup %6323 }
 0x99e   : > { %v6326_v7 = vpop.eup %6325  ;;  %v3060_v50 = vmul.f32 %v6324_v13, %v7972_v30  ;;  %v3372_v30 = vsel %vm1412_vm2, %v3351_v48, 0 }
 0x99f   : > { %v6328_v35 = vpop.eup %6327  ;;  %v3057_v61 = vmul.f32 %v6326_v7, %v7970_v36  ;;  %v3375_v36 = vsel %vm1412_vm2, %v3353_v31, 0 }
 0x9a0   : > { %v3059_v47 = vmul.f32 %v6328_v35, %v7966_v8 }
 0x9a1   : > { %v6330_v63 = vpop.eup %6329 }
 0x9a2   : > { %v3058_v32 = vmul.f32 %v6330_v63, %v7978_v3  ;;  %v3074_v5 = vpack.c.bf16 %v3060_v50, %v3059_v47 }
 0x9a4   : > { %v3073_v51 = vpack.c.bf16 %v3058_v32, %v3057_v61 }
 0x9a6   : > { %5894 = vmatprep.mubr.msk.bf16.mxu0 %vm1607_vm3, %v3073_v51  ;;  %v3378_v51 = vsel %vm1412_vm2, %v3355_v1, 0 }
 0x9a7   : > { %5895 = vmatmul.mubr.msk.bf16.vlgmr.msra.gmra.mrb[48].mxu0 %vm1607_vm3, %v3074_v5 }
 0x9a8   : > { %5919 = vmatpush3.bf16.xpose.msra.mxu0 %v3369_v26 }
 0x9a9   : > { %6079 = vmatprep.subr.msk.bf16.mxu0 %vm1412_vm2, %v3351_v48 }
 0x9b0   : > { %5921 = vmatpush3.bf16.xpose.msra.mxu0 %v3372_v30 }
 0x9b1   : > { %6080 = vmatprep.subr.msk.bf16.mxu0 %vm1412_vm2, %v3353_v31 }
 0x9b8   : > { %5923 = vmatpush3.bf16.xpose.msra.mxu0 %v3375_v36 }
 0x9b9   : > { %6081 = vmatprep.subr.msk.bf16.mxu0 %vm1412_vm2, %v3355_v1 }
 0x9c0   : > { %5925 = vmatpush3.bf16.xpose.msra.mxu0 %v3378_v51 }
 0x9c9   : > { %v3010_v5 = vpop.xlane.xlu1 %3009 }
 0x9ca   : > { %6331 = vrcp.f32 %v3010_v5 }
 0x9cb   : > { %v3013_v8 = vpop.xlane.xlu0 %3012 }
 0x9cd   : > { %v2932_v3 = vpop.xlane.xlu1 %2931 }
 0x9ce   : > { %v2956_v35 = vsub.f32 %v7989_v25, %v2932_v3 }
 0x9cf   : > { %v3007_v0 = vpop.xlane.xlu0 %3006 }
 0x9d0   : > { %6333 = vrcp.f32 %v3007_v0  ;;  %v2983_v36 = vmul.f32 1.442695, %v2956_v35 }
 0x9d1   : > { %v2926_v60 = vpop.xlane.xlu1 %2925  ;;  %6335 = vrcp.f32 %v3013_v8 }
 0x9d2   : > { %v2954_v48 = vsub.f32 %v8000_v10, %v2926_v60 }
 0x9d3   : > { %v3016_v4 = vpop.xlane.xlu0 %3015 }
 0x9d4   : > { %v2979_v59 = vmul.f32 1.442695, %v2954_v48  ;;  %6337 = vrcp.f32 %v3016_v4  ;;  %v6332_v13 = vpop.eup %6331 }
 0x9d5   : > { %v3062_v32 = vmul.f32 %v6332_v13, %v7986_v17  ;;  %v2944_v51 = vpop.xlane.xlu1 %2943 }
 0x9d6   : > { %6339 = vpow2.f32 %v2979_v59 }
 0x9d7   : > { %v2929_v31 = vpop.xlane.xlu0 %2928 }
 0x9d8   : > { %v2955_v7 = vsub.f32 %v8018_v12, %v2929_v31 }
 0x9d9   : > { %v2938_v0 = vpop.xlane.xlu1 %2937 }
 0x9da   : > { %v6334_v1 = vpop.eup %6333  ;;  %v2981_v63 = vmul.f32 1.442695, %v2955_v7 }
 0x9db   : > { %v2923_v50 = vpop.xlane.xlu0 %2922  ;;  %v3061_v61 = vmul.f32 %v6334_v1, %v7997_v14  ;;  %v6336_v47 = vpop.eup %6335 }
 0x9dc   : > { %6341 = vpow2.f32 %v2981_v63  ;;  %v2953_v10 = vsub.f32 %v8028_v20, %v2923_v50  ;;  %v3063_v25 = vmul.f32 %v6336_v47, %v7993_v41  ;;  %v2960_v63 = vsub.f32 %v8013_v53, %v2944_v51 }
 0x9dd   : > { %v3075_v26 = vpack.c.bf16 %v3062_v32, %v3061_v61  ;;  %v3343_v4 = vpop.permute.xlu1 %3342  ;;  %v2958_v32 = vsub.f32 %v8023_v15, %v2938_v0 }
 0x9de   : > { %v6338_v30 = vpop.eup %6337  ;;  %v2977_v5 = vmul.f32 1.442695, %v2953_v10  ;;  %v2991_v61 = vmul.f32 1.442695, %v2960_v63 }
 0x9df   : > { %5898 = vmatprep.mubr.msk.bf16.mxu0 %vm1607_vm3, %v3075_v26  ;;  %v2941_v12 = vpop.xlane.xlu0 %2940  ;;  %v3064_v8 = vmul.f32 %v6338_v30, %v8010_v29  ;;  %v2987_v10 = vmul.f32 1.442695, %v2958_v32 }
 0x9e0   : > { %v8079_v3 = vpop.eup %6339  ;;  %6343 = vpow2.f32 %v2977_v5  ;;  %v2959_v7 = vsub.f32 %v8039_v6, %v2941_v12 }
 0x9e1   : > { %v3020_v17 = vsel %vm1607_vm3, %v8079_v3, 0.0  ;;  %v3076_v14 = vpack.c.bf16 %v3064_v8, %v3063_v25  ;;  %6345 = vpow2.f32 %v2983_v36 }
 0x9e2   : > { %3021 = vadd.xlane.f32.xlu0 %v3020_v17  ;;  %v2989_v1 = vmul.f32 1.442695, %v2959_v7 }
 0x9e3   : > { %5899 = vmatmul.mubr.msk.bf16.gmra.mrb[52].mxu0 %vm1607_vm3, %v3076_v14  ;;  %v2935_v20 = vpop.xlane.xlu0 %2934 }
 0x9e4   : > { %v2957_v35 = vsub.f32 %v8044_v38, %v2935_v20  ;;  %6347 = vpow2.f32 %v2989_v1 }
 0x9e6   : > { %v8084_v60 = vpop.eup %6341  ;;  %v2985_v50 = vmul.f32 1.442695, %v2957_v35 }
 0x9e7   : > { %v3341_v48 = vpop.permute.xlu0 %3340  ;;  %v3023_v41 = vsel %vm1607_vm3, %v8084_v60, 0.0 }
 0x9e8   : > { %3024 = vadd.xlane.f32.xlu1 %v3023_v41  ;;  %5926 = vmatprep.mubr.msk.bf16.mxu0 %vm1412_vm2, %v3341_v48  ;;  %6349 = vpow2.f32 %v2985_v50 }
 0x9e9   : > { %6351 = vpow2.f32 %v2991_v61 }
 0x9ea   : > { %v6344_v29 = vpop.eup %6343  ;;  %6353 = vpow2.f32 %v2987_v10 }
 0x9eb   : > { %5927 = vmatmul.mubr.msk.bf16.vlgmr.msra.gmra.mrb[56].mxu0 %vm1412_vm2, %v3343_v4  ;;  %v3017_v59 = vsel %vm1607_vm3, %v6344_v29, 0.0  ;;  %v6346_v31 = vpop.eup %6345 }
 0x9ec   : > { %3018 = vadd.xlane.f32.xlu1 %v3017_v59  ;;  %v3026_v13 = vsel %vm1607_vm3, %v6346_v31, 0.0 }
 0x9ee   : > { %v8100_v47 = vpop.eup %6347 }
 0x9ef   : > { %v3035_v6 = vsel %vm1607_vm3, %v8100_v47, 0.0 }
 0x9f0   : > { %3027 = vadd.xlane.f32.xlu1 %v3026_v13  ;;  %v3474_v13 = vsel %vm1412_vm2, %v8032_v46, 0 }
 0x9f2   : > { %v8104_v26 = vpop.eup %6349 }
 0x9f3   : > { %v8108_v53 = vpop.eup %6351 }
 0x9f4   : > { %v3038_v15 = vsel %vm1607_vm3, %v8108_v53, 0.0  ;;  %v8112_v38 = vpop.eup %6353 }
 0x9f5   : > { %v3032_v30 = vsel %vm1607_vm3, %v8112_v38, 0.0 }
 0x9f8   : > { %3457 = vrot.lane.b32.xlu0 %v7291_v23, %s6596_s1 }
 0xa01   : > { %3344 = vrot.lane.b32.xlu1 %v7323_v28, %s6596_s1  ;;  %v3029_v28 = vsel %vm1607_vm3, %v8104_v26, 0.0 }
 0xa17   : > { %3036 = vadd.xlane.f32.xlu0 %v3035_v6 }
 0xa1b   : > { %3030 = vadd.xlane.f32.xlu0 %v3029_v28 }
 0xa1f   : > { %3039 = vadd.xlane.f32.xlu0 %v3038_v15 }
 0xa25   : > { %3033 = vadd.xlane.f32.xlu1 %v3032_v30 }
 0xa35   : > { %3346 = vrot.lane.b32.xlu0 %v7321_v9, %s6596_s1 }
 0xa36   : > { %3459 = vrot.lane.b32.xlu1 %v7289_v42, %s6596_s1 }
 0xa39   : > { %3445 = vrot.lane.b32.xlu0 %v7332_v37, %s6596_s1 }
 0xa3a   : > { %3447 = vrot.lane.b32.xlu1 %v7330_v16, %s6596_s1 }
 0xa3d   : > { %3449 = vrot.lane.b32.xlu0 %v7340_v27, %s6596_s1 }
 0xa3e   : > { %3451 = vrot.lane.b32.xlu1 %v7338_v22, %s6596_s1 }
 0xa6f   : > { %v3022_v36 = vpop.xlane.xlu0 %3021 }
 0xa70   : > { %6355 = vrcp.f32 %v3022_v36 }
 0xa75   : > { %v3025_v51 = vpop.xlane.xlu1 %3024 }
 0xa79   : > { %v3019_v5 = vpop.xlane.xlu1 %3018 }
 0xa7a   : > { %6357 = vrcp.f32 %v3019_v5  ;;  %v8128_v9 = vpop.f32.mrb[48].mxu0  ;;  %v6356_v8 = vpop.eup %6355 }
 0xa7b   : > { %v8130_v12 = vpop.f32.mrb[49].mxu0  ;;  %6359 = vrcp.f32 %v3025_v51  ;;  %v3066_v14 = vmul.f32 %v6356_v8, %v8079_v3  ;;  %v3477_v3 = vsel %vm1412_vm2, %v8054_v19, 0 }
 0xa7c   : > { %v8132_v37 = vpop.f32.mrb[50].mxu0 }
 0xa7d   : > { %v8134_v25 = vpop.f32.mrb[51].mxu0  ;;  %v3028_v16 = vpop.xlane.xlu1 %3027 }
 0xa7e   : > { %6361 = vrcp.f32 %v3028_v16 }
 0xa81   : > { %v3345_v27 = vpop.permute.xlu1 %3344 }
 0xa82   : > { %5930 = vmatprep.mubr.msk.bf16.mxu0 %vm1412_vm2, %v3345_v27 }
 0xa84   : > { %v6358_v22 = vpop.eup %6357 }
 0xa85   : > { %v3065_v17 = vmul.f32 %v6358_v22, %v6344_v29  ;;  %v6360_v20 = vpop.eup %6359  ;;  %v3458_v29 = vpop.permute.xlu0 %3457 }
 0xa86   : > { %v3067_v41 = vmul.f32 %v6360_v20, %v8084_v60  ;;  %v3480_v60 = vsel %vm1412_vm2, %v3458_v29, 0 }
 0xa87   : > { %v3077_v0 = vpack.c.bf16 %v3066_v14, %v3065_v17 }
 0xa88   : > { %v6362_v48 = vpop.eup %6361 }
 0xa89   : > { %v3068_v4 = vmul.f32 %v6362_v48, %v6346_v31  ;;  %5910 = vmatprep.mubr.msk.bf16.mxu1 %vm1607_vm3, %v3077_v0 }
 0xa8b   : > { %v3078_v59 = vpack.c.bf16 %v3068_v4, %v3067_v41 }
 0xa8d   : > { %5911 = vmatmul.mubr.msk.bf16.vlgmr.msra.gmra.mrb[64].mxu1 %vm1607_vm3, %v3078_v59 }
 0xa8e   : > { %5935 = vmatpush3.bf16.xpose.msra.mxu1 %v3474_v13 }
 0xa8f   : > { %6083 = vmatprep.subr.msk.bf16.mxu1 %vm1412_vm2, %v8054_v19 }
 0xa96   : > { %5937 = vmatpush3.bf16.xpose.msra.mxu1 %v3477_v3 }
 0xa97   : > { %6084 = vmatprep.subr.msk.bf16.mxu1 %vm1412_vm2, %v3458_v29 }
 0xa9e   : > { %5939 = vmatpush3.bf16.xpose.msra.mxu1 %v3480_v60 }
 0xaa4   : > { %v3037_v31 = vpop.xlane.xlu0 %3036 }
 0xaa8   : > { %v3031_v7 = vpop.xlane.xlu0 %3030 }
 0xaac   : > { %v3040_v1 = vpop.xlane.xlu0 %3039 }
 0xaad   : > { %6363 = vrcp.f32 %v3040_v1 }
 0xaae   : > { %6365 = vrcp.f32 %v3031_v7 }
 0xaaf   : > { %6367 = vrcp.f32 %v3037_v31 }
 0xab0   : > { %v3347_v35 = vpop.permute.xlu0 %3346 }
 0xab1   : > { %5931 = vmatmul.mubr.msk.bf16.gmra.mrb[60].mxu0 %vm1412_vm2, %v3347_v35 }
 0xab2   : > { %v3034_v46 = vpop.xlane.xlu1 %3033 }
 0xab3   : > { %6369 = vrcp.f32 %v3034_v46 }
 0xab6   : > { %v8150_v63 = vpop.f32.mrb[52].mxu0  ;;  %v3460_v19 = vpop.permute.xlu1 %3459 }
 0xab7   : > { %v8152_v50 = vpop.f32.mrb[53].mxu0  ;;  %6085 = vmatprep.subr.msk.bf16.mxu1 %vm1412_vm2, %v3460_v19  ;;  %v3483_v61 = vsel %vm1412_vm2, %v3460_v19, 0  ;;  %v6364_v6 = vpop.eup %6363 }
 0xab8   : > { %v8156_v32 = vpop.f32.mrb[54].mxu0  ;;  %5941 = vmatpush3.bf16.xpose.msra.mxu1 %v3483_v61  ;;  %v6366_v28 = vpop.eup %6365  ;;  %v3072_v36 = vmul.f32 %v6364_v6, %v8108_v53 }
 0xab9   : > { %v8158_v10 = vpop.f32.mrb[55].mxu0  ;;  %v6368_v15 = vpop.eup %6367  ;;  %v3069_v5 = vmul.f32 %v6366_v28, %v8104_v26 }
 0xaba   : > { %v3071_v8 = vmul.f32 %v6368_v15, %v8100_v47  ;;  %v3446_v53 = vpop.permute.xlu0 %3445  ;;  %v3448_v59 = vpop.permute.xlu1 %3447 }
 0xabc   : > { %v3080_v0 = vpack.c.bf16 %v3072_v36, %v3071_v8 }
 0xabd   : > { %v6370_v30 = vpop.eup %6369 }
 0xabe   : > { %v5928_v51 = vpop.f32.mrb[56].mxu0  ;;  %v3070_v16 = vmul.f32 %v6370_v30, %v8112_v38  ;;  %v3450_v3 = vpop.permute.xlu0 %3449 }
 0xabf   : > { %v3414_v27 = vpop.f32.mrb[57].mxu0  ;;  %v3552_v48 = vmul.f32 0.35355338, %v5928_v51  ;;  %v3452_v29 = vpop.permute.xlu1 %3451 }
 0xac0   : > { %v3550_v22 = vmul.f32 0.35355338, %v3414_v27  ;;  %v5929_v17 = vpop.f32.mrb[58].mxu0  ;;  %v3079_v14 = vpack.c.bf16 %v3070_v16, %v3069_v5 }
 0xac1   : > { %v3417_v20 = vpop.f32.mrb[59].mxu0  ;;  %v3553_v47 = vmul.f32 0.35355338, %v5929_v17  ;;  %v3572_v38 = vsel %vm1607_vm3, %v3552_v48, -inf }
 0xac2   : > { %v3551_v41 = vmul.f32 0.35355338, %v3417_v20  ;;  %5914 = vmatprep.mubr.msk.bf16.mxu1 %vm1607_vm3, %v3079_v14  ;;  %v3566_v4 = vsel %vm1607_vm3, %v3550_v22, -inf }
 0xac3   : > { %3567 = vmax.xlane.f32.xlu0 %v3566_v4  ;;  %5915 = vmatmul.mubr.msk.bf16.gmra.mrb[68].mxu1 %vm1607_vm3, %v3080_v0  ;;  %v3575_v13 = vsel %vm1607_vm3, %v3553_v47, -inf }
 0xac4   : > { %5942 = vmatprep.mubr.msk.bf16.mxu1 %vm1412_vm2, %v3446_v53  ;;  %v3569_v26 = vsel %vm1607_vm3, %v3551_v41, -inf }
 0xac5   : > { %3570 = vmax.xlane.f32.xlu1 %v3569_v26 }
 0xac7   : > { %3573 = vmax.xlane.f32.xlu0 %v3572_v38 }
 0xacb   : > { %3576 = vmax.xlane.f32.xlu0 %v3575_v13  ;;  %5943 = vmatmul.mubr.msk.bf16.vlgmr.msra.gmra.mrb[72].mxu1 %vm1412_vm2, %v3448_v59 }
 0xacc   : > { %5946 = vmatprep.mubr.msk.bf16.mxu1 %vm1412_vm2, %v3450_v3 }
 0xad3   : > { %5947 = vmatmul.mubr.msk.bf16.gmra.mrb[76].mxu1 %vm1412_vm2, %v3452_v29 }
 0xb50   : > { %v3568_v35 = vpop.xlane.xlu0 %3567 }
 0xb51   : > { %v3614_v15 = vsub.f32 %v3550_v22, %v3568_v35 }
 0xb52   : > { %v3571_v28 = vpop.xlane.xlu1 %3570 }
 0xb53   : > { %v3615_v36 = vsub.f32 %v3551_v41, %v3571_v28  ;;  %v3630_v5 = vmul.f32 1.442695, %v3614_v15 }
 0xb54   : > { %v3574_v46 = vpop.xlane.xlu0 %3573 }
 0xb55   : > { %v3616_v61 = vsub.f32 %v3552_v48, %v3574_v46  ;;  %v3632_v27 = vmul.f32 1.442695, %v3615_v36 }
 0xb57   : > { %v3634_v30 = vmul.f32 1.442695, %v3616_v61 }
 0xb58   : > { %v3577_v19 = vpop.xlane.xlu0 %3576 }
 0xb59   : > { %v3617_v6 = vsub.f32 %v3553_v47, %v3577_v19  ;;  %6371 = vpow2.f32 %v3634_v30 }
 0xb5b   : > { %v3636_v51 = vmul.f32 1.442695, %v3617_v6 }
 0xb5d   : > { %6373 = vpow2.f32 %v3636_v51 }
 0xb5e   : > { %6375 = vpow2.f32 %v3630_v5 }
 0xb5f   : > { %6377 = vpow2.f32 %v3632_v27 }
 0xb60   : > { %v8174_v60 = vpop.f32.mrb[64].mxu1 }
 0xb61   : > { %v8176_v31 = vpop.f32.mrb[65].mxu1 }
 0xb62   : > { %v8178_v7 = vpop.f32.mrb[66].mxu1 }
 0xb63   : > { %v8180_v1 = vpop.f32.mrb[67].mxu1  ;;  %v8188_v26 = vpop.eup %6371 }
 0xb64   : > { %v3668_v59 = vsel %vm1607_vm3, %v8188_v26, 0.0 }
 0xb67   : > { %v8191_v38 = vpop.eup %6373 }
 0xb68   : > { %v8195_v13 = vpop.eup %6375  ;;  %v3671_v3 = vsel %vm1607_vm3, %v8191_v38, 0.0 }
 0xb69   : > { %v6378_v29 = vpop.eup %6377  ;;  %v3662_v35 = vsel %vm1607_vm3, %v8195_v13, 0.0 }
 0xb6a   : > { %v3665_v19 = vsel %vm1607_vm3, %v6378_v29, 0.0 }
 0xb84   : > { %v5932_v16 = vpop.f32.mrb[60].mxu0 }
 0xb85   : > { %v3430_v8 = vpop.f32.mrb[61].mxu0  ;;  %v8182_v0 = vmul.f32 0.35355338, %v5932_v16 }
 0xb86   : > { %v3554_v17 = vmul.f32 0.35355338, %v3430_v8  ;;  %v5933_v14 = vpop.f32.mrb[62].mxu0 }
 0xb87   : > { %v3433_v20 = vpop.f32.mrb[63].mxu0  ;;  %v3557_v22 = vmul.f32 0.35355338, %v5933_v14  ;;  %v3584_v53 = vsel %vm1607_vm3, %v8182_v0, -inf }
 0xb88   : > { %v3555_v4 = vmul.f32 0.35355338, %v3433_v20  ;;  %v3578_v48 = vsel %vm1607_vm3, %v3554_v17, -inf }
 0xb89   : > { %3579 = vmax.xlane.f32.xlu0 %v3578_v48  ;;  %v3587_v47 = vsel %vm1607_vm3, %v3557_v22, -inf }
 0xb8a   : > { %v3581_v41 = vsel %vm1607_vm3, %v3555_v4, -inf }
 0xb8b   : > { %3582 = vmax.xlane.f32.xlu1 %v3581_v41 }
 0xb8d   : > { %3585 = vmax.xlane.f32.xlu0 %v3584_v53 }
 0xb8f   : > { %3588 = vmax.xlane.f32.xlu1 %v3587_v47 }
 0xb91   : > { %3669 = vadd.xlane.f32.xlu0 %v3668_v59 }
 0xb93   : > { %3672 = vadd.xlane.f32.xlu1 %v3671_v3 }
 0xb95   : > { %3663 = vadd.xlane.f32.xlu0 %v3662_v35 }
 0xb96   : > { %v8201_v46 = vpop.f32.mrb[68].mxu1 }
 0xb97   : > { %9170 = vst [vmem:[#allocation12_spill] sm:$0xff] %v8201_v46  ;;  %v8204_v61 = vpop.f32.mrb[69].mxu1  ;;  %3666 = vadd.xlane.f32.xlu1 %v3665_v19 }
 0xb98   : > { %9171 = vst [vmem:[#allocation13_spill] sm:$0xff] %v8204_v61  ;;  %v8206_v6 = vpop.f32.mrb[70].mxu1 }
 0xb99   : > { %9172 = vst [vmem:[#allocation14_spill] sm:$0xff] %v8206_v6  ;;  %v8208_v28 = vpop.f32.mrb[71].mxu1 }
 0xb9a   : > { %9173 = vst [vmem:[#allocation15_spill] sm:$0xff] %v8208_v28 }
 0xb9e   : > { %v5944_v15 = vpop.f32.mrb[72].mxu1 }
 0xb9f   : > { %v3519_v30 = vpop.f32.mrb[73].mxu1 }
 0xba0   : > { %v5945_v36 = vpop.f32.mrb[74].mxu1 }
 0xba1   : > { %v3522_v51 = vpop.f32.mrb[75].mxu1 }
 0xba6   : > { %v5948_v5 = vpop.f32.mrb[76].mxu1 }
 0xba7   : > { %v3535_v16 = vpop.f32.mrb[77].mxu1 }
 0xba8   : > { %v8210_v27 = vpop.f32.mrb[78].mxu1 }
 0xba9   : > { %v8212_v8 = vpop.f32.mrb[79].mxu1 }
 0xc16   : > { %v3580_v14 = vpop.xlane.xlu0 %3579 }
 0xc17   : > { %v3618_v20 = vsub.f32 %v3554_v17, %v3580_v14 }
 0xc18   : > { %v3583_v48 = vpop.xlane.xlu1 %3582 }
 0xc19   : > { %v3638_v41 = vmul.f32 1.442695, %v3618_v20  ;;  %v3619_v53 = vsub.f32 %v3555_v4, %v3583_v48  ;;  %v3560_v4 = vmul.f32 0.35355338, %v5944_v15 }
 0xc1a   : > { %v3586_v47 = vpop.xlane.xlu0 %3585 }
 0xc1b   : > { %6379 = vpow2.f32 %v3638_v41  ;;  %v3640_v59 = vmul.f32 1.442695, %v3619_v53  ;;  %v3620_v17 = vsub.f32 %v8182_v0, %v3586_v47  ;;  %v3596_v53 = vsel %vm1607_vm3, %v3560_v4, -inf }
 0xc1c   : > { %v3589_v3 = vpop.xlane.xlu1 %3588  ;;  %v3559_v0 = vmul.f32 0.35355338, %v3522_v51  ;;  %v3564_v47 = vmul.f32 0.35355338, %v5948_v5 }
 0xc1d   : > { %6381 = vpow2.f32 %v3640_v59  ;;  %v3621_v19 = vsub.f32 %v3557_v22, %v3589_v3  ;;  %v3561_v22 = vmul.f32 0.35355338, %v5945_v36  ;;  %v3642_v41 = vmul.f32 1.442695, %v3620_v17 }
 0xc1e   : > { %v8214_v35 = vpop.xlane.xlu0 %3669  ;;  %v3593_v36 = vsel %vm1607_vm3, %v3559_v0, -inf  ;;  %v3562_v17 = vmul.f32 0.35355338, %v3535_v16  ;;  %v3608_v51 = vsel %vm1607_vm3, %v3564_v47, -inf  ;;  %v8255_v16 = vmul.f32 0.35355338, %v8212_v8 }
 0xc1f   : > { %v3644_v28 = vmul.f32 1.442695, %v3621_v19 }
 0xc20   : > { %v8216_v6 = vpop.xlane.xlu1 %3672 }
 0xc22   : > { %v3664_v46 = vpop.xlane.xlu0 %3663 }
 0xc23   : > { %6383 = vrcp.f32 %v3664_v46  ;;  %v3558_v46 = vmul.f32 0.35355338, %v3519_v30 }
 0xc24   : > { %v3667_v61 = vpop.xlane.xlu1 %3666 }
 0xc25   : > { %v8218_v62 = vpop.eup %6379  ;;  %6385 = vrcp.f32 %v3667_v61  ;;  %v3599_v61 = vsel %vm1607_vm3, %v3561_v22, -inf }
 0xc26   : > { %v3674_v14 = vsel %vm1607_vm3, %v8218_v62, 0.0  ;;  %6387 = vpow2.f32 %v3644_v28  ;;  %v3590_v28 = vsel %vm1607_vm3, %v3558_v46, -inf }
 0xc27   : > { %v8223_v20 = vpop.eup %6381  ;;  %3675 = vadd.xlane.f32.xlu0 %v3674_v14  ;;  %6389 = vpow2.f32 %v3642_v41 }
 0xc28   : > { %v3677_v48 = vsel %vm1607_vm3, %v8223_v20, 0.0 }
 0xc29   : > { %3678 = vadd.xlane.f32.xlu1 %v3677_v48  ;;  %v3602_v48 = vsel %vm1607_vm3, %v3562_v17, -inf }
 0xc2b   : > { %3597 = vmax.xlane.f32.xlu0 %v3596_v53 }
 0xc2d   : > { %v6384_v15 = vpop.eup %6383  ;;  %3600 = vmax.xlane.f32.xlu1 %v3599_v61 }
 0xc2e   : > { %v3726_v3 = vmul.f32 %v6384_v15, %v8195_v13 }
 0xc2f   : > { %v6386_v59 = vpop.eup %6385  ;;  %3591 = vmax.xlane.f32.xlu0 %v3590_v28 }
 0xc30   : > { %v3727_v19 = vmul.f32 %v6386_v59, %v6378_v29  ;;  %v8232_v30 = vpop.eup %6387  ;;  %v8252_v29 = vmul.f32 0.35355338, %v8210_v27 }
 0xc31   : > { %3594 = vmax.xlane.f32.xlu1 %v3593_v36  ;;  %v3683_v5 = vsel %vm1607_vm3, %v8232_v30, 0.0  ;;  %v8239_v41 = vpop.eup %6389 }
 0xc32   : > { %v3742_v14 = vpack.c.bf16 %v3727_v19, %v3726_v3  ;;  %v3680_v13 = vsel %vm1607_vm3, %v8239_v41, 0.0  ;;  %v3611_v53 = vsel %vm1607_vm3, %v8252_v29, -inf }
 0xc33   : > { %3609 = vmax.xlane.f32.xlu0 %v3608_v51 }
 0xc34   : > { %5958 = vmatprep.mubr.msk.bf16.mxu0 %vm1607_vm3, %v3742_v14 }
 0xc35   : > { %3684 = vadd.xlane.f32.xlu1 %v3683_v5 }
 0xc37   : > { %3603 = vmax.xlane.f32.xlu0 %v3602_v48 }
 0xc3b   : > { %3681 = vadd.xlane.f32.xlu0 %v3680_v13 }
 0xc46   : > { %3752 = vrot.lane.b32.xlu1 %v7155_v33, %s6597_s28  ;;  %v3605_v33 = vsel %vm1607_vm3, %v8255_v16, -inf }
 0xc51   : > { %3750 = vrot.lane.b32.xlu0 %v7157_v34, %s6597_s28 }
 0xc55   : > { %3754 = vrot.lane.b32.xlu0 %v7175_v52, %s6597_s28 }
 0xc59   : > { %3756 = vrot.lane.b32.xlu0 %v7173_v49, %s6597_s28 }
 0xc6a   : > { %3612 = vmax.xlane.f32.xlu1 %v3611_v53 }
 0xc6e   : > { %3606 = vmax.xlane.f32.xlu1 %v3605_v33 }
 0xc7f   : > { %3839 = vrot.lane.b32.xlu1 %v7271_v44, %s6597_s28 }
 0xc83   : > { %3841 = vrot.lane.b32.xlu1 %v7269_v39, %s6597_s28 }
 0xcb4   : > { %v3676_v34 = vpop.xlane.xlu0 %3675 }
 0xcb6   : > { %v3679_v49 = vpop.xlane.xlu1 %3678 }
 0xcb8   : > { %v3598_v52 = vpop.xlane.xlu0 %3597 }
 0xcb9   : > { %v3624_v27 = vsub.f32 %v3560_v4, %v3598_v52 }
 0xcba   : > { %v3601_v8 = vpop.xlane.xlu1 %3600 }
 0xcbb   : > { %v3650_v61 = vmul.f32 1.442695, %v3624_v27  ;;  %v3625_v15 = vsub.f32 %v3561_v22, %v3601_v8 }
 0xcbc   : > { %v3592_v28 = vpop.xlane.xlu0 %3591 }
 0xcbd   : > { %6391 = vpow2.f32 %v3650_v61  ;;  %v3622_v59 = vsub.f32 %v3558_v46, %v3592_v28  ;;  %v3652_v3 = vmul.f32 1.442695, %v3625_v15 }
 0xcbe   : > { %v3595_v36 = vpop.xlane.xlu1 %3594 }
 0xcbf   : > { %v3646_v19 = vmul.f32 1.442695, %v3622_v59  ;;  %v3623_v51 = vsub.f32 %v3559_v0, %v3595_v36 }
 0xcc0   : > { %v3610_v14 = vpop.xlane.xlu0 %3609 }
 0xcc1   : > { %6393 = vpow2.f32 %v3646_v19  ;;  %v3628_v44 = vsub.f32 %v3564_v47, %v3610_v14  ;;  %v3648_v5 = vmul.f32 1.442695, %v3623_v51 }
 0xcc2   : > { %6395 = vpow2.f32 %v3652_v3  ;;  %v3685_v53 = vpop.xlane.xlu1 %3684 }
 0xcc3   : > { %v3658_v39 = vmul.f32 1.442695, %v3628_v44 }
 0xcc4   : > { %v3604_v48 = vpop.xlane.xlu0 %3603 }
 0xcc5   : > { %6397 = vpow2.f32 %v3658_v39  ;;  %v3626_v13 = vsub.f32 %v3562_v17, %v3604_v48 }
 0xcc6   : > { %6399 = vpow2.f32 %v3648_v5  ;;  %v3753_v27 = vpop.permute.xlu1 %3752 }
 0xcc7   : > { %v8265_v4 = vpop.eup %6391  ;;  %v3654_v22 = vmul.f32 1.442695, %v3626_v13 }
 0xcc8   : > { %v3682_v33 = vpop.xlane.xlu0 %3681  ;;  %v3692_v46 = vsel %vm1607_vm3, %v8265_v4, 0.0 }
 0xcc9   : > { %6401 = vpow2.f32 %v3654_v22  ;;  %3693 = vadd.xlane.f32.xlu1 %v3692_v46 }
 0xcca   : > { %6403 = vrcp.f32 %v8216_v6 }
 0xccb   : > { %v8270_v0 = vpop.eup %6393  ;;  %6405 = vrcp.f32 %v3679_v49 }
 0xccc   : > { %6407 = vrcp.f32 %v8214_v35  ;;  %v3751_v47 = vpop.permute.xlu0 %3750  ;;  %v3686_v17 = vsel %vm1607_vm3, %v8270_v0, 0.0  ;;  %v8275_v52 = vpop.eup %6395 }
 0xccd   : > { %6409 = vrcp.f32 %v3676_v34  ;;  %3687 = vadd.xlane.f32.xlu1 %v3686_v17  ;;  %5950 = vmatprep.subr.bf16.mxu0 %v3751_v47  ;;  %v3695_v49 = vsel %vm1607_vm3, %v8275_v52, 0.0 }
 0xcce   : > { %5951 = vmatpush3.bf16.msra.mxu0 %v3751_v47  ;;  %6411 = vrcp.f32 %v3682_v33 }
 0xccf   : > { %v8277_v8 = vpop.eup %6397  ;;  %5952 = vmatprep.subr.bf16.mxu0 %v3753_v27  ;;  %6413 = vrcp.f32 %v3685_v53 }
 0xcd0   : > { %v3755_v6 = vpop.permute.xlu0 %3754  ;;  %v3704_v35 = vsel %vm1607_vm3, %v8277_v8, 0.0  ;;  %v8283_v61 = vpop.eup %6399 }
 0xcd1   : > { %3696 = vadd.xlane.f32.xlu1 %v3695_v49  ;;  %3705 = vadd.xlane.f32.xlu0 %v3704_v35  ;;  %v3689_v28 = vsel %vm1607_vm3, %v8283_v61, 0.0 }
 0xcd2   : > { %5953 = vmatpush3.bf16.msra.mxu0 %v3753_v27 }
 0xcd3   : > { %v8285_v34 = vpop.eup %6401  ;;  %5954 = vmatprep.subr.bf16.mxu0 %v3755_v6 }
 0xcd4   : > { %v6404_v15 = vpop.eup %6403  ;;  %v3698_v59 = vsel %vm1607_vm3, %v8285_v34, 0.0  ;;  %v3757_v19 = vpop.permute.xlu0 %3756 }
 0xcd5   : > { %v6406_v36 = vpop.eup %6405  ;;  %3690 = vadd.xlane.f32.xlu1 %v3689_v28  ;;  %3699 = vadd.xlane.f32.xlu0 %v3698_v59  ;;  %v3729_v14 = vmul.f32 %v6404_v15, %v8191_v38 }
 0xcd6   : > { %v6408_v3 = vpop.eup %6407  ;;  %5955 = vmatpush3.bf16.msra.mxu0 %v3755_v6  ;;  %v3731_v44 = vmul.f32 %v6406_v36, %v8223_v20 }
 0xcd7   : > { %v6410_v51 = vpop.eup %6409  ;;  %5956 = vmatprep.subr.bf16.mxu0 %v3757_v19  ;;  %v3728_v5 = vmul.f32 %v6408_v3, %v8188_v26 }
 0xcd8   : > { %v3730_v39 = vmul.f32 %v6410_v51, %v8218_v62  ;;  %v6412_v13 = vpop.eup %6411 }
 0xcd9   : > { %v3743_v48 = vpack.c.bf16 %v3729_v14, %v3728_v5  ;;  %v6414_v53 = vpop.eup %6413  ;;  %v3732_v33 = vmul.f32 %v6412_v13, %v8239_v41 }
 0xcda   : > { %5957 = vmatpush3.bf16.msra.mxu0 %v3757_v19  ;;  %v3744_v22 = vpack.c.bf16 %v3731_v44, %v3730_v39  ;;  %v3733_v38 = vmul.f32 %v6414_v53, %v8232_v30 }
 0xcdc   : > { %v3745_v46 = vpack.c.bf16 %v3733_v38, %v3732_v33 }
 0xcdd   : > { %5959 = vmatmul.mubr.msk.bf16.vlgmr.msra.gmra.mrb[64].mxu0 %vm1607_vm3, %v3743_v48 }
 0xcde   : > { %5962 = vmatprep.mubr.msk.bf16.mxu0 %vm1607_vm3, %v3744_v22 }
 0xce5   : > { %5963 = vmatmul.mubr.msk.bf16.gmra.mrb[68].mxu0 %vm1607_vm3, %v3745_v46 }
 0xcf7   : > { %v3613_v20 = vpop.xlane.xlu1 %3612 }
 0xcf8   : > { %v3629_v26 = vsub.f32 %v8252_v29, %v3613_v20 }
 0xcfa   : > { %v3660_v47 = vmul.f32 1.442695, %v3629_v26 }
 0xcfb   : > { %v3607_v62 = vpop.xlane.xlu1 %3606 }
 0xcfc   : > { %6415 = vpow2.f32 %v3660_v47  ;;  %v3627_v17 = vsub.f32 %v8255_v16, %v3607_v62 }
 0xcfe   : > { %v3656_v27 = vmul.f32 1.442695, %v3627_v17  ;;  %v6135_v17 = vld [vmem:[%s6762_s2] sm:$0xff]  }
 0xcff   : > { %v3840_v6 = vpop.permute.xlu1 %3839  ;;  %5982 = vmatprep.subr.bf16.mxu0 %v6135_v17 }
 0xd00   : > { %6417 = vpow2.f32 %v3656_v27  ;;  %5966 = vmatprep.subr.bf16.mxu1 %v3840_v6  ;;  %5983 = vmatpush3.bf16.msra.mxu0 %v6135_v17 }
 0xd01   : > { %5967 = vmatpush3.bf16.msra.mxu1 %v3840_v6  ;;  %v6136_v6 = vld [vmem:[%s6762_s2 + $0x8] sm:$0xff]   ;;  %s5470_s2 = sshll.u32 %s6580_s21, 7 }
 0xd02   : > { %5984 = vmatprep.subr.bf16.mxu0 %v6136_v6  ;;  %s4178_s7 = sld [smem:[#allocation3 + %s5470_s2]]  ;;  %s5082_s18 = sadd.s32 1, %s5470_s2 }
 0xd03   : > { %v3842_v49 = vpop.permute.xlu1 %3841 }
 0xd04   : > { %5968 = vmatprep.subr.bf16.mxu1 %v3842_v49  ;;  %5985 = vmatpush3.bf16.msra.mxu0 %v6136_v6 }
 0xd05   : > { %5969 = vmatpush3.bf16.msra.mxu1 %v3842_v49 }
 0xd06   : > { %v8302_v30 = vpop.eup %6415 }
 0xd07   : > { %v3707_v41 = vsel %vm1607_vm3, %v8302_v30, 0.0 }
 0xd08   : > { %3708 = vadd.xlane.f32.xlu0 %v3707_v41 }
 0xd0a   : > { %v8306_v29 = vpop.eup %6417 }
 0xd0b   : > { %v3701_v35 = vsel %vm1607_vm3, %v8306_v29, 0.0 }
 0xd0c   : > { %3702 = vadd.xlane.f32.xlu1 %v3701_v35 }
 0xd1d   : > { %3845 = vrot.lane.b32.xlu1 %v7289_v42, %s6597_s28 }
 0xd1e   : > { %3843 = vrot.lane.b32.xlu0 %v7291_v23, %s6597_s28 }
 0xd21   : > { %2608 = vrot.lane.b32.xlu1 %v7841_v43, %s6598_s27 }
 0xd22   : > { %2606 = vrot.lane.b32.xlu0 %v7837_v56, %s6598_s27 }
 0xd25   : > { %2612 = vrot.lane.b32.xlu1 %v7839_v11, %s6598_s27 }
 0xd26   : > { %2610 = vrot.lane.b32.xlu0 %v7835_v18, %s6598_s27 }
 0xd29   : > { %3277 = vrot.lane.b32.xlu1 %v8134_v25, %s6599_s30 }
 0xd2a   : > { %3275 = vrot.lane.b32.xlu0 %v8130_v12, %s6599_s30 }
 0xd2d   : > { %3281 = vrot.lane.b32.xlu1 %v8132_v37, %s6599_s30 }
 0xd2e   : > { %3279 = vrot.lane.b32.xlu0 %v8128_v9, %s6599_s30 }
 0xd56   : > { %v3694_v42 = vpop.xlane.xlu1 %3693 }
 0xd5a   : > { %v3688_v23 = vpop.xlane.xlu1 %3687 }
 0xd5b   : > { %6419 = vrcp.f32 %v3688_v23 }
 0xd5e   : > { %v3697_v56 = vpop.xlane.xlu1 %3696  ;;  %v3706_v12 = vpop.xlane.xlu0 %3705 }
 0xd62   : > { %v3691_v11 = vpop.xlane.xlu1 %3690  ;;  %v3700_v37 = vpop.xlane.xlu0 %3699 }
 0xd63   : > { %6421 = vrcp.f32 %v3691_v11 }
 0xd64   : > { %6423 = vrcp.f32 %v3697_v56 }
 0xd65   : > { %v6420_v18 = vpop.eup %6419  ;;  %6425 = vrcp.f32 %v3694_v42 }
 0xd66   : > { %v3734_v16 = vmul.f32 %v6420_v18, %v8270_v0 }
 0xd6d   : > { %v6422_v43 = vpop.eup %6421 }
 0xd6e   : > { %v3735_v25 = vmul.f32 %v6422_v43, %v8283_v61  ;;  %v6424_v28 = vpop.eup %6423 }
 0xd6f   : > { %v6426_v3 = vpop.eup %6425  ;;  %v3737_v0 = vmul.f32 %v6424_v28, %v8275_v52 }
 0xd70   : > { %v3746_v15 = vpack.c.bf16 %v3735_v25, %v3734_v16  ;;  %v3736_v51 = vmul.f32 %v6426_v3, %v8265_v4 }
 0xd72   : > { %5974 = vmatprep.mubr.msk.bf16.mxu1 %vm1607_vm3, %v3746_v15  ;;  %v3747_v14 = vpack.c.bf16 %v3737_v0, %v3736_v51 }
 0xd95   : > { %v3709_v9 = vpop.xlane.xlu0 %3708 }
 0xd96   : > { %6427 = vrcp.f32 %v3709_v9 }
 0xd97   : > { %6429 = vrcp.f32 %v3700_v37 }
 0xd98   : > { %6431 = vrcp.f32 %v3706_v12 }
 0xd99   : > { %v3703_v59 = vpop.xlane.xlu1 %3702  ;;  %v3844_v36 = vpop.permute.xlu0 %3843 }
 0xd9a   : > { %6433 = vrcp.f32 %v3703_v59  ;;  %5970 = vmatprep.subr.bf16.mxu1 %v3844_v36 }
 0xd9b   : > { %5971 = vmatpush3.bf16.msra.mxu1 %v3844_v36 }
 0xd9d   : > { %v3846_v61 = vpop.permute.xlu1 %3845  ;;  %v2607_v19 = vpop.permute.xlu0 %2606 }
 0xd9e   : > { %2655 = vst.msk [vmem:[#allocation2] sm:$0xff] %vm2654_vm4, %v2607_v19  ;;  %5972 = vmatprep.subr.bf16.mxu1 %v3846_v61 }
 0xd9f   : > { %5973 = vmatpush3.bf16.msra.mxu1 %v3846_v61 }
 0xda0   : > { %v6428_v44 = vpop.eup %6427 }
 0xda1   : > { %v2609_v5 = vpop.permute.xlu1 %2608  ;;  %v2611_v39 = vpop.permute.xlu0 %2610  ;;  %v3741_v4 = vmul.f32 %v6428_v44, %v8302_v30 }
 0xda2   : > { %v6430_v48 = vpop.eup %6429  ;;  %2656 = vst.msk [vmem:[#allocation2 + $0x8] sm:$0xff] %vm2654_vm4, %v2609_v5  ;;  %2657 = vst.msk [vmem:[#allocation2 + $0x10] sm:$0xff] %vm2654_vm4, %v2611_v39  ;;  %5975 = vmatmul.mubr.msk.bf16.vlgmr.msra.gmra.mrb[80].mxu1 %vm1607_vm3, %v3747_v14 }
 0xda3   : > { %v6432_v52 = vpop.eup %6431  ;;  %v3738_v33 = vmul.f32 %v6430_v48, %v8285_v34 }
 0xda4   : > { %v6434_v13 = vpop.eup %6433  ;;  %v3740_v46 = vmul.f32 %v6432_v52, %v8277_v8 }
 0xda5   : > { %v2613_v22 = vpop.permute.xlu1 %2612  ;;  %v3276_v53 = vpop.permute.xlu0 %3275  ;;  %v3739_v38 = vmul.f32 %v6434_v13, %v8306_v29 }
 0xda6   : > { %2658 = vst.msk [vmem:[#allocation2 + $0x18] sm:$0xff] %vm2654_vm4, %v2613_v22  ;;  %v3749_v26 = vpack.c.bf16 %v3741_v4, %v3740_v46 }
 0xda7   : > { %3324 = vst.msk [vmem:[#allocation2] sm:$0xff] %vm3323_vm5, %v3276_v53  ;;  %v3748_v20 = vpack.c.bf16 %v3739_v38, %v3738_v33 }
 0xda9   : > { %v3278_v47 = vpop.permute.xlu1 %3277  ;;  %5978 = vmatprep.mubr.msk.bf16.mxu1 %vm1607_vm3, %v3748_v20  ;;  %v3280_v62 = vpop.permute.xlu0 %3279 }
 0xdaa   : > { %3325 = vst.msk [vmem:[#allocation2 + $0x8] sm:$0xff] %vm3323_vm5, %v3278_v47  ;;  %3326 = vst.msk [vmem:[#allocation2 + $0x10] sm:$0xff] %vm3323_vm5, %v3280_v62  ;;  %5979 = vmatmul.mubr.msk.bf16.gmra.mrb[84].mxu1 %vm1607_vm3, %v3749_v26  ;;  %v9179_v62 = vld [vmem:[#allocation12_spill] sm:$0xff] }
 0xdad   : > { %v3282_v34 = vpop.permute.xlu1 %3281 }
 0xdae   : > { %3327 = vst.msk [vmem:[#allocation2 + $0x18] sm:$0xff] %vm3323_vm5, %v3282_v34 }
 0xdb0   : > { %v5960_v27 = vpop.f32.mrb[64].mxu0 }
 0xdb1   : > { %v3808_v8 = vpop.f32.mrb[65].mxu0 }
 0xdb2   : > { %3944 = vrot.lane.b32.xlu0 %v3808_v8, %s6600_s23  ;;  %v5961_v49 = vpop.f32.mrb[66].mxu0 }
 0xdb3   : > { %v3811_v30 = vpop.f32.mrb[67].mxu0 }
 0xdb4   : > { %3946 = vrot.lane.b32.xlu1 %v3811_v30, %s6600_s23 }
 0xdb6   : > { %3948 = vrot.lane.b32.xlu0 %v5960_v27, %s6600_s23  ;;  %v9180_v27 = vld [vmem:[#allocation14_spill] sm:$0xff] }
 0xdb8   : > { %3950 = vrot.lane.b32.xlu1 %v5961_v49, %s6600_s23  ;;  %v5964_v41 = vpop.f32.mrb[68].mxu0 }
 0xdb9   : > { %v3824_v29 = vpop.f32.mrb[69].mxu0 }
 0xdba   : > { %2614 = vrot.lane.b32.xlu0 %v7858_v21, %s6598_s27  ;;  %v5965_v35 = vpop.f32.mrb[70].mxu0  ;;  %v9175_v21 = vld [vmem:[#allocation9_spill] sm:$0xff] }
 0xdbb   : > { %v3827_v42 = vpop.f32.mrb[71].mxu0 }
 0xdbc   : > { %2616 = vrot.lane.b32.xlu1 %v7863_v45, %s6598_s27  ;;  %v9177_v45 = vld [vmem:[#allocation13_spill] sm:$0xff] }
 0xdbe   : > { %2618 = vrot.lane.b32.xlu0 %v7856_v40, %s6598_s27  ;;  %v9174_v40 = vld [vmem:[#allocation11_spill] sm:$0xff] }
 0xdc0   : > { %2620 = vrot.lane.b32.xlu1 %v7861_v54, %s6598_s27  ;;  %v9176_v54 = vld [vmem:[#allocation10_spill] sm:$0xff] }
 0xdc2   : > { %3283 = vrot.lane.b32.xlu0 %v8152_v50, %s6599_s30 }
 0xdc4   : > { %3285 = vrot.lane.b32.xlu1 %v8158_v10, %s6599_s30 }
 0xdc6   : > { %3287 = vrot.lane.b32.xlu0 %v8150_v63, %s6599_s30 }
 0xdc8   : > { %3289 = vrot.lane.b32.xlu1 %v8156_v32, %s6599_s30 }
 0xdca   : > { %3952 = vrot.lane.b32.xlu0 %v3824_v29, %s6600_s23 }
 0xdcc   : > { %3954 = vrot.lane.b32.xlu1 %v3827_v42, %s6600_s23 }
 0xdce   : > { %3956 = vrot.lane.b32.xlu0 %v5964_v41, %s6600_s23 }
 0xdd0   : > { %3958 = vrot.lane.b32.xlu1 %v5965_v35, %s6600_s23 }
 0xdd2   : > { %2622 = vrot.lane.b32.xlu0 %v7894_v2, %s6598_s27 }
 0xdd4   : > { %2624 = vrot.lane.b32.xlu1 %v7900_v57, %s6598_s27 }
 0xdd6   : > { %2626 = vrot.lane.b32.xlu0 %v7892_v55, %s6598_s27  ;;  %v9178_v55 = vld [vmem:[#allocation15_spill] sm:$0xff] }
 0xdd8   : > { %2628 = vrot.lane.b32.xlu1 %v7898_v58, %s6598_s27 }
 0xdda   : > { %3291 = vrot.lane.b32.xlu0 %v8176_v31, %s6599_s30 }
 0xddc   : > { %3293 = vrot.lane.b32.xlu1 %v8180_v1, %s6599_s30 }
 0xdde   : > { %3295 = vrot.lane.b32.xlu0 %v8174_v60, %s6599_s30 }
 0xde0   : > { %3297 = vrot.lane.b32.xlu1 %v8178_v7, %s6599_s30 }
 0xde2   : > { %2630 = vrot.lane.b32.xlu0 %v7912_v24, %s6598_s27 }
 0xde4   : > { %2632 = vrot.lane.b32.xlu1 %v9174_v40, %s6598_s27 }
 0xde6   : > { %2634 = vrot.lane.b32.xlu0 %v9175_v21, %s6598_s27 }
 0xde8   : > { %2636 = vrot.lane.b32.xlu1 %v9176_v54, %s6598_s27 }
 0xdea   : > { %3299 = vrot.lane.b32.xlu0 %v9177_v45, %s6599_s30 }
 0xdec   : > { %3301 = vrot.lane.b32.xlu1 %v9178_v55, %s6599_s30 }
 0xe24   : > { %v3945_v2 = vpop.permute.xlu0 %3944 }
 0xe25   : > { %3993 = vst.msk [vmem:[#allocation2] sm:$0xff] %vm3992_vm6, %v3945_v2 }
 0xe26   : > { %v3947_v58 = vpop.permute.xlu1 %3946 }
 0xe27   : > { %3994 = vst.msk [vmem:[#allocation2 + $0x8] sm:$0xff] %vm3992_vm6, %v3947_v58 }
 0xe28   : > { %v3949_v57 = vpop.permute.xlu0 %3948 }
 0xe29   : > { %3995 = vst.msk [vmem:[#allocation2 + $0x10] sm:$0xff] %vm3992_vm6, %v3949_v57 }
 0xe2a   : > { %v3951_v24 = vpop.permute.xlu1 %3950 }
 0xe2b   : > { %3996 = vst.msk [vmem:[#allocation2 + $0x18] sm:$0xff] %vm3992_vm6, %v3951_v24 }
 0xe2c   : > { %v2615_v63 = vpop.permute.xlu0 %2614  ;;  %v4009_v32 = vld [vmem:[#allocation2] sm:$0xff] }
 0xe2d   : > { %2659 = vst.msk [vmem:[#allocation2 + $0x20] sm:$0xff] %vm2654_vm4, %v2615_v63 }
 0xe2e   : > { %v2617_v50 = vpop.permute.xlu1 %2616  ;;  %v4010_v10 = vld [vmem:[#allocation2 + $0x8] sm:$0xff] }
 0xe2f   : > { %2660 = vst.msk [vmem:[#allocation2 + $0x28] sm:$0xff] %vm2654_vm4, %v2617_v50  ;;  %v4025_v60 = vpack.c.bf16 %v4010_v10, %v4009_v32 }
 0xe30   : > { %v2619_v31 = vpop.permute.xlu0 %2618  ;;  %v4011_v1 = vld [vmem:[#allocation2 + $0x10] sm:$0xff] }
 0xe31   : > { %2661 = vst.msk [vmem:[#allocation2 + $0x30] sm:$0xff] %vm2654_vm4, %v2619_v31  ;;  %5986 = vmatprep.mubr.msk.bf16.mxu0 %vm838_vm1, %v4025_v60 }
 0xe32   : > { %v2621_v7 = vpop.permute.xlu1 %2620  ;;  %v4012_v23 = vld [vmem:[#allocation2 + $0x18] sm:$0xff] }
 0xe33   : > { %2662 = vst.msk [vmem:[#allocation2 + $0x38] sm:$0xff] %vm2654_vm4, %v2621_v7  ;;  %v4026_v56 = vpack.c.bf16 %v4012_v23, %v4011_v1  ;;  %v8472_v7 = vld [vmem:[%s9181_s4] ss:$0 sm:$0xff] }
 0xe34   : > { %v3284_v11 = vpop.permute.xlu0 %3283 }
 0xe35   : > { %3328 = vst.msk [vmem:[#allocation2 + $0x20] sm:$0xff] %vm3323_vm5, %v3284_v11  ;;  %5987 = vmatmul.mubr.msk.bf16.vlgmr.msra.gmra.mrb[72].mxu0 %vm838_vm1, %v4026_v56  ;;  %v8475_v56 = vstv %s4178_s7 }
 0xe36   : > { %v3286_v18 = vpop.permute.xlu1 %3285 }
 0xe37   : > { %3329 = vst.msk [vmem:[#allocation2 + $0x28] sm:$0xff] %vm3323_vm5, %v3286_v18 }
 0xe38   : > { %v3288_v43 = vpop.permute.xlu0 %3287 }
 0xe39   : > { %3330 = vst.msk [vmem:[#allocation2 + $0x30] sm:$0xff] %vm3323_vm5, %v3288_v43 }
 0xe3a   : > { %v3290_v16 = vpop.permute.xlu1 %3289 }
 0xe3b   : > { %3331 = vst.msk [vmem:[#allocation2 + $0x38] sm:$0xff] %vm3323_vm5, %v3290_v16 }
 0xe3c   : > { %v3953_v25 = vpop.permute.xlu0 %3952 }
 0xe3d   : > { %3997 = vst.msk [vmem:[#allocation2 + $0x20] sm:$0xff] %vm3992_vm6, %v3953_v25 }
 0xe3e   : > { %v3955_v15 = vpop.permute.xlu1 %3954 }
 0xe3f   : > { %3998 = vst.msk [vmem:[#allocation2 + $0x28] sm:$0xff] %vm3992_vm6, %v3955_v15 }
 0xe40   : > { %v3957_v12 = vpop.permute.xlu0 %3956 }
 0xe41   : > { %3999 = vst.msk [vmem:[#allocation2 + $0x30] sm:$0xff] %vm3992_vm6, %v3957_v12 }
 0xe42   : > { %v3959_v37 = vpop.permute.xlu1 %3958 }
 0xe43   : > { %4000 = vst.msk [vmem:[#allocation2 + $0x38] sm:$0xff] %vm3992_vm6, %v3959_v37 }
 0xe44   : > { %v2623_v9 = vpop.permute.xlu0 %2622  ;;  %v4013_v59 = vld [vmem:[#allocation2 + $0x20] sm:$0xff] }
 0xe45   : > { %2663 = vst.msk [vmem:[#allocation2 + $0x40] sm:$0xff] %vm2654_vm4, %v2623_v9  ;;  %v6531_v9 = vld [vmem:[%s9135_s16] sm:$0xff] }
 0xe46   : > { %v2625_v28 = vpop.permute.xlu1 %2624  ;;  %v4014_v36 = vld [vmem:[#allocation2 + $0x28] sm:$0xff] }
 0xe47   : > { %2664 = vst.msk [vmem:[#allocation2 + $0x48] sm:$0xff] %vm2654_vm4, %v2625_v28  ;;  %v4027_v3 = vpack.c.bf16 %v4014_v36, %v4013_v59  ;;  %v6532_v36 = vld [vmem:[%s9135_s16 + $0x10] sm:$0xff] }
 0xe48   : > { %v2627_v0 = vpop.permute.xlu0 %2626  ;;  %v4015_v19 = vld [vmem:[#allocation2 + $0x30] sm:$0xff] }
 0xe49   : > { %2665 = vst.msk [vmem:[#allocation2 + $0x50] sm:$0xff] %vm2654_vm4, %v2627_v0  ;;  %5990 = vmatprep.mubr.msk.bf16.mxu0 %vm838_vm1, %v4027_v3 }
 0xe4a   : > { %v2629_v61 = vpop.permute.xlu1 %2628  ;;  %v4016_v51 = vld [vmem:[#allocation2 + $0x38] sm:$0xff] }
 0xe4b   : > { %2666 = vst.msk [vmem:[#allocation2 + $0x58] sm:$0xff] %vm2654_vm4, %v2629_v61  ;;  %v4028_v14 = vpack.c.bf16 %v4016_v51, %v4015_v19  ;;  %v6533_v61 = vld [vmem:[%s9135_s16 + $0x8] sm:$0xff] }
 0xe4c   : > { %v3292_v44 = vpop.permute.xlu0 %3291 }
 0xe4d   : > { %3332 = vst.msk [vmem:[#allocation2 + $0x40] sm:$0xff] %vm3323_vm5, %v3292_v44  ;;  %5991 = vmatmul.mubr.msk.bf16.gmra.mrb[76].mxu0 %vm838_vm1, %v4028_v14  ;;  %v6534_v44 = vld [vmem:[%s9135_s16 + $0x18] sm:$0xff] }
 0xe4e   : > { %v3294_v5 = vpop.permute.xlu1 %3293 }
 0xe4f   : > { %3333 = vst.msk [vmem:[#allocation2 + $0x48] sm:$0xff] %vm3323_vm5, %v3294_v5 }
 0xe50   : > { %v3296_v39 = vpop.permute.xlu0 %3295 }
 0xe51   : > { %3334 = vst.msk [vmem:[#allocation2 + $0x50] sm:$0xff] %vm3323_vm5, %v3296_v39 }
 0xe52   : > { %v3298_v48 = vpop.permute.xlu1 %3297 }
 0xe53   : > { %3335 = vst.msk [vmem:[#allocation2 + $0x58] sm:$0xff] %vm3323_vm5, %v3298_v48 }
 0xe54   : > { %v2631_v52 = vpop.permute.xlu0 %2630 }
 0xe55   : > { %2667 = vst.msk [vmem:[#allocation2 + $0x60] sm:$0xff] %vm2654_vm4, %v2631_v52 }
 0xe56   : > { %v2633_v13 = vpop.permute.xlu1 %2632 }
 0xe57   : > { %2668 = vst.msk [vmem:[#allocation2 + $0x68] sm:$0xff] %vm2654_vm4, %v2633_v13 }
 0xe58   : > { %v2635_v4 = vpop.permute.xlu0 %2634 }
 0xe59   : > { %2669 = vst.msk [vmem:[#allocation2 + $0x70] sm:$0xff] %vm2654_vm4, %v2635_v4 }
 0xe5a   : > { %v2637_v22 = vpop.permute.xlu1 %2636 }
 0xe5b   : > { %2670 = vst.msk [vmem:[#allocation2 + $0x78] sm:$0xff] %vm2654_vm4, %v2637_v22 }
 0xe5c   : > { %v3300_v53 = vpop.permute.xlu0 %3299 }
 0xe5d   : > { %3336 = vst.msk [vmem:[#allocation2 + $0x60] sm:$0xff] %vm3323_vm5, %v3300_v53 }
 0xe5e   : > { %v3302_v33 = vpop.permute.xlu1 %3301 }
 0xe5f   : > { %3337 = vst.msk [vmem:[#allocation2 + $0x68] sm:$0xff] %vm3323_vm5, %v3302_v33 }
 0xe75   : > { %v5976_v38 = vpop.f32.mrb[80].mxu1 }
 0xe76   : > { %3964 = vrot.lane.b32.xlu0 %v5976_v38, %s6600_s23  ;;  %v3897_v46 = vpop.f32.mrb[81].mxu1 }
 0xe77   : > { %v5977_v20 = vpop.f32.mrb[82].mxu1 }
 0xe78   : > { %3966 = vrot.lane.b32.xlu1 %v5977_v20, %s6600_s23  ;;  %v3900_v26 = vpop.f32.mrb[83].mxu1 }
 0xe7a   : > { %3960 = vrot.lane.b32.xlu0 %v3897_v46, %s6600_s23 }
 0xe7c   : > { %3962 = vrot.lane.b32.xlu1 %v3900_v26, %s6600_s23 }
 0xe7d   : > { %v5980_v47 = vpop.f32.mrb[84].mxu1 }
 0xe7e   : > { %3303 = vrot.lane.b32.xlu0 %v9179_v62, %s6599_s30  ;;  %v3913_v34 = vpop.f32.mrb[85].mxu1 }
 0xe7f   : > { %v5981_v17 = vpop.f32.mrb[86].mxu1 }
 0xe80   : > { %3305 = vrot.lane.b32.xlu1 %v9180_v27, %s6599_s30  ;;  %v3916_v8 = vpop.f32.mrb[87].mxu1  ;;  %v6536_v27 = vld [vmem:[%s9135_s16 + $0x30] sm:$0xff] }
 0xe82   : > { %3968 = vrot.lane.b32.xlu0 %v3913_v34, %s6600_s23 }
 0xe84   : > { %3970 = vrot.lane.b32.xlu1 %v3916_v8, %s6600_s23 }
 0xe86   : > { %3972 = vrot.lane.b32.xlu0 %v5980_v47, %s6600_s23  ;;  %v6535_v47 = vld [vmem:[%s9135_s16 + $0x20] sm:$0xff] }
 0xe88   : > { %3974 = vrot.lane.b32.xlu1 %v5981_v17, %s6600_s23 }
 0xee8   : > { %v3965_v6 = vpop.permute.xlu0 %3964 }
 0xee9   : > { %4003 = vst.msk [vmem:[#allocation2 + $0x50] sm:$0xff] %vm3992_vm6, %v3965_v6  ;;  %v6537_v6 = vld [vmem:[%s9135_s16 + $0x28] sm:$0xff] }
 0xeea   : > { %v3967_v49 = vpop.permute.xlu1 %3966 }
 0xeeb   : > { %4004 = vst.msk [vmem:[#allocation2 + $0x58] sm:$0xff] %vm3992_vm6, %v3967_v49 }
 0xeec   : > { %v3961_v30 = vpop.permute.xlu0 %3960 }
 0xeed   : > { %4001 = vst.msk [vmem:[#allocation2 + $0x40] sm:$0xff] %vm3992_vm6, %v3961_v30 }
 0xeee   : > { %v3963_v41 = vpop.permute.xlu1 %3962 }
 0xeef   : > { %4002 = vst.msk [vmem:[#allocation2 + $0x48] sm:$0xff] %vm3992_vm6, %v3963_v41  ;;  %v6538_v41 = vld [vmem:[%s9135_s16 + $0x38] sm:$0xff] }
 0xef0   : > { %v3304_v29 = vpop.permute.xlu0 %3303  ;;  %v4019_v2 = vld [vmem:[#allocation2 + $0x50] sm:$0xff] }
 0xef1   : > { %3338 = vst.msk [vmem:[#allocation2 + $0x70] sm:$0xff] %vm3323_vm5, %v3304_v29 }
 0xef2   : > { %v3306_v35 = vpop.permute.xlu1 %3305  ;;  %v4020_v40 = vld [vmem:[#allocation2 + $0x58] sm:$0xff] }
 0xef3   : > { %3339 = vst.msk [vmem:[#allocation2 + $0x78] sm:$0xff] %vm3323_vm5, %v3306_v35  ;;  %v4030_v57 = vpack.c.bf16 %v4020_v40, %v4019_v2 }
 0xef4   : > { %v3969_v42 = vpop.permute.xlu0 %3968  ;;  %v4017_v54 = vld [vmem:[#allocation2 + $0x40] sm:$0xff] }
 0xef5   : > { %4005 = vst.msk [vmem:[#allocation2 + $0x60] sm:$0xff] %vm3992_vm6, %v3969_v42 }
 0xef6   : > { %v3971_v21 = vpop.permute.xlu1 %3970  ;;  %v4018_v45 = vld [vmem:[#allocation2 + $0x48] sm:$0xff] }
 0xef7   : > { %4006 = vst.msk [vmem:[#allocation2 + $0x68] sm:$0xff] %vm3992_vm6, %v3971_v21  ;;  %v4029_v55 = vpack.c.bf16 %v4018_v45, %v4017_v54 }
 0xef8   : > { %v3973_v58 = vpop.permute.xlu0 %3972 }
 0xef9   : > { %4007 = vst.msk [vmem:[#allocation2 + $0x70] sm:$0xff] %vm3992_vm6, %v3973_v58  ;;  %5994 = vmatprep.mubr.msk.bf16.mxu0 %vm838_vm1, %v4029_v55 }
 0xefa   : > { %v3975_v24 = vpop.permute.xlu1 %3974  ;;  %5995 = vmatmul.mubr.msk.bf16.gmra.mrb[80].mxu0 %vm838_vm1, %v4030_v57 }
 0xefb   : > { %4008 = vst.msk [vmem:[#allocation2 + $0x78] sm:$0xff] %vm3992_vm6, %v3975_v24 }
 0xefc   : > { %v4021_v63 = vld [vmem:[#allocation2 + $0x60] sm:$0xff] }
 0xefe   : > { %v4022_v50 = vld [vmem:[#allocation2 + $0x68] sm:$0xff] }
 0xeff   : > { %v4031_v32 = vpack.c.bf16 %v4022_v50, %v4021_v63 }
 0xf00   : > { %v4023_v10 = vld [vmem:[#allocation2 + $0x70] sm:$0xff] }
 0xf01   : > { %5998 = vmatprep.mubr.msk.bf16.mxu0 %vm838_vm1, %v4031_v32 }
 0xf02   : > { %v4024_v60 = vld [vmem:[#allocation2 + $0x78] sm:$0xff] }
 0xf03   : > { %v4032_v31 = vpack.c.bf16 %v4024_v60, %v4023_v10  ;;  %v6539_v10 = vld [vmem:[%s9135_s16 + $0x40] sm:$0xff] }
 0xf05   : > { %5999 = vmatmul.mubr.msk.bf16.gmra.mrb[84].mxu0 %vm838_vm1, %v4032_v31 }
 0xf08   : > { %v5988_v1 = vpop.f32.mrb[72].mxu0 }
 0xf09   : > { %v4123_v23 = vadd.f32 %v5988_v1, %v8472_v7  ;;  %v4114_v11 = vpop.f32.mrb[73].mxu0 }
 0xf0a   : > { %v4115_v18 = vadd.f32 %v8472_v7, %v4114_v11  ;;  %v5989_v43 = vpop.f32.mrb[74].mxu0  ;;  %v6540_v11 = vld [vmem:[%s9135_s16 + $0x50] sm:$0xff] }
 0xf0b   : > { %v4117_v16 = vpop.f32.mrb[75].mxu0  ;;  %v4182_v25 = vmul.f32 %v8475_v56, %v4123_v23  ;;  %v4126_v12 = vadd.f32 %v5989_v43, %v8472_v7  ;;  %v6541_v43 = vld [vmem:[%s9135_s16 + $0x48] sm:$0xff] }
 0xf0c   : > { %v4180_v15 = vmul.f32 %v8475_v56, %v4115_v18  ;;  %v4118_v37 = vadd.f32 %v8472_v7, %v4117_v16 }
 0xf0d   : > { %v8491_v3 = vadd.f32 %v6532_v36, %v4182_v25  ;;  %v4183_v0 = vmul.f32 %v8475_v56, %v4126_v12 }
 0xf0e   : > { %v8485_v28 = vadd.f32 %v6531_v9, %v4180_v15  ;;  %v4181_v59 = vmul.f32 %v8475_v56, %v4118_v37  ;;  %v6542_v15 = vld [vmem:[%s9135_s16 + $0x58] sm:$0xff] }
 0xf0f   : > { %v8506_v5 = vadd.f32 %v6534_v44, %v4183_v0  ;;  %v4220_v39 = vsel %vm838_vm1, %v8491_v3, 0.0 }
 0xf10   : > { %v8497_v19 = vadd.f32 %v6533_v61, %v4181_v59  ;;  %v4214_v51 = vsel %vm838_vm1, %v8485_v28, 0.0 }
 0xf11   : > { %4215 = vadd.xlane.f32.xlu0 %v4214_v51  ;;  %v4223_v48 = vsel %vm838_vm1, %v8506_v5, 0.0 }
 0xf12   : > { %v4217_v14 = vsel %vm838_vm1, %v8497_v19, 0.0 }
 0xf13   : > { %4218 = vadd.xlane.f32.xlu1 %v4217_v14 }
 0xf15   : > { %4221 = vadd.xlane.f32.xlu0 %v4220_v39 }
 0xf19   : > { %4224 = vadd.xlane.f32.xlu0 %v4223_v48 }
 0xf20   : > { %v5992_v52 = vpop.f32.mrb[76].mxu0 }
 0xf21   : > { %v4139_v13 = vadd.f32 %v5992_v52, %v8472_v7  ;;  %v4130_v4 = vpop.f32.mrb[77].mxu0 }
 0xf22   : > { %v4131_v22 = vadd.f32 %v8472_v7, %v4130_v4  ;;  %v5993_v53 = vpop.f32.mrb[78].mxu0 }
 0xf23   : > { %v4142_v33 = vadd.f32 %v5993_v53, %v8472_v7  ;;  %v4133_v38 = vpop.f32.mrb[79].mxu0  ;;  %v4186_v46 = vmul.f32 %v8475_v56, %v4139_v13 }
 0xf24   : > { %v4184_v20 = vmul.f32 %v8475_v56, %v4131_v22  ;;  %v4134_v26 = vadd.f32 %v8472_v7, %v4133_v38  ;;  %v6543_v38 = vld [vmem:[%s9135_s16 + $0x60] sm:$0xff] }
 0xf25   : > { %v4187_v34 = vmul.f32 %v8475_v56, %v4142_v33  ;;  %v8528_v8 = vadd.f32 %v6536_v27, %v4186_v46 }
 0xf26   : > { %v8521_v62 = vadd.f32 %v6535_v47, %v4184_v20  ;;  %v4185_v17 = vmul.f32 %v8475_v56, %v4134_v26 }
 0xf27   : > { %v8540_v29 = vadd.f32 %v6538_v41, %v4187_v34  ;;  %v4232_v42 = vsel %vm838_vm1, %v8528_v8, 0.0 }
 0xf28   : > { %v8533_v49 = vadd.f32 %v6537_v6, %v4185_v17  ;;  %v4226_v30 = vsel %vm838_vm1, %v8521_v62, 0.0  ;;  %v6545_v6 = vld [vmem:[%s9135_s16 + $0x68] sm:$0xff] }
 0xf29   : > { %4227 = vadd.xlane.f32.xlu0 %v4226_v30  ;;  %v4235_v40 = vsel %vm838_vm1, %v8540_v29, 0.0 }
 0xf2a   : > { %v4229_v35 = vsel %vm838_vm1, %v8533_v49, 0.0 }
 0xf2b   : > { %4230 = vadd.xlane.f32.xlu1 %v4229_v35 }
 0xf2d   : > { %4233 = vadd.xlane.f32.xlu0 %v4232_v42 }
 0xf2f   : > { %4236 = vadd.xlane.f32.xlu1 %v4235_v40  ;;  %v6546_v40 = vld [vmem:[%s9135_s16 + $0x78] sm:$0xff] }
 0xf9e   : > { %v4216_v55 = vpop.xlane.xlu0 %4215 }
 0xf9f   : > { %v4262_v44 = vmul.f32 0.03125, %v4216_v55 }
 0xfa0   : > { %v4219_v61 = vpop.xlane.xlu1 %4218 }
 0xfa1   : > { %v4263_v33 = vmul.f32 0.03125, %v4219_v61  ;;  %v8598_v47 = vsub.f32 %v8485_v28, %v4262_v44 }
 0xfa2   : > { %v4222_v23 = vpop.xlane.xlu0 %4221 }
 0xfa3   : > { %v4264_v17 = vmul.f32 0.03125, %v4222_v23  ;;  %v8613_v35 = vsub.f32 %v8497_v19, %v4263_v33 }
 0xfa6   : > { %v4225_v39 = vpop.xlane.xlu0 %4224 }
 0xfa7   : > { %v4265_v42 = vmul.f32 0.03125, %v4225_v39 }
 0xfb6   : > { %v4228_v34 = vpop.xlane.xlu0 %4227 }
 0xfb7   : > { %v4266_v55 = vmul.f32 0.03125, %v4228_v34 }
 0xfb8   : > { %v4231_v41 = vpop.xlane.xlu1 %4230 }
 0xfcd   : > { %v5996_v21 = vpop.f32.mrb[80].mxu0 }
 0xfce   : > { %v4155_v54 = vadd.f32 %v5996_v21, %v8472_v7  ;;  %v4146_v45 = vpop.f32.mrb[81].mxu0 }
 0xfcf   : > { %v4147_v2 = vadd.f32 %v8472_v7, %v4146_v45  ;;  %v5997_v58 = vpop.f32.mrb[82].mxu0  ;;  %v8623_v45 = vsub.f32 %v8491_v3, %v4264_v17 }
 0xfd0   : > { %v4158_v57 = vadd.f32 %v5997_v58, %v8472_v7  ;;  %v4149_v24 = vpop.f32.mrb[83].mxu0  ;;  %v4190_v63 = vmul.f32 %v8475_v56, %v4155_v54  ;;  %v4294_v58 = vmul.f32 %v8598_v47, %v8598_v47 }
 0xfd1   : > { %v4188_v50 = vmul.f32 %v8475_v56, %v4147_v2  ;;  %v4150_v32 = vadd.f32 %v8472_v7, %v4149_v24  ;;  %v8630_v24 = vsub.f32 %v8506_v5, %v4265_v42 }
 0xfd2   : > { %v4191_v31 = vmul.f32 %v8475_v56, %v4158_v57  ;;  %v8564_v18 = vadd.f32 %v6540_v11, %v4190_v63  ;;  %v4234_v57 = vpop.xlane.xlu0 %4233  ;;  %v4267_v63 = vmul.f32 0.03125, %v4231_v41  ;;  %v4310_v23 = vsel %vm838_vm1, %v4294_v58, 0.0 }
 0xfd3   : > { %v8557_v60 = vadd.f32 %v6539_v10, %v4188_v50  ;;  %v4189_v1 = vmul.f32 %v8475_v56, %v4150_v32  ;;  %v4295_v32 = vmul.f32 %v8613_v35, %v8613_v35  ;;  %v4237_v10 = vpop.xlane.xlu1 %4236  ;;  %v4296_v11 = vmul.f32 %v8623_v45, %v8623_v45 }
 0xfd4   : > { %v8576_v12 = vadd.f32 %v6542_v15, %v4191_v31  ;;  %v4244_v0 = vsel %vm838_vm1, %v8564_v18, 0.0  ;;  %v8637_v31 = vsub.f32 %v8521_v62, %v4266_v55 }
 0xfd5   : > { %v8569_v16 = vadd.f32 %v6541_v43, %v4189_v1  ;;  %v4238_v25 = vsel %vm838_vm1, %v8557_v60, 0.0  ;;  %v4268_v1 = vmul.f32 0.03125, %v4234_v57  ;;  %v8643_v43 = vsub.f32 %v8533_v49, %v4267_v63 }
 0xfd6   : > { %4239 = vadd.xlane.f32.xlu0 %v4238_v25  ;;  %v4247_v13 = vsel %vm838_vm1, %v8576_v12, 0.0  ;;  %v4269_v25 = vmul.f32 0.03125, %v4237_v10  ;;  %v4313_v15 = vsel %vm838_vm1, %v4295_v32, 0.0 }
 0xfd7   : > { %v4241_v37 = vsel %vm838_vm1, %v8569_v16, 0.0 }
 0xfd8   : > { %4242 = vadd.xlane.f32.xlu1 %v4241_v37  ;;  %v6000_v9 = vpop.f32.mrb[84].mxu0  ;;  %v4297_v37 = vmul.f32 %v8630_v24, %v8630_v24 }
 0xfd9   : > { %v4171_v59 = vadd.f32 %v6000_v9, %v8472_v7  ;;  %v4162_v36 = vpop.f32.mrb[85].mxu0  ;;  %v8649_v9 = vsub.f32 %v8528_v8, %v4268_v1 }
 0xfda   : > { %v4163_v51 = vadd.f32 %v8472_v7, %v4162_v36  ;;  %4245 = vadd.xlane.f32.xlu0 %v4244_v0  ;;  %v6001_v14 = vpop.f32.mrb[86].mxu0  ;;  %v4298_v36 = vmul.f32 %v8637_v31, %v8637_v31  ;;  %v8655_v0 = vsub.f32 %v8540_v29, %v4269_v25  ;;  %v4319_v61 = vsel %vm838_vm1, %v4297_v37, 0.0 }
 0xfdb   : > { %v4174_v48 = vadd.f32 %v6001_v14, %v8472_v7  ;;  %v4165_v52 = vpop.f32.mrb[87].mxu0  ;;  %v4194_v4 = vmul.f32 %v8475_v56, %v4171_v59  ;;  %v4316_v59 = vsel %vm838_vm1, %v4296_v11, 0.0  ;;  %v4300_v44 = vmul.f32 %v8649_v9, %v8649_v9 }
 0xfdc   : > { %v4192_v22 = vmul.f32 %v8475_v56, %v4163_v51  ;;  %v4166_v53 = vadd.f32 %v8472_v7, %v4165_v52  ;;  %4248 = vadd.xlane.f32.xlu1 %v4247_v13  ;;  %v6544_v7 = vld [vmem:[%s9135_s16 + $0x70] sm:$0xff]  ;;  %v4299_v51 = vmul.f32 %v8643_v43, %v8643_v43  ;;  %v4322_v14 = vsel %vm838_vm1, %v4298_v36, 0.0 }
 0xfdd   : > { %v4195_v20 = vmul.f32 %v8475_v56, %v4174_v48  ;;  %v8603_v27 = vadd.f32 %v6544_v7, %v4194_v4  ;;  %v4301_v48 = vmul.f32 %v8655_v0, %v8655_v0  ;;  %v4328_v52 = vsel %vm838_vm1, %v4300_v44, 0.0  ;;  %v6137_v4 = vld [vmem:[%s6779_s24] sm:$0xff]  }
 0xfde   : > { %v8593_v46 = vadd.f32 %v6543_v38, %v4192_v22  ;;  %v4193_v26 = vmul.f32 %v8475_v56, %v4166_v53  ;;  %v4325_v39 = vsel %vm838_vm1, %v4299_v51, 0.0  ;;  %6002 = vmatprep.subr.bf16.mxu1 %v6137_v4  ;;  %v6138_v22 = vld [vmem:[%s6779_s24 + $0x8] sm:$0xff]  }
 0xfdf   : > { %v8618_v21 = vadd.f32 %v6546_v40, %v4195_v20  ;;  %v4256_v2 = vsel %vm838_vm1, %v8603_v27, 0.0  ;;  %v4331_v13 = vsel %vm838_vm1, %v4301_v48, 0.0  ;;  %6003 = vmatpush3.bf16.msra.mxu1 %v6137_v4 }
 0xfe0   : > { %v8608_v30 = vadd.f32 %v6545_v6, %v4193_v26  ;;  %v4250_v56 = vsel %vm838_vm1, %v8593_v46, 0.0  ;;  %6004 = vmatprep.subr.bf16.mxu1 %v6138_v22 }
 0xfe1   : > { %4251 = vadd.xlane.f32.xlu0 %v4250_v56  ;;  %v4259_v50 = vsel %vm838_vm1, %v8618_v21, 0.0 }
 0xfe2   : > { %v4253_v54 = vsel %vm838_vm1, %v8608_v30, 0.0 }
 0xfe3   : > { %4254 = vadd.xlane.f32.xlu1 %v4253_v54  ;;  %6005 = vmatpush3.bf16.msra.mxu1 %v6138_v22 }
 0xfe5   : > { %4257 = vadd.xlane.f32.xlu0 %v4256_v2 }
 0xfe7   : > { %4260 = vadd.xlane.f32.xlu1 %v4259_v50 }
 0xfe9   : > { %4311 = vadd.xlane.f32.xlu0 %v4310_v23 }
 0xfeb   : > { %4314 = vadd.xlane.f32.xlu1 %v4313_v15 }
 0xfed   : > { %4317 = vadd.xlane.f32.xlu0 %v4316_v59 }
 0xfef   : > { %4320 = vadd.xlane.f32.xlu1 %v4319_v61 }
 0xff1   : > { %4323 = vadd.xlane.f32.xlu0 %v4322_v14 }
 0xff3   : > { %4326 = vadd.xlane.f32.xlu1 %v4325_v39 }
 0xff5   : > { %4329 = vadd.xlane.f32.xlu0 %v4328_v52 }
 0xff7   : > { %4332 = vadd.xlane.f32.xlu1 %v4331_v13 }
0x1063   : > { %v4240_v53 = vpop.xlane.xlu0 %4239 }
0x1064   : > { %v4270_v33 = vmul.f32 0.03125, %v4240_v53 }
0x1065   : > { %v4243_v38 = vpop.xlane.xlu1 %4242 }
0x1066   : > { %v8671_v20 = vsub.f32 %v8557_v60, %v4270_v33  ;;  %v4271_v26 = vmul.f32 0.03125, %v4243_v38 }
0x1067   : > { %v4246_v34 = vpop.xlane.xlu0 %4245 }
0x1068   : > { %v8674_v17 = vsub.f32 %v8569_v16, %v4271_v26  ;;  %v4272_v7 = vmul.f32 0.03125, %v4246_v34  ;;  %v4302_v6 = vmul.f32 %v8671_v20, %v8671_v20 }
0x1069   : > { %v4249_v56 = vpop.xlane.xlu1 %4248 }
0x106a   : > { %v8679_v41 = vsub.f32 %v8564_v18, %v4272_v7  ;;  %v4273_v42 = vmul.f32 0.03125, %v4249_v56  ;;  %v4334_v40 = vsel %vm838_vm1, %v4302_v6, 0.0  ;;  %v4303_v54 = vmul.f32 %v8674_v17, %v8674_v17 }
0x106b   : > { %4335 = vadd.xlane.f32.xlu0 %v4334_v40 }
0x106c   : > { %v8685_v55 = vsub.f32 %v8576_v12, %v4273_v42  ;;  %v4337_v2 = vsel %vm838_vm1, %v4303_v54, 0.0  ;;  %v4304_v58 = vmul.f32 %v8679_v41, %v8679_v41 }
0x106d   : > { %4338 = vadd.xlane.f32.xlu1 %v4337_v2 }
0x106e   : > { %v4252_v57 = vpop.xlane.xlu0 %4251  ;;  %v4340_v63 = vsel %vm838_vm1, %v4304_v58, 0.0  ;;  %v4305_v50 = vmul.f32 %v8685_v55, %v8685_v55 }
0x106f   : > { %v4274_v32 = vmul.f32 0.03125, %v4252_v57  ;;  %4341 = vadd.xlane.f32.xlu0 %v4340_v63 }
0x1070   : > { %v4255_v10 = vpop.xlane.xlu1 %4254  ;;  %v4343_v1 = vsel %vm838_vm1, %v4305_v50, 0.0 }
0x1071   : > { %v8695_v23 = vsub.f32 %v8593_v46, %v4274_v32  ;;  %v4275_v11 = vmul.f32 0.03125, %v4255_v10  ;;  %4344 = vadd.xlane.f32.xlu1 %v4343_v1 }
0x1072   : > { %v4258_v25 = vpop.xlane.xlu0 %4257 }
0x1073   : > { %v8698_v15 = vsub.f32 %v8608_v30, %v4275_v11  ;;  %v4276_v37 = vmul.f32 0.03125, %v4258_v25  ;;  %v4306_v59 = vmul.f32 %v8695_v23, %v8695_v23 }
0x1074   : > { %v4261_v36 = vpop.xlane.xlu1 %4260 }
0x1075   : > { %v8703_v61 = vsub.f32 %v8603_v27, %v4276_v37  ;;  %v4277_v51 = vmul.f32 0.03125, %v4261_v36  ;;  %v4346_v14 = vsel %vm838_vm1, %v4306_v59, 0.0  ;;  %v4307_v44 = vmul.f32 %v8698_v15, %v8698_v15  ;;  %v8723_v59 = vld [vmem:[%s755_s3] ss:$0 sm:$0xff] }
0x1076   : > { %4347 = vadd.xlane.f32.xlu0 %v4346_v14  ;;  %v4312_v39 = vpop.xlane.xlu0 %4311 }
0x1077   : > { %v8709_v48 = vsub.f32 %v8618_v21, %v4277_v51  ;;  %v4358_v52 = vmul.f32 0.03125, %v4312_v39  ;;  %v4349_v13 = vsel %vm838_vm1, %v4307_v44, 0.0  ;;  %v4308_v4 = vmul.f32 %v8703_v61, %v8703_v61 }
0x1078   : > { %v4315_v22 = vpop.xlane.xlu1 %4314  ;;  %4350 = vadd.xlane.f32.xlu1 %v4349_v13 }
0x1079   : > { %v4374_v53 = vadd.f32 1e-05, %v4358_v52  ;;  %v4359_v33 = vmul.f32 0.03125, %v4315_v22  ;;  %v4352_v38 = vsel %vm838_vm1, %v4308_v4, 0.0  ;;  %v4309_v26 = vmul.f32 %v8709_v48, %v8709_v48  ;;  %v8733_v22 = vld [vmem:[%s758_s5] ss:$0 sm:$0xff] }
0x107a   : > { %4353 = vadd.xlane.f32.xlu0 %v4352_v38  ;;  %v4318_v34 = vpop.xlane.xlu0 %4317 }
0x107b   : > { %6435 = vrsqrt.f32 %v4374_v53  ;;  %v4375_v7 = vadd.f32 1e-05, %v4359_v33  ;;  %v4360_v6 = vmul.f32 0.03125, %v4318_v34  ;;  %v4355_v56 = vsel %vm838_vm1, %v4309_v26, 0.0 }
0x107c   : > { %4356 = vadd.xlane.f32.xlu1 %v4355_v56  ;;  %v4321_v42 = vpop.xlane.xlu1 %4320 }
0x107d   : > { %6437 = vrsqrt.f32 %v4375_v7  ;;  %v4376_v40 = vadd.f32 1e-05, %v4360_v6  ;;  %v4361_v54 = vmul.f32 0.03125, %v4321_v42 }
0x107e   : > { %v4324_v2 = vpop.xlane.xlu0 %4323 }
0x107f   : > { %6439 = vrsqrt.f32 %v4376_v40  ;;  %v4377_v58 = vadd.f32 1e-05, %v4361_v54  ;;  %v4362_v57 = vmul.f32 0.03125, %v4324_v2 }
0x1080   : > { %v4327_v63 = vpop.xlane.xlu1 %4326 }
0x1081   : > { %6441 = vrsqrt.f32 %v4377_v58  ;;  %v4378_v50 = vadd.f32 1e-05, %v4362_v57  ;;  %v4363_v32 = vmul.f32 0.03125, %v4327_v63 }
0x1082   : > { %v4330_v10 = vpop.xlane.xlu0 %4329 }
0x1083   : > { %6443 = vrsqrt.f32 %v4378_v50  ;;  %v4379_v1 = vadd.f32 1e-05, %v4363_v32  ;;  %v4364_v11 = vmul.f32 0.03125, %v4330_v10 }
0x1084   : > { %v4333_v25 = vpop.xlane.xlu1 %4332 }
0x1085   : > { %v6436_v37 = vpop.eup %6435  ;;  %6445 = vrsqrt.f32 %v4379_v1  ;;  %v4380_v36 = vadd.f32 1e-05, %v4364_v11  ;;  %v4365_v51 = vmul.f32 0.03125, %v4333_v25 }
0x1086   : > { %v4406_v14 = vmul.f32 %v6436_v37, %v8598_v47 }
0x1087   : > { %v6438_v44 = vpop.eup %6437  ;;  %6447 = vrsqrt.f32 %v4380_v36  ;;  %v4381_v39 = vadd.f32 1e-05, %v4365_v51  ;;  %v6139_v36 = vld [vmem:[%s6789_s19] sm:$0xff]   ;;  %v6140_v51 = vld [vmem:[%s6789_s19 + $0x8] sm:$0xff]  }
0x1088   : > { %v4407_v52 = vmul.f32 %v6438_v44, %v8613_v35  ;;  %v4428_v13 = vmul.f32 %v8723_v59, %v4406_v14  ;;  %6022 = vmatprep.subr.bf16.mxu0 %v6139_v36  ;;  %v6141_v14 = vld [vmem:[%s6789_s19 + $0x10] sm:$0xff]   ;;  %v6142_v44 = vld [vmem:[%s6789_s19 + $0x18] sm:$0xff]  }
0x1089   : > { %v6440_v4 = vpop.eup %6439  ;;  %6449 = vrsqrt.f32 %v4381_v39  ;;  %6023 = vmatpush3.bf16.msra.mxu0 %v6139_v36 }
0x108a   : > { %v4408_v53 = vmul.f32 %v6440_v4, %v8623_v45  ;;  %v4429_v33 = vmul.f32 %v8723_v59, %v4407_v52  ;;  %v4450_v35 = vadd.f32 %v8733_v22, %v4428_v13  ;;  %6024 = vmatprep.subr.bf16.mxu0 %v6140_v51  ;;  %v6143_v13 = vld [vmem:[%s6789_s19 + $0x20] sm:$0xff]  }
0x108b   : > { %v6442_v47 = vpop.eup %6441 }
0x108c   : > { %v4430_v38 = vmul.f32 %v8723_v59, %v4408_v53  ;;  %v4409_v26 = vmul.f32 %v6442_v47, %v8630_v24  ;;  %v4451_v34 = vadd.f32 %v8733_v22, %v4429_v33 }
0x108d   : > { %v6444_v7 = vpop.eup %6443  ;;  %6025 = vmatpush3.bf16.msra.mxu0 %v6140_v51 }
0x108e   : > { %v4431_v6 = vmul.f32 %v8723_v59, %v4409_v26  ;;  %v4410_v56 = vmul.f32 %v6444_v7, %v8637_v31  ;;  %v4466_v42 = vpack.c.bf16 %v4451_v34, %v4450_v35  ;;  %v4452_v45 = vadd.f32 %v8733_v22, %v4430_v38  ;;  %6026 = vmatprep.subr.bf16.mxu0 %v6141_v14  ;;  %v6144_v35 = vld [vmem:[%s6789_s19 + $0x28] sm:$0xff]  }
0x108f   : > { %v6446_v40 = vpop.eup %6445 }
0x1090   : > { %v4453_v54 = vadd.f32 %v8733_v22, %v4431_v6  ;;  %v4411_v2 = vmul.f32 %v6446_v40, %v8643_v43  ;;  %6006 = vmatprep.mubr.msk.bf16.mxu1 %vm838_vm1, %v4466_v42  ;;  %v4432_v24 = vmul.f32 %v8723_v59, %v4410_v56  ;;  %v6145_v42 = vld [vmem:[%s6789_s19 + $0x30] sm:$0xff]  }
0x1091   : > { %v6448_v58 = vpop.eup %6447  ;;  %6027 = vmatpush3.bf16.msra.mxu0 %v6141_v14 }
0x1092   : > { %v4412_v57 = vmul.f32 %v6448_v58, %v8649_v9  ;;  %v4467_v63 = vpack.c.bf16 %v4453_v54, %v4452_v45  ;;  %v4433_v50 = vmul.f32 %v8723_v59, %v4411_v2  ;;  %v4454_v10 = vadd.f32 %v8733_v22, %v4432_v24  ;;  %6028 = vmatprep.subr.bf16.mxu0 %v6142_v44  ;;  %v6146_v45 = vld [vmem:[%s6789_s19 + $0x38] sm:$0xff]  }
0x1093   : > { %v6450_v31 = vpop.eup %6449 }
0x1094   : > { %v4413_v32 = vmul.f32 %v6450_v31, %v8655_v0  ;;  %6007 = vmatmul.mubr.msk.bf16.vlgmr.msra.gmra.mrb[88].mxu1 %vm838_vm1, %v4467_v63  ;;  %v4455_v43 = vadd.f32 %v8733_v22, %v4433_v50  ;;  %v4434_v1 = vmul.f32 %v8723_v59, %v4412_v57 }
0x1095   : > { %6029 = vmatpush3.bf16.msra.mxu0 %v6142_v44 }
0x1096   : > { %v4468_v11 = vpack.c.bf16 %v4455_v43, %v4454_v10  ;;  %v4435_v9 = vmul.f32 %v8723_v59, %v4413_v32  ;;  %v4456_v25 = vadd.f32 %v8733_v22, %v4434_v1  ;;  %6030 = vmatprep.subr.bf16.mxu0 %v6143_v13 }
0x1098   : > { %6010 = vmatprep.mubr.msk.bf16.mxu1 %vm838_vm1, %v4468_v11  ;;  %v4457_v37 = vadd.f32 %v8733_v22, %v4435_v9 }
0x1099   : > { %6031 = vmatpush3.bf16.msra.mxu0 %v6143_v13 }
0x109a   : > { %v4469_v0 = vpack.c.bf16 %v4457_v37, %v4456_v25  ;;  %6032 = vmatprep.subr.bf16.mxu0 %v6144_v35 }
0x109c   : > { %6011 = vmatmul.mubr.msk.bf16.gmra.mrb[92].mxu1 %vm838_vm1, %v4469_v0 }
0x109d   : > { %6033 = vmatpush3.bf16.msra.mxu0 %v6144_v35 }
0x109e   : > { %6034 = vmatprep.subr.bf16.mxu0 %v6145_v42 }
0x10a1   : > { %6035 = vmatpush3.bf16.msra.mxu0 %v6145_v42 }
0x10a2   : > { %6036 = vmatprep.subr.bf16.mxu0 %v6146_v45 }
0x10a5   : > { %6037 = vmatpush3.bf16.msra.mxu0 %v6146_v45 }
0x10f8   : > { %v4336_v39 = vpop.xlane.xlu0 %4335 }
0x10f9   : > { %v4366_v52 = vmul.f32 0.03125, %v4336_v39 }
0x10fa   : > { %v4339_v4 = vpop.xlane.xlu1 %4338 }
0x10fb   : > { %v4382_v53 = vadd.f32 1e-05, %v4366_v52  ;;  %v4367_v33 = vmul.f32 0.03125, %v4339_v4 }
0x10fc   : > { %v4342_v47 = vpop.xlane.xlu0 %4341 }
0x10fd   : > { %6451 = vrsqrt.f32 %v4382_v53  ;;  %v4383_v38 = vadd.f32 1e-05, %v4367_v33  ;;  %v4368_v26 = vmul.f32 0.03125, %v4342_v47 }
0x10fe   : > { %v4345_v34 = vpop.xlane.xlu1 %4344 }
0x10ff   : > { %6453 = vrsqrt.f32 %v4383_v38  ;;  %v4384_v7 = vadd.f32 1e-05, %v4368_v26  ;;  %v4369_v6 = vmul.f32 0.03125, %v4345_v34 }
0x1101   : > { %6455 = vrsqrt.f32 %v4384_v7  ;;  %v4385_v56 = vadd.f32 1e-05, %v4369_v6 }
0x1103   : > { %6457 = vrsqrt.f32 %v4385_v56  ;;  %v4348_v40 = vpop.xlane.xlu0 %4347 }
0x1104   : > { %v4370_v54 = vmul.f32 0.03125, %v4348_v40 }
0x1105   : > { %v4351_v2 = vpop.xlane.xlu1 %4350 }
0x1106   : > { %v4386_v24 = vadd.f32 1e-05, %v4370_v54  ;;  %v4371_v58 = vmul.f32 0.03125, %v4351_v2 }
0x1107   : > { %v6452_v57 = vpop.eup %6451  ;;  %v4354_v63 = vpop.xlane.xlu0 %4353 }
0x1108   : > { %v4414_v50 = vmul.f32 %v6452_v57, %v8671_v20  ;;  %6459 = vrsqrt.f32 %v4386_v24  ;;  %v4387_v31 = vadd.f32 1e-05, %v4371_v58  ;;  %v4372_v32 = vmul.f32 0.03125, %v4354_v63 }
0x1109   : > { %v6454_v10 = vpop.eup %6453  ;;  %v4357_v43 = vpop.xlane.xlu1 %4356 }
0x110a   : > { %v4415_v1 = vmul.f32 %v6454_v10, %v8674_v17  ;;  %6461 = vrsqrt.f32 %v4387_v31  ;;  %v4388_v11 = vadd.f32 1e-05, %v4372_v32  ;;  %v4373_v9 = vmul.f32 0.03125, %v4357_v43 }
0x110b   : > { %v6456_v25 = vpop.eup %6455  ;;  %v4436_v37 = vmul.f32 %v8723_v59, %v4414_v50 }
0x110c   : > { %v4416_v0 = vmul.f32 %v6456_v25, %v8679_v41  ;;  %6463 = vrsqrt.f32 %v4388_v11  ;;  %v4389_v36 = vadd.f32 1e-05, %v4373_v9  ;;  %v4437_v20 = vmul.f32 %v8723_v59, %v4415_v1 }
0x110d   : > { %v6458_v51 = vpop.eup %6457  ;;  %v4458_v14 = vadd.f32 %v8733_v22, %v4436_v37 }
0x110e   : > { %v4417_v44 = vmul.f32 %v6458_v51, %v8685_v55  ;;  %6465 = vrsqrt.f32 %v4389_v36  ;;  %v4459_v17 = vadd.f32 %v8733_v22, %v4437_v20  ;;  %v4438_v39 = vmul.f32 %v8723_v59, %v4416_v0 }
0x1110   : > { %v4470_v52 = vpack.c.bf16 %v4459_v17, %v4458_v14  ;;  %v4439_v13 = vmul.f32 %v8723_v59, %v4417_v44  ;;  %v4460_v41 = vadd.f32 %v8733_v22, %v4438_v39 }
0x1112   : > { %v6460_v4 = vpop.eup %6459  ;;  %6014 = vmatprep.mubr.msk.bf16.mxu1 %vm838_vm1, %v4470_v52  ;;  %v4461_v53 = vadd.f32 %v8733_v22, %v4439_v13 }
0x1113   : > { %v4418_v33 = vmul.f32 %v6460_v4, %v8695_v23 }
0x1114   : > { %v6462_v47 = vpop.eup %6461  ;;  %v4471_v38 = vpack.c.bf16 %v4461_v53, %v4460_v41 }
0x1115   : > { %v4419_v55 = vmul.f32 %v6462_v47, %v8698_v15  ;;  %v4440_v26 = vmul.f32 %v8723_v59, %v4418_v33 }
0x1116   : > { %v6464_v35 = vpop.eup %6463  ;;  %6015 = vmatmul.mubr.msk.bf16.gmra.mrb[96].mxu1 %vm838_vm1, %v4471_v38 }
0x1117   : > { %v4420_v34 = vmul.f32 %v6464_v35, %v8703_v61  ;;  %v4441_v7 = vmul.f32 %v8723_v59, %v4419_v55  ;;  %v4462_v42 = vadd.f32 %v8733_v22, %v4440_v26 }
0x1118   : > { %v6466_v6 = vpop.eup %6465 }
0x1119   : > { %v4421_v56 = vmul.f32 %v6466_v6, %v8709_v48  ;;  %v4463_v23 = vadd.f32 %v8733_v22, %v4441_v7  ;;  %v4442_v40 = vmul.f32 %v8723_v59, %v4420_v34  ;;  %v8801_v48 = vld [vmem:[%s766_s26] ss:$0 sm:$0xff] }
0x111b   : > { %v4472_v15 = vpack.c.bf16 %v4463_v23, %v4462_v42  ;;  %v4443_v45 = vmul.f32 %v8723_v59, %v4421_v56  ;;  %v4464_v54 = vadd.f32 %v8733_v22, %v4442_v40 }
0x111d   : > { %6018 = vmatprep.mubr.msk.bf16.mxu1 %vm838_vm1, %v4472_v15  ;;  %v4465_v61 = vadd.f32 %v8733_v22, %v4443_v45 }
0x111f   : > { %v4473_v2 = vpack.c.bf16 %v4465_v61, %v4464_v54 }
0x1121   : > { %6019 = vmatmul.mubr.msk.bf16.gmra.mrb[100].mxu1 %vm838_vm1, %v4473_v2 }
0x1167   : > { %v6008_v24 = vpop.f32.mrb[88].mxu1 }
0x1168   : > { %v8804_v58 = vadd.f32 %v6008_v24, %v8801_v48  ;;  %v4555_v59 = vpop.f32.mrb[89].mxu1 }
0x1169   : > { %v8807_v57 = vadd.f32 %v8801_v48, %v4555_v59  ;;  %v6009_v63 = vpop.f32.mrb[90].mxu1 }
0x116a   : > { %v4636_v22 = vmul.f32 %v8804_v58, %v8804_v58  ;;  %v8812_v50 = vadd.f32 %v6009_v63, %v8801_v48  ;;  %v4558_v31 = vpop.f32.mrb[91].mxu1 }
0x116b   : > { %v4634_v32 = vmul.f32 %v8807_v57, %v8807_v57  ;;  %v8817_v10 = vadd.f32 %v8801_v48, %v4558_v31 }
0x116c   : > { %v4652_v43 = vmul.f32 %v4636_v22, %v8804_v58  ;;  %v4637_v1 = vmul.f32 %v8812_v50, %v8812_v50 }
0x116d   : > { %v4650_v11 = vmul.f32 %v4634_v32, %v8807_v57  ;;  %v4635_v9 = vmul.f32 %v8817_v10, %v8817_v10 }
0x116e   : > { %v4668_v25 = vmul.f32 0.044715, %v4652_v43  ;;  %v4653_v37 = vmul.f32 %v4637_v1, %v8812_v50 }
0x116f   : > { %v4666_v0 = vmul.f32 0.044715, %v4650_v11  ;;  %v4651_v36 = vmul.f32 %v4635_v9, %v8817_v10  ;;  %v6012_v20 = vpop.f32.mrb[92].mxu1 }
0x1170   : > { %v4684_v51 = vadd.f32 %v4668_v25, %v8804_v58  ;;  %v4669_v14 = vmul.f32 0.044715, %v4653_v37  ;;  %v8829_v44 = vadd.f32 %v6012_v20, %v8801_v48  ;;  %v4571_v17 = vpop.f32.mrb[93].mxu1 }
0x1171   : > { %v4682_v39 = vadd.f32 %v4666_v0, %v8807_v57  ;;  %v4667_v52 = vmul.f32 0.044715, %v4651_v36  ;;  %v8833_v13 = vadd.f32 %v8801_v48, %v4571_v17  ;;  %v6013_v4 = vpop.f32.mrb[94].mxu1 }
0x1172   : > { %v4700_v41 = vmul.f32 0.7978846, %v4684_v51  ;;  %v4685_v53 = vadd.f32 %v4669_v14, %v8812_v50  ;;  %v4640_v33 = vmul.f32 %v8829_v44, %v8829_v44  ;;  %v4583_v47 = vadd.f32 %v6013_v4, %v8801_v48  ;;  %v4574_v38 = vpop.f32.mrb[95].mxu1 }
0x1173   : > { %v4698_v55 = vmul.f32 0.7978846, %v4682_v39  ;;  %v4683_v26 = vadd.f32 %v4667_v52, %v8817_v10  ;;  %v4638_v35 = vmul.f32 %v8833_v13, %v8833_v13  ;;  %v4575_v34 = vadd.f32 %v8801_v48, %v4574_v38 }
0x1174   : > { %6467 = vtanh.f32 %v4700_v41  ;;  %v4701_v7 = vmul.f32 0.7978846, %v4685_v53  ;;  %v4656_v6 = vmul.f32 %v4640_v33, %v8829_v44  ;;  %v4641_v56 = vmul.f32 %v4583_v47, %v4583_v47 }
0x1175   : > { %6469 = vtanh.f32 %v4698_v55  ;;  %v4699_v42 = vmul.f32 0.7978846, %v4683_v26  ;;  %v4654_v23 = vmul.f32 %v4638_v35, %v8833_v13  ;;  %v4639_v40 = vmul.f32 %v4575_v34, %v4575_v34 }
0x1176   : > { %6471 = vtanh.f32 %v4701_v7  ;;  %v4672_v15 = vmul.f32 0.044715, %v4656_v6  ;;  %v4657_v45 = vmul.f32 %v4641_v56, %v4583_v47  ;;  %v4620_v51 = vmul.f32 0.5, %v8804_v58 }
0x1177   : > { %6473 = vtanh.f32 %v4699_v42  ;;  %v4670_v54 = vmul.f32 0.044715, %v4654_v23  ;;  %v4655_v61 = vmul.f32 %v4639_v40, %v4575_v34  ;;  %v4621_v14 = vmul.f32 0.5, %v8812_v50 }
0x1178   : > { %v4688_v2 = vadd.f32 %v4672_v15, %v8829_v44  ;;  %v4673_v24 = vmul.f32 0.044715, %v4657_v45  ;;  %v4618_v39 = vmul.f32 0.5, %v8807_v57  ;;  %v4619_v52 = vmul.f32 0.5, %v8817_v10 }
0x1179   : > { %v4686_v59 = vadd.f32 %v4670_v54, %v8833_v13  ;;  %v4671_v63 = vmul.f32 0.044715, %v4655_v61  ;;  %v4624_v50 = vmul.f32 0.5, %v8829_v44  ;;  %v4625_v57 = vmul.f32 0.5, %v4583_v47 }
0x117a   : > { %v4704_v22 = vmul.f32 0.7978846, %v4688_v2  ;;  %v4689_v31 = vadd.f32 %v4673_v24, %v4583_v47  ;;  %v4622_v10 = vmul.f32 0.5, %v8833_v13  ;;  %v4623_v40 = vmul.f32 0.5, %v4575_v34 }
0x117b   : > { %v4702_v32 = vmul.f32 0.7978846, %v4686_v59  ;;  %v4687_v43 = vadd.f32 %v4671_v63, %v4575_v34 }
0x117c   : > { %6475 = vtanh.f32 %v4704_v22  ;;  %v4705_v1 = vmul.f32 0.7978846, %v4689_v31 }
0x117d   : > { %6477 = vtanh.f32 %v4702_v32  ;;  %v4703_v11 = vmul.f32 0.7978846, %v4687_v43 }
0x117e   : > { %v6468_v9 = vpop.eup %6467  ;;  %6479 = vtanh.f32 %v4705_v1 }
0x117f   : > { %v6470_v25 = vpop.eup %6469  ;;  %v4732_v37 = vadd.f32 1.0, %v6468_v9  ;;  %6481 = vtanh.f32 %v4703_v11 }
0x1180   : > { %v6472_v0 = vpop.eup %6471  ;;  %v4730_v36 = vadd.f32 1.0, %v6470_v25 }
0x1181   : > { %v6474_v20 = vpop.eup %6473  ;;  %v4733_v17 = vadd.f32 1.0, %v6472_v0  ;;  %v4748_v41 = vmul.f32 %v4732_v37, %v4620_v51 }
0x1182   : > { %v4731_v4 = vadd.f32 1.0, %v6474_v20  ;;  %v4746_v33 = vmul.f32 %v4730_v36, %v4618_v39 }
0x1183   : > { %v4749_v53 = vmul.f32 %v4733_v17, %v4621_v14 }
0x1184   : > { %v4747_v38 = vmul.f32 %v4731_v4, %v4619_v52 }
0x1185   : > { %v4763_v55 = vpack.c.bf16 %v4749_v53, %v4748_v41 }
0x1186   : > { %v6476_v26 = vpop.eup %6475  ;;  %v4762_v35 = vpack.c.bf16 %v4747_v38, %v4746_v33 }
0x1187   : > { %v6478_v7 = vpop.eup %6477  ;;  %v4736_v6 = vadd.f32 1.0, %v6476_v26 }
0x1188   : > { %v6480_v56 = vpop.eup %6479  ;;  %6038 = vmatprep.mubr.bf16.mxu0 %v4762_v35  ;;  %v4734_v58 = vadd.f32 1.0, %v6478_v7 }
0x1189   : > { %v6482_v42 = vpop.eup %6481  ;;  %6039 = vmatmul.mubr.bf16.vlgmr.msra.gmra.mrb[88].mxu0 %v4763_v55  ;;  %v4737_v23 = vadd.f32 1.0, %v6480_v56  ;;  %v4752_v45 = vmul.f32 %v4736_v6, %v4624_v50 }
0x118a   : > { %v4735_v15 = vadd.f32 1.0, %v6482_v42  ;;  %v4750_v61 = vmul.f32 %v4734_v58, %v4622_v10 }
0x118b   : > { %v4753_v54 = vmul.f32 %v4737_v23, %v4625_v57 }
0x118c   : > { %v4751_v2 = vmul.f32 %v4735_v15, %v4623_v40 }
0x118d   : > { %v4765_v24 = vpack.c.bf16 %v4753_v54, %v4752_v45 }
0x118e   : > { %v4764_v59 = vpack.c.bf16 %v4751_v2, %v4750_v61 }
0x1190   : > { %6042 = vmatprep.mubr.bf16.mxu0 %v4764_v59 }
0x1191   : > { %6043 = vmatmul.mubr.bf16.gmra.mrb[92].mxu0 %v4765_v24 }
0x11e9   : > { %v6016_v63 = vpop.f32.mrb[96].mxu1 }
0x11ea   : > { %v8854_v22 = vadd.f32 %v6016_v63, %v8801_v48  ;;  %v4587_v31 = vpop.f32.mrb[97].mxu1 }
0x11eb   : > { %v8857_v44 = vadd.f32 %v8801_v48, %v4587_v31  ;;  %v6017_v47 = vpop.f32.mrb[98].mxu1 }
0x11ec   : > { %v4644_v13 = vmul.f32 %v8854_v22, %v8854_v22  ;;  %v8862_v34 = vadd.f32 %v6017_v47, %v8801_v48  ;;  %v4590_v32 = vpop.f32.mrb[99].mxu1 }
0x11ed   : > { %v4642_v43 = vmul.f32 %v8857_v44, %v8857_v44  ;;  %v8867_v1 = vadd.f32 %v8801_v48, %v4590_v32 }
0x11ee   : > { %v4660_v11 = vmul.f32 %v4644_v13, %v8854_v22  ;;  %v4645_v9 = vmul.f32 %v8862_v34, %v8862_v34 }
0x11ef   : > { %v4658_v25 = vmul.f32 %v4642_v43, %v8857_v44  ;;  %v4643_v37 = vmul.f32 %v8867_v1, %v8867_v1 }
0x11f0   : > { %v4676_v0 = vmul.f32 0.044715, %v4660_v11  ;;  %v4661_v36 = vmul.f32 %v4645_v9, %v8862_v34 }
0x11f1   : > { %v4674_v20 = vmul.f32 0.044715, %v4658_v25  ;;  %v4659_v51 = vmul.f32 %v4643_v37, %v8867_v1 }
0x11f2   : > { %v4692_v14 = vadd.f32 %v4676_v0, %v8854_v22  ;;  %v4677_v17 = vmul.f32 0.044715, %v4661_v36 }
0x11f3   : > { %v4690_v39 = vadd.f32 %v4674_v20, %v8857_v44  ;;  %v4675_v52 = vmul.f32 0.044715, %v4659_v51 }
0x11f4   : > { %v4708_v4 = vmul.f32 0.7978846, %v4692_v14  ;;  %v4693_v41 = vadd.f32 %v4677_v17, %v8862_v34  ;;  %v6020_v53 = vpop.f32.mrb[100].mxu1  ;;  %v4628_v14 = vmul.f32 0.5, %v8854_v22  ;;  %v4629_v17 = vmul.f32 0.5, %v8862_v34 }
0x11f5   : > { %v4706_v33 = vmul.f32 0.7978846, %v4690_v39  ;;  %v4691_v38 = vadd.f32 %v4675_v52, %v8867_v1  ;;  %v4612_v55 = vadd.f32 %v6020_v53, %v8801_v48  ;;  %v4603_v26 = vpop.f32.mrb[101].mxu1  ;;  %v4626_v52 = vmul.f32 0.5, %v8857_v44 }
0x11f6   : > { %6483 = vtanh.f32 %v4708_v4  ;;  %v4709_v35 = vmul.f32 0.7978846, %v4693_v41  ;;  %v4604_v7 = vadd.f32 %v8801_v48, %v4603_v26  ;;  %v6021_v6 = vpop.f32.mrb[102].mxu1  ;;  %v4627_v4 = vmul.f32 0.5, %v8867_v1 }
0x11f7   : > { %6485 = vtanh.f32 %v4706_v33  ;;  %v4707_v56 = vmul.f32 0.7978846, %v4691_v38  ;;  %v4648_v58 = vmul.f32 %v4612_v55, %v4612_v55  ;;  %v4615_v42 = vadd.f32 %v6021_v6, %v8801_v48  ;;  %v4606_v50 = vpop.f32.mrb[103].mxu1 }
0x11f8   : > { %6487 = vtanh.f32 %v4709_v35  ;;  %v4646_v57 = vmul.f32 %v4604_v7, %v4604_v7  ;;  %v4607_v23 = vadd.f32 %v8801_v48, %v4606_v50  ;;  %v4630_v1 = vmul.f32 0.5, %v4604_v7 }
0x11f9   : > { %6489 = vtanh.f32 %v4707_v56  ;;  %v4664_v10 = vmul.f32 %v4648_v58, %v4612_v55  ;;  %v4649_v40 = vmul.f32 %v4615_v42, %v4615_v42  ;;  %v4633_v44 = vmul.f32 0.5, %v4615_v42 }
0x11fa   : > { %v4662_v15 = vmul.f32 %v4646_v57, %v4604_v7  ;;  %v4647_v45 = vmul.f32 %v4607_v23, %v4607_v23 }
0x11fb   : > { %v4680_v54 = vmul.f32 0.044715, %v4664_v10  ;;  %v4665_v61 = vmul.f32 %v4649_v40, %v4615_v42  ;;  %v4632_v10 = vmul.f32 0.5, %v4612_v55 }
0x11fc   : > { %v4678_v2 = vmul.f32 0.044715, %v4662_v15  ;;  %v4663_v24 = vmul.f32 %v4647_v45, %v4607_v23  ;;  %v4631_v15 = vmul.f32 0.5, %v4607_v23 }
0x11fd   : > { %v4696_v59 = vadd.f32 %v4680_v54, %v4612_v55  ;;  %v4681_v63 = vmul.f32 0.044715, %v4665_v61 }
0x11fe   : > { %v4694_v31 = vadd.f32 %v4678_v2, %v4604_v7  ;;  %v4679_v47 = vmul.f32 0.044715, %v4663_v24 }
0x11ff   : > { %v4712_v13 = vmul.f32 0.7978846, %v4696_v59  ;;  %v4697_v32 = vadd.f32 %v4681_v63, %v4615_v42 }
0x1200   : > { %v6484_v43 = vpop.eup %6483  ;;  %v4710_v11 = vmul.f32 0.7978846, %v4694_v31  ;;  %v4695_v9 = vadd.f32 %v4679_v47, %v4607_v23  ;;  %v8894_v31 = vld [vmem:[%s774_s22] ss:$0 sm:$0xff]  ;;  %s5083_s22 = sld [smem:[#allocation3 + %s5082_s18]] }
0x1201   : > { %v6486_v25 = vpop.eup %6485  ;;  %6491 = vtanh.f32 %v4712_v13  ;;  %v4713_v48 = vmul.f32 0.7978846, %v4697_v32  ;;  %v4740_v37 = vadd.f32 1.0, %v6484_v43 }
0x1202   : > { %v6488_v0 = vpop.eup %6487  ;;  %6493 = vtanh.f32 %v4710_v11  ;;  %v4711_v36 = vmul.f32 0.7978846, %v4695_v9  ;;  %v4738_v20 = vadd.f32 1.0, %v6486_v25 }
0x1203   : > { %v6490_v51 = vpop.eup %6489  ;;  %6495 = vtanh.f32 %v4713_v48  ;;  %v4741_v39 = vadd.f32 1.0, %v6488_v0  ;;  %v4756_v53 = vmul.f32 %v4740_v37, %v4628_v14 }
0x1204   : > { %6497 = vtanh.f32 %v4711_v36  ;;  %v4739_v41 = vadd.f32 1.0, %v6490_v51  ;;  %v4754_v38 = vmul.f32 %v4738_v20, %v4626_v52 }
0x1205   : > { %v4757_v33 = vmul.f32 %v4741_v39, %v4629_v17 }
0x1206   : > { %v4755_v26 = vmul.f32 %v4739_v41, %v4627_v4 }
0x1207   : > { %v4767_v35 = vpack.c.bf16 %v4757_v33, %v4756_v53 }
0x1208   : > { %v4766_v6 = vpack.c.bf16 %v4755_v26, %v4754_v38 }
0x120a   : > { %6046 = vmatprep.mubr.bf16.mxu0 %v4766_v6 }
0x120b   : > { %v6492_v56 = vpop.eup %6491  ;;  %6047 = vmatmul.mubr.bf16.gmra.mrb[96].mxu0 %v4767_v35 }
0x120c   : > { %v6494_v58 = vpop.eup %6493  ;;  %v4744_v22 = vadd.f32 1.0, %v6492_v56 }
0x120d   : > { %v6496_v50 = vpop.eup %6495  ;;  %v4742_v34 = vadd.f32 1.0, %v6494_v58 }
0x120e   : > { %v6498_v57 = vpop.eup %6497  ;;  %v4745_v40 = vadd.f32 1.0, %v6496_v50  ;;  %v4760_v54 = vmul.f32 %v4744_v22, %v4632_v10 }
0x120f   : > { %v4743_v45 = vadd.f32 1.0, %v6498_v57  ;;  %v4758_v2 = vmul.f32 %v4742_v34, %v4630_v1 }
0x1210   : > { %v4761_v61 = vmul.f32 %v4745_v40, %v4633_v44 }
0x1211   : > { %v4759_v24 = vmul.f32 %v4743_v45, %v4631_v15 }
0x1212   : > { %v4769_v59 = vpack.c.bf16 %v4761_v61, %v4760_v54 }
0x1213   : > { %v4768_v63 = vpack.c.bf16 %v4759_v24, %v4758_v2 }
0x1215   : > { %6050 = vmatprep.mubr.bf16.mxu0 %v4768_v63 }
0x1216   : > { %6051 = vmatmul.mubr.bf16.gmra.mrb[100].mxu0 %v4769_v59 }
0x125c   : > { %v6040_v55 = vpop.f32.mrb[88].mxu0 }
0x125d   : > { %v8897_v42 = vadd.f32 %v6040_v55, %v8894_v31  ;;  %v4875_v7 = vpop.f32.mrb[89].mxu0 }
0x125e   : > { %v8900_v23 = vadd.f32 %v8894_v31, %v4875_v7  ;;  %v6041_v47 = vpop.f32.mrb[90].mxu0 }
0x125f   : > { %v4956_v13 = vmul.f32 %v8897_v42, %v8897_v42  ;;  %v8905_v32 = vadd.f32 %v6041_v47, %v8894_v31  ;;  %v4878_v43 = vpop.f32.mrb[91].mxu0 }
0x1260   : > { %v4954_v11 = vmul.f32 %v8900_v23, %v8900_v23  ;;  %v8910_v9 = vadd.f32 %v8894_v31, %v4878_v43 }
0x1261   : > { %v4972_v25 = vmul.f32 %v4956_v13, %v8897_v42  ;;  %v4957_v48 = vmul.f32 %v8905_v32, %v8905_v32 }
0x1262   : > { %v4970_v37 = vmul.f32 %v4954_v11, %v8900_v23  ;;  %v4955_v0 = vmul.f32 %v8910_v9, %v8910_v9 }
0x1263   : > { %v4988_v36 = vmul.f32 0.044715, %v4972_v25  ;;  %v4973_v20 = vmul.f32 %v4957_v48, %v8905_v32 }
0x1264   : > { %v4986_v51 = vmul.f32 0.044715, %v4970_v37  ;;  %v4971_v14 = vmul.f32 %v4955_v0, %v8910_v9  ;;  %v6044_v17 = vpop.f32.mrb[92].mxu0 }
0x1265   : > { %v5004_v39 = vadd.f32 %v4988_v36, %v8897_v42  ;;  %v4989_v52 = vmul.f32 0.044715, %v4973_v20  ;;  %v8922_v4 = vadd.f32 %v6044_v17, %v8894_v31  ;;  %v4891_v41 = vpop.f32.mrb[93].mxu0  ;;  %v4940_v36 = vmul.f32 0.5, %v8897_v42 }
0x1266   : > { %v5002_v53 = vadd.f32 %v4986_v51, %v8900_v23  ;;  %v4987_v33 = vmul.f32 0.044715, %v4971_v14  ;;  %v8926_v38 = vadd.f32 %v8894_v31, %v4891_v41  ;;  %v6045_v26 = vpop.f32.mrb[94].mxu0  ;;  %v8955_v17 = vstv %s5083_s22 }
0x1267   : > { %v5020_v35 = vmul.f32 0.7978846, %v5004_v39  ;;  %v5005_v6 = vadd.f32 %v4989_v52, %v8905_v32  ;;  %v4960_v56 = vmul.f32 %v8922_v4, %v8922_v4  ;;  %v4894_v58 = vpop.f32.mrb[95].mxu0  ;;  %v8936_v44 = vadd.f32 %v6045_v26, %v8894_v31 }
0x1268   : > { %v5018_v22 = vmul.f32 0.7978846, %v5002_v53  ;;  %v5003_v50 = vadd.f32 %v4987_v33, %v8910_v9  ;;  %v4958_v34 = vmul.f32 %v8926_v38, %v8926_v38  ;;  %v8942_v15 = vadd.f32 %v8894_v31, %v4894_v58 }
0x1269   : > { %6499 = vtanh.f32 %v5020_v35  ;;  %v5021_v57 = vmul.f32 0.7978846, %v5005_v6  ;;  %v4976_v10 = vmul.f32 %v4960_v56, %v8922_v4  ;;  %v4961_v54 = vmul.f32 %v8936_v44, %v8936_v44 }
0x126a   : > { %6501 = vtanh.f32 %v5018_v22  ;;  %v5019_v40 = vmul.f32 0.7978846, %v5003_v50  ;;  %v4974_v1 = vmul.f32 %v4958_v34, %v8926_v38  ;;  %v4959_v2 = vmul.f32 %v8942_v15, %v8942_v15 }
0x126b   : > { %6503 = vtanh.f32 %v5021_v57  ;;  %v4992_v45 = vmul.f32 0.044715, %v4976_v10  ;;  %v4977_v59 = vmul.f32 %v4961_v54, %v8936_v44  ;;  %v4938_v39 = vmul.f32 0.5, %v8900_v23 }
0x126c   : > { %6505 = vtanh.f32 %v5019_v40  ;;  %v4990_v61 = vmul.f32 0.044715, %v4974_v1  ;;  %v4975_v55 = vmul.f32 %v4959_v2, %v8942_v15  ;;  %v4941_v33 = vmul.f32 0.5, %v8905_v32 }
0x126d   : > { %v5008_v24 = vadd.f32 %v4992_v45, %v8922_v4  ;;  %v4993_v47 = vmul.f32 0.044715, %v4977_v59  ;;  %v4939_v6 = vmul.f32 0.5, %v8910_v9  ;;  %v4944_v1 = vmul.f32 0.5, %v8922_v4 }
0x126e   : > { %v5006_v63 = vadd.f32 %v4990_v61, %v8926_v38  ;;  %v4991_v43 = vmul.f32 0.044715, %v4975_v55 }
0x126f   : > { %v5024_v7 = vmul.f32 0.7978846, %v5008_v24  ;;  %v5009_v11 = vadd.f32 %v4993_v47, %v8936_v44 }
0x1270   : > { %v5022_v13 = vmul.f32 0.7978846, %v5006_v63  ;;  %v5007_v25 = vadd.f32 %v4991_v43, %v8942_v15  ;;  %v4943_v63 = vmul.f32 0.5, %v8942_v15 }
0x1271   : > { %6507 = vtanh.f32 %v5024_v7  ;;  %v5025_v37 = vmul.f32 0.7978846, %v5009_v11 }
0x1272   : > { %6509 = vtanh.f32 %v5022_v13  ;;  %v5023_v51 = vmul.f32 0.7978846, %v5007_v25 }
0x1273   : > { %v6500_v48 = vpop.eup %6499  ;;  %6511 = vtanh.f32 %v5025_v37 }
0x1274   : > { %v6502_v0 = vpop.eup %6501  ;;  %v5052_v20 = vadd.f32 1.0, %v6500_v48  ;;  %6513 = vtanh.f32 %v5023_v51 }
0x1275   : > { %v6504_v14 = vpop.eup %6503  ;;  %v5050_v52 = vadd.f32 1.0, %v6502_v0 }
0x1276   : > { %v6506_v41 = vpop.eup %6505  ;;  %v5068_v53 = vmul.f32 %v5052_v20, %v4940_v36  ;;  %v5053_v26 = vadd.f32 1.0, %v6504_v14 }
0x1277   : > { %v5066_v35 = vmul.f32 %v5050_v52, %v4938_v39  ;;  %v5051_v56 = vadd.f32 1.0, %v6506_v41 }
0x1278   : > { %v5087_v42 = vmul.f32 %v8955_v17, %v5068_v53  ;;  %v5069_v58 = vmul.f32 %v5053_v26, %v4941_v33 }
0x1279   : > { %v5085_v22 = vmul.f32 %v8955_v17, %v5066_v35  ;;  %v5067_v50 = vmul.f32 %v5051_v56, %v4939_v6 }
0x127a   : > { %v5103_v23 = vadd.f32 %v5087_v42, %v8491_v3  ;;  %v5088_v34 = vmul.f32 %v8955_v17, %v5069_v58  ;;  %v4942_v3 = vmul.f32 0.5, %v8926_v38 }
0x127b   : > { %v6508_v57 = vpop.eup %6507  ;;  %v5101_v10 = vadd.f32 %v5085_v22, %v8485_v28  ;;  %v5086_v32 = vmul.f32 %v8955_v17, %v5067_v50 }
0x127c   : > { %v6510_v40 = vpop.eup %6509  ;;  %5119 = vst.msk [vmem:[%s9135_s16 + $0x10] sm:$0xff] %vm838_vm1, %v5103_v23  ;;  %v5104_v9 = vadd.f32 %v5088_v34, %v8506_v5  ;;  %v5056_v45 = vadd.f32 1.0, %v6508_v57 }
0x127d   : > { %5117 = vst.msk [vmem:[%s9135_s16] sm:$0xff] %vm838_vm1, %v5101_v10  ;;  %v5102_v28 = vadd.f32 %v5086_v32, %v8497_v19  ;;  %v5054_v54 = vadd.f32 1.0, %v6510_v40  ;;  %v6512_v5 = vpop.eup %6511  ;;  %v4945_v19 = vmul.f32 0.5, %v8936_v44 }
0x127e   : > { %5120 = vst.msk [vmem:[%s9135_s16 + $0x18] sm:$0xff] %vm838_vm1, %v5104_v9  ;;  %v5072_v61 = vmul.f32 %v5056_v45, %v4944_v1  ;;  %v6514_v2 = vpop.eup %6513  ;;  %v5057_v38 = vadd.f32 1.0, %v6512_v5 }
0x127f   : > { %5118 = vst.msk [vmem:[%s9135_s16 + $0x8] sm:$0xff] %vm838_vm1, %v5102_v28  ;;  %v5070_v4 = vmul.f32 %v5054_v54, %v4942_v3  ;;  %v5055_v55 = vadd.f32 1.0, %v6514_v2 }
0x1280   : > { %v5091_v24 = vmul.f32 %v8955_v17, %v5072_v61  ;;  %v5073_v47 = vmul.f32 %v5057_v38, %v4945_v19 }
0x1281   : > { %v5089_v59 = vmul.f32 %v8955_v17, %v5070_v4  ;;  %v5071_v43 = vmul.f32 %v5055_v55, %v4943_v63 }
0x1282   : > { %v5107_v7 = vadd.f32 %v5091_v24, %v8528_v8  ;;  %v5092_v11 = vmul.f32 %v8955_v17, %v5073_v47 }
0x1283   : > { %v5105_v13 = vadd.f32 %v5089_v59, %v8521_v62  ;;  %v5090_v44 = vmul.f32 %v8955_v17, %v5071_v43 }
0x1284   : > { %5123 = vst.msk [vmem:[%s9135_s16 + $0x30] sm:$0xff] %vm838_vm1, %v5107_v7  ;;  %v5108_v8 = vadd.f32 %v5092_v11, %v8540_v29 }
0x1285   : > { %5121 = vst.msk [vmem:[%s9135_s16 + $0x20] sm:$0xff] %vm838_vm1, %v5105_v13  ;;  %v5106_v15 = vadd.f32 %v5090_v44, %v8533_v49 }
0x1286   : > { %5124 = vst.msk [vmem:[%s9135_s16 + $0x38] sm:$0xff] %vm838_vm1, %v5108_v8 }
0x1287   : > { %5122 = vst.msk [vmem:[%s9135_s16 + $0x28] sm:$0xff] %vm838_vm1, %v5106_v15 }
0x12de   : > { %v6048_v62 = vpop.f32.mrb[96].mxu0 }
0x12df   : > { %v4916_v25 = vadd.f32 %v6048_v62, %v8894_v31  ;;  %v4907_v48 = vpop.f32.mrb[97].mxu0 }
0x12e0   : > { %v4908_v37 = vadd.f32 %v8894_v31, %v4907_v48  ;;  %v6049_v0 = vpop.f32.mrb[98].mxu0 }
0x12e1   : > { %v4964_v29 = vmul.f32 %v4916_v25, %v4916_v25  ;;  %v9015_v49 = vadd.f32 %v6049_v0, %v8894_v31  ;;  %v4910_v36 = vpop.f32.mrb[99].mxu0  ;;  %v4948_v62 = vmul.f32 0.5, %v4916_v25 }
0x12e2   : > { %v4962_v20 = vmul.f32 %v4908_v37, %v4908_v37  ;;  %v9018_v51 = vadd.f32 %v8894_v31, %v4910_v36  ;;  %v4946_v36 = vmul.f32 0.5, %v4908_v37 }
0x12e3   : > { %v4980_v14 = vmul.f32 %v4964_v29, %v4916_v25  ;;  %v4965_v39 = vmul.f32 %v9015_v49, %v9015_v49 }
0x12e4   : > { %v4978_v52 = vmul.f32 %v4962_v20, %v4908_v37  ;;  %v4963_v41 = vmul.f32 %v9018_v51, %v9018_v51 }
0x12e5   : > { %v4996_v53 = vmul.f32 0.044715, %v4980_v14  ;;  %v4981_v33 = vmul.f32 %v4965_v39, %v9015_v49 }
0x12e6   : > { %v4994_v26 = vmul.f32 0.044715, %v4978_v52  ;;  %v4979_v35 = vmul.f32 %v4963_v41, %v9018_v51  ;;  %v4949_v41 = vmul.f32 0.5, %v9015_v49 }
0x12e7   : > { %v5012_v6 = vadd.f32 %v4996_v53, %v4916_v25  ;;  %v4997_v56 = vmul.f32 0.044715, %v4981_v33 }
0x12e8   : > { %v5010_v42 = vadd.f32 %v4994_v26, %v4908_v37  ;;  %v4995_v58 = vmul.f32 0.044715, %v4979_v35  ;;  %v4947_v35 = vmul.f32 0.5, %v9018_v51 }
0x12e9   : > { %v5028_v22 = vmul.f32 0.7978846, %v5012_v6  ;;  %v5013_v50 = vadd.f32 %v4997_v56, %v9015_v49  ;;  %v6052_v23 = vpop.f32.mrb[100].mxu0 }
0x12ea   : > { %v5026_v34 = vmul.f32 0.7978846, %v5010_v42  ;;  %v5011_v57 = vadd.f32 %v4995_v58, %v9018_v51  ;;  %v9029_v10 = vadd.f32 %v6052_v23, %v8894_v31  ;;  %v4923_v32 = vpop.f32.mrb[101].mxu0 }
0x12eb   : > { %6515 = vtanh.f32 %v5028_v22  ;;  %v5029_v40 = vmul.f32 0.7978846, %v5013_v50  ;;  %v9032_v9 = vadd.f32 %v8894_v31, %v4923_v32  ;;  %v6053_v1 = vpop.f32.mrb[102].mxu0 }
0x12ec   : > { %6517 = vtanh.f32 %v5026_v34  ;;  %v5027_v45 = vmul.f32 0.7978846, %v5011_v57  ;;  %v4968_v28 = vmul.f32 %v9029_v10, %v9029_v10  ;;  %v4926_v3 = vpop.f32.mrb[103].mxu0  ;;  %v9039_v61 = vadd.f32 %v6053_v1, %v8894_v31 }
0x12ed   : > { %6519 = vtanh.f32 %v5029_v40  ;;  %v4966_v54 = vmul.f32 %v9032_v9, %v9032_v9  ;;  %v9043_v4 = vadd.f32 %v8894_v31, %v4926_v3  ;;  %v4950_v57 = vmul.f32 0.5, %v9032_v9 }
0x12ee   : > { %6521 = vtanh.f32 %v5027_v45  ;;  %v4984_v5 = vmul.f32 %v4968_v28, %v9029_v10  ;;  %v4969_v24 = vmul.f32 %v9039_v61, %v9039_v61  ;;  %v4953_v28 = vmul.f32 0.5, %v9039_v61 }
0x12ef   : > { %v4982_v2 = vmul.f32 %v4966_v54, %v9032_v9  ;;  %v4967_v38 = vmul.f32 %v9043_v4, %v9043_v4 }
0x12f0   : > { %v5000_v19 = vmul.f32 0.044715, %v4984_v5  ;;  %v4985_v63 = vmul.f32 %v4969_v24, %v9039_v61  ;;  %v4951_v5 = vmul.f32 0.5, %v9043_v4 }
0x12f1   : > { %v4998_v59 = vmul.f32 0.044715, %v4982_v2  ;;  %v4983_v7 = vmul.f32 %v4967_v38, %v9043_v4 }
0x12f2   : > { %v5016_v55 = vadd.f32 %v5000_v19, %v9029_v10  ;;  %v5001_v31 = vmul.f32 0.044715, %v4985_v63 }
0x12f3   : > { %v5014_v47 = vadd.f32 %v4998_v59, %v9032_v9  ;;  %v4999_v43 = vmul.f32 0.044715, %v4983_v7 }
0x12f4   : > { %v5032_v13 = vmul.f32 0.7978846, %v5016_v55  ;;  %v5017_v8 = vadd.f32 %v5001_v31, %v9039_v61 }
0x12f5   : > { %v6516_v11 = vpop.eup %6515  ;;  %v5030_v44 = vmul.f32 0.7978846, %v5014_v47  ;;  %v5015_v0 = vadd.f32 %v4999_v43, %v9043_v4 }
0x12f6   : > { %v6518_v15 = vpop.eup %6517  ;;  %v5060_v48 = vadd.f32 1.0, %v6516_v11  ;;  %6523 = vtanh.f32 %v5032_v13  ;;  %v5033_v14 = vmul.f32 0.7978846, %v5017_v8 }
0x12f7   : > { %v6520_v29 = vpop.eup %6519  ;;  %v5058_v20 = vadd.f32 1.0, %v6518_v15  ;;  %6525 = vtanh.f32 %v5030_v44  ;;  %v5031_v33 = vmul.f32 0.7978846, %v5015_v0 }
0x12f8   : > { %v6522_v39 = vpop.eup %6521  ;;  %v5076_v52 = vmul.f32 %v5060_v48, %v4948_v62  ;;  %v5061_v53 = vadd.f32 1.0, %v6520_v29  ;;  %6527 = vtanh.f32 %v5033_v14 }
0x12f9   : > { %v5074_v26 = vmul.f32 %v5058_v20, %v4946_v36  ;;  %v5059_v6 = vadd.f32 1.0, %v6522_v39  ;;  %6529 = vtanh.f32 %v5031_v33 }
0x12fa   : > { %v5095_v25 = vmul.f32 %v8955_v17, %v5076_v52  ;;  %v5077_v56 = vmul.f32 %v5061_v53, %v4949_v41 }
0x12fb   : > { %v5093_v37 = vmul.f32 %v8955_v17, %v5074_v26  ;;  %v5075_v42 = vmul.f32 %v5059_v6, %v4947_v35 }
0x12fc   : > { %v5111_v58 = vadd.f32 %v5095_v25, %v8564_v18  ;;  %v5096_v22 = vmul.f32 %v8955_v17, %v5077_v56 }
0x12fd   : > { %v5109_v49 = vadd.f32 %v5093_v37, %v8557_v60  ;;  %v5094_v50 = vmul.f32 %v8955_v17, %v5075_v42 }
0x12fe   : > { %5127 = vst.msk [vmem:[%s9135_s16 + $0x50] sm:$0xff] %vm838_vm1, %v5111_v58  ;;  %v5112_v51 = vadd.f32 %v5096_v22, %v8576_v12  ;;  %v4952_v12 = vmul.f32 0.5, %v9029_v10 }
0x12ff   : > { %5125 = vst.msk [vmem:[%s9135_s16 + $0x40] sm:$0xff] %vm838_vm1, %v5109_v49  ;;  %v5110_v18 = vadd.f32 %v5094_v50, %v8569_v16 }
0x1300   : > { %v6524_v23 = vpop.eup %6523  ;;  %5128 = vst.msk [vmem:[%s9135_s16 + $0x58] sm:$0xff] %vm838_vm1, %v5112_v51 }
0x1301   : > { %v6526_v60 = vpop.eup %6525  ;;  %5126 = vst.msk [vmem:[%s9135_s16 + $0x48] sm:$0xff] %vm838_vm1, %v5110_v18  ;;  %v5064_v34 = vadd.f32 1.0, %v6524_v23 }
0x1302   : > { %v5062_v32 = vadd.f32 1.0, %v6526_v60  ;;  %v6528_v40 = vpop.eup %6527 }
0x1303   : > { %v5080_v16 = vmul.f32 %v5064_v34, %v4952_v12  ;;  %v6530_v1 = vpop.eup %6529  ;;  %v5065_v3 = vadd.f32 1.0, %v6528_v40 }
0x1304   : > { %v5078_v45 = vmul.f32 %v5062_v32, %v4950_v57  ;;  %v5063_v2 = vadd.f32 1.0, %v6530_v1 }
0x1305   : > { %v5099_v54 = vmul.f32 %v8955_v17, %v5080_v16  ;;  %v5081_v19 = vmul.f32 %v5065_v3, %v4953_v28 }
0x1306   : > { %v5097_v24 = vmul.f32 %v8955_v17, %v5078_v45  ;;  %v5079_v38 = vmul.f32 %v5063_v2, %v4951_v5 }
0x1307   : > { %v5115_v10 = vadd.f32 %v5099_v54, %v8603_v27  ;;  %v5100_v59 = vmul.f32 %v8955_v17, %v5081_v19 }
0x1308   : > { %v5113_v9 = vadd.f32 %v5097_v24, %v8593_v46  ;;  %v5098_v61 = vmul.f32 %v8955_v17, %v5079_v38 }
0x1309   : > { %5131 = vst.msk [vmem:[%s9135_s16 + $0x70] sm:$0xff] %vm838_vm1, %v5115_v10  ;;  %v5116_v4 = vadd.f32 %v5100_v59, %v8618_v21 }
0x130a   : > { %5129 = vst.msk [vmem:[%s9135_s16 + $0x60] sm:$0xff] %vm838_vm1, %v5113_v9  ;;  %v5114_v27 = vadd.f32 %v5098_v61, %v8608_v30 }
0x130b   : > { %5132 = vst.msk [vmem:[%s9135_s16 + $0x78] sm:$0xff] %vm838_vm1, %v5116_v4 }
0x130c   : > { %5130 = vst.msk [vmem:[%s9135_s16 + $0x68] sm:$0xff] %vm838_vm1, %v5114_v27 }
0x130d PF: > { %s9182_s24 = sld [smem:[#allocation7_spill]]  ;;  %s9183_s21 = sld [smem:[#allocation6_spill]] }
0x130e   : > { %s9184_s22 = sld [smem:[#allocation8_spill]] }
0x1313   : > { %s27_s23 = sadd.s32 1, %s9182_s24  }
0x1314   : > { %p24_p3 = scmp.ge.s32.totalorder %s27_s23, 4  }
0x1316   :  { %26 = sbr.rel (!%p24_p3) target bundleno = 11 (0xb), region = 165 }
0x131d   :  { %5157 = vsyncpa [#allocation4], 1 }
0x131e   :  { %5159 = vsyncpa [#allocation4 + $0x1], 1 }

</bundles_post_ra>
